<compile_context>
chip_gen: v7x
topology: tpu7x:2x2x1
jax: 0.10.0
libtpu: 0.0.40
codegen_flags: <defaults>
</compile_context>

<pallas_src>
import math

import jax
import jax.numpy as jnp
from jax.experimental import pallas as pl
from jax.experimental.pallas import tpu as pltpu

_LOG_SQRT_2PI = math.log(math.sqrt(2.0 * math.pi))
# rho whose softplus is exactly 1.0 -> used for padded elements.
_RHO_PAD = math.log(math.e - 1.0)


def _softplus(x):
    # Numerically stable log1p(exp(x)) (matches torch.log1p(torch.exp(rho))
    # for the module's rho range, but does not overflow for large rho).
    return jnp.where(x > 20.0, x, jnp.log1p(jnp.exp(jnp.minimum(x, 20.0))))


def _bayesian_linear_kernel(
    x_ref,      # (tm, tk)   VMEM
    wmu_ref,    # (tk, tn)   VMEM   weight_mu  transposed to (in, out)
    wrho_ref,   # (tk, tn)   VMEM   weight_rho transposed
    eps_w_ref,  # (tk, tn)   VMEM   eps_w      transposed
    bmu_ref,    # (1, tn)    VMEM
    brho_ref,   # (1, tn)    VMEM
    eps_b_ref,  # (1, tn)    VMEM
    y_ref,      # (tm, tn)   VMEM   output
    logs_ref,   # (2,)       SMEM   output: [log_prior, log_var_posterior]
    acc_ref,    # (tm, tn)   VMEM   f32 scratch accumulator
):
    i = pl.program_id(0)          # M (batch) tiles
    j = pl.program_id(1)          # N (out_features) tiles
    k = pl.program_id(2)          # K (in_features) tiles -- reduction, innermost
    nk = pl.num_programs(2)

    # --- sample the weight tile (reparameterization) ---
    w_sigma = _softplus(wrho_ref[...])
    eps_w = eps_w_ref[...]
    weight = wmu_ref[...] + w_sigma * eps_w                  # (tk, tn)

    # --- matmul accumulation: y_tile += x_tile @ weight_tile ---
    @pl.when(k == 0)
    def _():
        acc_ref[...] = jnp.zeros_like(acc_ref)

    acc_ref[...] += jnp.dot(x_ref[...], weight,
                            preferred_element_type=jnp.float32)

    # --- scalar log-prob accumulators (SMEM output), zeroed on first step ---
    @pl.when((i == 0) & (j == 0) & (k == 0))
    def _():
        logs_ref[0] = jnp.float32(0.0)
        logs_ref[1] = jnp.float32(0.0)

    # Weight-tile contributions, counted once: weight tiles are re-read for
    # every M tile, so only accumulate when i == 0.
    @pl.when(i == 0)
    def _():
        n_w = weight.size  # static tile element count
        lp_w = jnp.sum(-0.5 * weight * weight) - _LOG_SQRT_2PI * n_w
        # (weight - mu)^2 / (2 sigma^2) == eps^2 / 2 exactly.
        lq_w = (jnp.sum(-jnp.log(w_sigma) - 0.5 * eps_w * eps_w)
                - _LOG_SQRT_2PI * n_w)
        logs_ref[0] += lp_w
        logs_ref[1] += lq_w

    # Bias-tile contributions, counted once per N tile.
    @pl.when((i == 0) & (k == 0))
    def _():
        b_sigma = _softplus(brho_ref[...])
        eps_b = eps_b_ref[...]
        bias = bmu_ref[...] + b_sigma * eps_b
        n_b = bias.size
        lp_b = jnp.sum(-0.5 * bias * bias) - _LOG_SQRT_2PI * n_b
        lq_b = (jnp.sum(-jnp.log(b_sigma) - 0.5 * eps_b * eps_b)
                - _LOG_SQRT_2PI * n_b)
        logs_ref[0] += lp_b
        logs_ref[1] += lq_b

    # --- final K step: add sampled bias and write the output tile ---
    @pl.when(k == nk - 1)
    def _():
        b_sigma = _softplus(brho_ref[...])
        bias = bmu_ref[...] + b_sigma * eps_b_ref[...]       # (1, tn)
        y_ref[...] = (acc_ref[...] + bias).astype(y_ref.dtype)


def _round_up(a, b):
    return ((a + b - 1) // b) * b


def _pick_tile(dim, unit, cap):
    """Largest multiple of `unit` <= cap that evenly tiles round_up(dim, unit)."""
    padded = _round_up(dim, unit)
    best = unit
    t = unit
    while t <= min(padded, cap):
        if padded % t == 0:
            best = t
        t += unit
    return best, padded


def bayesian_linear_forward(x, weight_mu, weight_rho, bias_mu, bias_rho,
                            eps_w, eps_b):
    """BayesianLinear forward (sample=True, calculate_log_probs=True).

    Returns (y, log_prior, log_variational_posterior).
    """
    batch, in_features = x.shape
    out_features = weight_mu.shape[0]
    dtype = x.dtype

    # Tile selection: caps sized for v7x's 64 MiB VMEM (double-buffered
    # resident footprint ~ 2*(tm*tk + 3*tk*tn + tm*tn)*4B + acc  <~ 5 MiB at
    # the maxima below) while still filling the MXU for large layers.
    tm, m_pad = _pick_tile(batch, 8, 256)
    tn, n_pad = _pick_tile(out_features, 128, 256)
    tk, k_pad = _pick_tile(in_features, 128, 512)

    # --- padding glue (wrapper-only layout work). Padded elements use mu=0,
    # eps=0, rho=log(e-1) (sigma=1): their matmul contribution is 0 and their
    # log-prob contribution is the constant -log(sqrt(2*pi)) per element,
    # removed analytically below.
    x_p = jnp.zeros((m_pad, k_pad), dtype).at[:batch, :in_features].set(x)
    wmu_t = jnp.zeros((k_pad, n_pad), dtype).at[
        :in_features, :out_features].set(weight_mu.T)
    wrho_t = jnp.full((k_pad, n_pad), _RHO_PAD, dtype).at[
        :in_features, :out_features].set(weight_rho.T)
    eps_w_t = jnp.zeros((k_pad, n_pad), dtype).at[
        :in_features, :out_features].set(eps_w.T)
    bmu_p = jnp.zeros((1, n_pad), dtype).at[0, :out_features].set(bias_mu)
    brho_p = jnp.full((1, n_pad), _RHO_PAD, dtype).at[
        0, :out_features].set(bias_rho)
    eps_b_p = jnp.zeros((1, n_pad), dtype).at[0, :out_features].set(eps_b)

    grid = (m_pad // tm, n_pad // tn, k_pad // tk)

    y_p, logs = pl.pallas_call(
        _bayesian_linear_kernel,
        out_shape=(
            jax.ShapeDtypeStruct((m_pad, n_pad), dtype),
            jax.ShapeDtypeStruct((2,), jnp.float32),
        ),
        grid_spec=pltpu.PrefetchScalarGridSpec(
            num_scalar_prefetch=0,
            grid=grid,
            in_specs=[
                pl.BlockSpec((tm, tk), lambda i, j, k: (i, k)),   # x
                pl.BlockSpec((tk, tn), lambda i, j, k: (k, j)),   # weight_mu^T
                pl.BlockSpec((tk, tn), lambda i, j, k: (k, j)),   # weight_rho^T
                pl.BlockSpec((tk, tn), lambda i, j, k: (k, j)),   # eps_w^T
                pl.BlockSpec((1, tn), lambda i, j, k: (0, j)),    # bias_mu
                pl.BlockSpec((1, tn), lambda i, j, k: (0, j)),    # bias_rho
                pl.BlockSpec((1, tn), lambda i, j, k: (0, j)),    # eps_b
            ],
            out_specs=(
                pl.BlockSpec((tm, tn), lambda i, j, k: (i, j)),           # y
                pl.BlockSpec(memory_space=pltpu.MemorySpace.SMEM),        # logs
            ),
            scratch_shapes=[pltpu.VMEM((tm, tn), jnp.float32)],
        ),
        # All axes "arbitrary": the SMEM scalar accumulation (gated on i==0 /
        # k==0) needs one sequential grid traversal; parallel M/N on a 2-TC
        # chip would double-count / race the scalar outputs.
        compiler_params=pltpu.CompilerParams(
            dimension_semantics=("arbitrary", "arbitrary", "arbitrary"),
        ),
    )(x_p, wmu_t, wrho_t, eps_w_t, bmu_p, brho_p, eps_b_p)

    # Remove the analytic contribution of padded elements.
    n_padded_elems = (k_pad * n_pad - in_features * out_features) + (
        n_pad - out_features)
    pad_contrib = -_LOG_SQRT_2PI * n_padded_elems
    log_prior = logs[0] - pad_contrib
    log_post = logs[1] - pad_contrib

    y = y_p[:batch, :out_features]
    return y, log_prior, log_post


def _reference_forward(x, weight_mu, weight_rho, bias_mu, bias_rho, eps_w, eps_b):
    """Pure-JAX reference, mirroring the PyTorch module exactly."""
    w_sigma = jnp.log1p(jnp.exp(weight_rho))
    b_sigma = jnp.log1p(jnp.exp(bias_rho))
    weight = weight_mu + w_sigma * eps_w
    bias = bias_mu + b_sigma * eps_b
    log_prior = (
        jnp.sum(-_LOG_SQRT_2PI - 0.5 * weight ** 2)
        + jnp.sum(-_LOG_SQRT_2PI - 0.5 * bias ** 2)
    )
    log_post = (
        jnp.sum(-_LOG_SQRT_2PI - jnp.log(w_sigma)
                - (weight - weight_mu) ** 2 / (2 * w_sigma ** 2))
        + jnp.sum(-_LOG_SQRT_2PI - jnp.log(b_sigma)
                  - (bias - bias_mu) ** 2 / (2 * b_sigma ** 2))
    )
    y = x @ weight.T + bias
    return y, log_prior, log_post


def _run_case(key, batch, in_features, out_features):
    k_x, k_wmu, k_wrho, k_bmu, k_brho, k_ew, k_eb = jax.random.split(key, 7)

    x = jax.random.normal(k_x, (batch, in_features), dtype=jnp.float32)
    # Deterministic parameter init matching the module's __init__ ranges.
    weight_mu = jax.random.uniform(k_wmu, (out_features, in_features),
                                   minval=-1.0, maxval=1.0, dtype=jnp.float32)
    weight_rho = jax.random.uniform(k_wrho, (out_features, in_features),
                                    minval=-3.0, maxval=0.0, dtype=jnp.float32)
    bias_mu = jax.random.uniform(k_bmu, (out_features,),
                                 minval=-1.0, maxval=1.0, dtype=jnp.float32)
    bias_rho = jax.random.uniform(k_brho, (out_features,),
                                  minval=-3.0, maxval=0.0, dtype=jnp.float32)
    # TODO(synk): torch.distributions.Normal(0,1).sample() is modeled by
    # passing eps in explicitly; fully fused in-kernel sampling would use
    # pltpu.prng_seed / pltpu.stateful_normal instead.
    eps_w = jax.random.normal(k_ew, (out_features, in_features),
                              dtype=jnp.float32)
    eps_b = jax.random.normal(k_eb, (out_features,), dtype=jnp.float32)

    y, lp, lq = bayesian_linear_forward(
        x, weight_mu, weight_rho, bias_mu, bias_rho, eps_w, eps_b)
    jax.block_until_ready((y, lp, lq))

    y_r, lp_r, lq_r = _reference_forward(
        x, weight_mu, weight_rho, bias_mu, bias_rho, eps_w, eps_b)
    assert jnp.allclose(y, y_r, atol=2e-3, rtol=1e-4), \
        float(jnp.max(jnp.abs(y - y_r)))
    assert jnp.allclose(lp, lp_r, atol=5e-2, rtol=1e-4), (float(lp), float(lp_r))
    assert jnp.allclose(lq, lq_r, atol=5e-2, rtol=1e-4), (float(lq), float(lq_r))


if __name__ == "__main__":
    key = jax.random.PRNGKey(0)
    k1, k2 = jax.random.split(key)

    # Case 1: tile-aligned shapes that exercise a real (1, 3, 2) grid
    # (N-tiling + K-accumulation across grid steps).
    _run_case(k1, batch=8, in_features=768, out_features=384)

    # Case 2: non-divisible shapes that exercise the padding path and the
    # analytic log-prob correction.
    _run_case(k2, batch=5, in_features=200, out_features=72)

    print("KERNEL_OK")
</pallas_src>

<mosaic_0001>
module attributes {stable_mosaic.version = 11 : i64} {
  func.func @_bayesian_linear_kernel(%arg0: i32, %arg1: i32, %arg2: i32, %arg3: memref<8x384xf32, #tpu.memory_space<vmem>>, %arg4: memref<384x128xf32, #tpu.memory_space<vmem>>, %arg5: memref<384x128xf32, #tpu.memory_space<vmem>>, %arg6: memref<384x128xf32, #tpu.memory_space<vmem>>, %arg7: memref<1x128xf32, #tpu.memory_space<vmem>>, %arg8: memref<1x128xf32, #tpu.memory_space<vmem>>, %arg9: memref<1x128xf32, #tpu.memory_space<vmem>>, %arg10: memref<8x128xf32, #tpu.memory_space<vmem>>, %arg11: memref<2xf32, #tpu.memory_space<smem>>, %arg12: memref<8x128xf32, #tpu.memory_space<vmem>>) attributes {dimension_semantics = [#tpu.dimension_semantics<arbitrary>, #tpu.dimension_semantics<arbitrary>, #tpu.dimension_semantics<arbitrary>], iteration_bounds = array<i64: 1, 3, 2>, scalar_prefetch = 0 : i64, scratch_operands = 1 : i64, tpu.core_type = #tpu.core_type<tc>, window_params = [{transform_indices = @transform_0, window_bounds = array<i64: 8, 384>}, {transform_indices = @transform_1, window_bounds = array<i64: 384, 128>}, {transform_indices = @transform_2, window_bounds = array<i64: 384, 128>}, {transform_indices = @transform_3, window_bounds = array<i64: 384, 128>}, {transform_indices = @transform_4, window_bounds = array<i64: 1, 128>}, {transform_indices = @transform_5, window_bounds = array<i64: 1, 128>}, {transform_indices = @transform_6, window_bounds = array<i64: 1, 128>}, {transform_indices = @transform_7, window_bounds = array<i64: 8, 128>}, {transform_indices = @transform_8, window_bounds = array<i64: 2>}]} {
    %c0 = arith.constant 0 : index
    %c0_0 = arith.constant 0 : index
    %0 = vector.load %arg5[%c0, %c0_0] : memref<384x128xf32, #tpu.memory_space<vmem>>, vector<384x128xf32>
    %cst = arith.constant 2.000000e+01 : f32
    %1 = vector.broadcast %cst : f32 to vector<384x128xf32>
    %2 = arith.cmpf ogt, %0, %1 : vector<384x128xf32>
    %cst_1 = arith.constant 2.000000e+01 : f32
    %3 = vector.broadcast %cst_1 : f32 to vector<384x128xf32>
    %4 = arith.minimumf %0, %3 : vector<384x128xf32>
    %5 = math.exp %4 : vector<384x128xf32>
    %6 = math.log1p %5 : vector<384x128xf32>
    %7 = arith.select %2, %0, %6 : vector<384x128xi1>, vector<384x128xf32>
    %c0_2 = arith.constant 0 : index
    %c0_3 = arith.constant 0 : index
    %8 = vector.load %arg6[%c0_2, %c0_3] : memref<384x128xf32, #tpu.memory_space<vmem>>, vector<384x128xf32>
    %c0_4 = arith.constant 0 : index
    %c0_5 = arith.constant 0 : index
    %9 = vector.load %arg4[%c0_4, %c0_5] : memref<384x128xf32, #tpu.memory_space<vmem>>, vector<384x128xf32>
    %10 = arith.mulf %7, %8 : vector<384x128xf32>
    %11 = arith.addf %9, %10 : vector<384x128xf32>
    %c0_i32 = arith.constant 0 : i32
    %12 = arith.cmpi eq, %arg2, %c0_i32 : i32
    %13 = arith.extui %12 : i1 to i32
    %c0_i32_6 = arith.constant 0 : i32
    %14 = arith.cmpi ne, %13, %c0_i32_6 : i32
    scf.if %14 {
      %cst_24 = arith.constant 0.000000e+00 : f32
      %38 = vector.broadcast %cst_24 : f32 to vector<8x128xf32>
      %c0_25 = arith.constant 0 : index
      %c0_26 = arith.constant 0 : index
      %39 = vector.load %arg12[%c0_25, %c0_26] : memref<8x128xf32, #tpu.memory_space<vmem>>, vector<8x128xf32>
      tpu.vector_store %arg12[%c0_25, %c0_26], %38 {strides = array<i32>} : memref<8x128xf32, #tpu.memory_space<vmem>>, vector<8x128xf32>,
    } else {
    }
    %c0_7 = arith.constant 0 : index
    %c0_8 = arith.constant 0 : index
    %15 = vector.load %arg12[%c0_7, %c0_8] : memref<8x128xf32, #tpu.memory_space<vmem>>, vector<8x128xf32>
    %c0_9 = arith.constant 0 : index
    %c0_10 = arith.constant 0 : index
    %16 = vector.load %arg3[%c0_9, %c0_10] : memref<8x384xf32, #tpu.memory_space<vmem>>, vector<8x384xf32>
    %cst_11 = arith.constant dense<0.000000e+00> : vector<8x128xf32>
    %17 = tpu.matmul %16, %11, %cst_11 {dimension_numbers = #tpu.dot_dimension_numbers<[1], [0], [0], [1], [0, 0, 1, 1], [], []>} : vector<8x384xf32>, vector<384x128xf32>, vector<8x128xf32> -> vector<8x128xf32>
    %18 = arith.addf %15, %17 : vector<8x128xf32>
    %c0_12 = arith.constant 0 : index
    %c0_13 = arith.constant 0 : index
    %19 = vector.load %arg12[%c0_12, %c0_13] : memref<8x128xf32, #tpu.memory_space<vmem>>, vector<8x128xf32>
    tpu.vector_store %arg12[%c0_12, %c0_13], %18 {strides = array<i32>} : memref<8x128xf32, #tpu.memory_space<vmem>>, vector<8x128xf32>,
    %c0_i32_14 = arith.constant 0 : i32
    %20 = arith.cmpi eq, %arg0, %c0_i32_14 : i32
    %c0_i32_15 = arith.constant 0 : i32
    %21 = arith.cmpi eq, %arg1, %c0_i32_15 : i32
    %22 = arith.andi %20, %21 : i1
    %c0_i32_16 = arith.constant 0 : i32
    %23 = arith.cmpi eq, %arg2, %c0_i32_16 : i32
    %24 = arith.andi %22, %23 : i1
    %25 = arith.extui %24 : i1 to i32
    %c0_i32_17 = arith.constant 0 : i32
    %26 = arith.cmpi ne, %25, %c0_i32_17 : i32
    scf.if %26 {
      %cst_24 = arith.constant 0.000000e+00 : f32
      %c0_25 = arith.constant 0 : index
      %38 = memref.load %arg11[%c0_25] : memref<2xf32, #tpu.memory_space<smem>>
      memref.store %cst_24, %arg11[%c0_25] : memref<2xf32, #tpu.memory_space<smem>>
      %cst_26 = arith.constant 0.000000e+00 : f32
      %c1 = arith.constant 1 : index
      %39 = memref.load %arg11[%c1] : memref<2xf32, #tpu.memory_space<smem>>
      memref.store %cst_26, %arg11[%c1] : memref<2xf32, #tpu.memory_space<smem>>
    } else {
    }
    %c0_i32_18 = arith.constant 0 : i32
    %27 = arith.cmpi eq, %arg0, %c0_i32_18 : i32
    %28 = arith.extui %27 : i1 to i32
    %c0_i32_19 = arith.constant 0 : i32
    %29 = arith.cmpi ne, %28, %c0_i32_19 : i32
    scf.if %29 {
      %cst_24 = arith.constant -5.000000e-01 : f32
      %38 = vector.broadcast %cst_24 : f32 to vector<384x128xf32>
      %39 = arith.mulf %38, %11 : vector<384x128xf32>
      %40 = arith.mulf %39, %11 : vector<384x128xf32>
      %41 = vector.shape_cast %40 : vector<384x128xf32> to vector<1x384x128xf32>
      %cst_25 = arith.constant dense<0.000000e+00> : vector<1xf32>
      %42 = vector.multi_reduction <add>, %41, %cst_25 [1, 2] : vector<1x384x128xf32> to vector<1xf32>
      %43 = vector.shape_cast %42 : vector<1xf32> to vector<1x1x1xf32>
      %44 = vector.extract %43[0, 0, 0] : f32 from vector<1x1x1xf32>
      %cst_26 = arith.constant 45167.668 : f32
      %45 = arith.subf %44, %cst_26 : f32
      %46 = math.log %7 : vector<384x128xf32>
      %cst_27 = arith.constant 0.000000e+00 : f32
      %47 = vector.broadcast %cst_27 : f32 to vector<384x128xf32>
      %48 = arith.subf %47, %46 : vector<384x128xf32>
      %cst_28 = arith.constant 5.000000e-01 : f32
      %49 = vector.broadcast %cst_28 : f32 to vector<384x128xf32>
      %50 = arith.mulf %49, %8 : vector<384x128xf32>
      %51 = arith.mulf %50, %8 : vector<384x128xf32>
      %52 = arith.subf %48, %51 : vector<384x128xf32>
      %53 = vector.shape_cast %52 : vector<384x128xf32> to vector<1x384x128xf32>
      %cst_29 = arith.constant dense<0.000000e+00> : vector<1xf32>
      %54 = vector.multi_reduction <add>, %53, %cst_29 [1, 2] : vector<1x384x128xf32> to vector<1xf32>
      %55 = vector.shape_cast %54 : vector<1xf32> to vector<1x1x1xf32>
      %56 = vector.extract %55[0, 0, 0] : f32 from vector<1x1x1xf32>
      %cst_30 = arith.constant 45167.668 : f32
      %57 = arith.subf %56, %cst_30 : f32
      %c0_31 = arith.constant 0 : index
      %58 = memref.load %arg11[%c0_31] : memref<2xf32, #tpu.memory_space<smem>>
      %59 = arith.addf %58, %45 : f32
      %c0_32 = arith.constant 0 : index
      %60 = memref.load %arg11[%c0_32] : memref<2xf32, #tpu.memory_space<smem>>
      memref.store %59, %arg11[%c0_32] : memref<2xf32, #tpu.memory_space<smem>>
      %c1 = arith.constant 1 : index
      %61 = memref.load %arg11[%c1] : memref<2xf32, #tpu.memory_space<smem>>
      %62 = arith.addf %61, %57 : f32
      %c1_33 = arith.constant 1 : index
      %63 = memref.load %arg11[%c1_33] : memref<2xf32, #tpu.memory_space<smem>>
      memref.store %62, %arg11[%c1_33] : memref<2xf32, #tpu.memory_space<smem>>
    } else {
    }
    %c0_i32_20 = arith.constant 0 : i32
    %30 = arith.cmpi eq, %arg0, %c0_i32_20 : i32
    %c0_i32_21 = arith.constant 0 : i32
    %31 = arith.cmpi eq, %arg2, %c0_i32_21 : i32
    %32 = arith.andi %30, %31 : i1
    %33 = arith.extui %32 : i1 to i32
    %c0_i32_22 = arith.constant 0 : i32
    %34 = arith.cmpi ne, %33, %c0_i32_22 : i32
    scf.if %34 {
      %c0_24 = arith.constant 0 : index
      %c0_25 = arith.constant 0 : index
      %38 = vector.load %arg8[%c0_24, %c0_25] : memref<1x128xf32, #tpu.memory_space<vmem>>, vector<1x128xf32>
      %cst_26 = arith.constant 2.000000e+01 : f32
      %39 = vector.broadcast %cst_26 : f32 to vector<1x128xf32>
      %40 = arith.cmpf ogt, %38, %39 : vector<1x128xf32>
      %cst_27 = arith.constant 2.000000e+01 : f32
      %41 = vector.broadcast %cst_27 : f32 to vector<1x128xf32>
      %42 = arith.minimumf %38, %41 : vector<1x128xf32>
      %43 = math.exp %42 : vector<1x128xf32>
      %44 = math.log1p %43 : vector<1x128xf32>
      %45 = arith.select %40, %38, %44 : vector<1x128xi1>, vector<1x128xf32>
      %c0_28 = arith.constant 0 : index
      %c0_29 = arith.constant 0 : index
      %46 = vector.load %arg9[%c0_28, %c0_29] : memref<1x128xf32, #tpu.memory_space<vmem>>, vector<1x128xf32>
      %c0_30 = arith.constant 0 : index
      %c0_31 = arith.constant 0 : index
      %47 = vector.load %arg7[%c0_30, %c0_31] : memref<1x128xf32, #tpu.memory_space<vmem>>, vector<1x128xf32>
      %48 = arith.mulf %45, %46 : vector<1x128xf32>
      %49 = arith.addf %47, %48 : vector<1x128xf32>
      %cst_32 = arith.constant -5.000000e-01 : f32
      %50 = vector.broadcast %cst_32 : f32 to vector<1x128xf32>
      %51 = arith.mulf %50, %49 : vector<1x128xf32>
      %52 = arith.mulf %51, %49 : vector<1x128xf32>
      %53 = vector.shape_cast %52 : vector<1x128xf32> to vector<1x1x128xf32>
      %cst_33 = arith.constant dense<0.000000e+00> : vector<1xf32>
      %54 = vector.multi_reduction <add>, %53, %cst_33 [1, 2] : vector<1x1x128xf32> to vector<1xf32>
      %55 = vector.shape_cast %54 : vector<1xf32> to vector<1x1x1xf32>
      %56 = vector.extract %55[0, 0, 0] : f32 from vector<1x1x1xf32>
      %cst_34 = arith.constant 117.62413 : f32
      %57 = arith.subf %56, %cst_34 : f32
      %58 = math.log %45 : vector<1x128xf32>
      %cst_35 = arith.constant 0.000000e+00 : f32
      %59 = vector.broadcast %cst_35 : f32 to vector<1x128xf32>
      %60 = arith.subf %59, %58 : vector<1x128xf32>
      %cst_36 = arith.constant 5.000000e-01 : f32
      %61 = vector.broadcast %cst_36 : f32 to vector<1x128xf32>
      %62 = arith.mulf %61, %46 : vector<1x128xf32>
      %63 = arith.mulf %62, %46 : vector<1x128xf32>
      %64 = arith.subf %60, %63 : vector<1x128xf32>
      %65 = vector.shape_cast %64 : vector<1x128xf32> to vector<1x1x128xf32>
      %cst_37 = arith.constant dense<0.000000e+00> : vector<1xf32>
      %66 = vector.multi_reduction <add>, %65, %cst_37 [1, 2] : vector<1x1x128xf32> to vector<1xf32>
      %67 = vector.shape_cast %66 : vector<1xf32> to vector<1x1x1xf32>
      %68 = vector.extract %67[0, 0, 0] : f32 from vector<1x1x1xf32>
      %cst_38 = arith.constant 117.62413 : f32
      %69 = arith.subf %68, %cst_38 : f32
      %c0_39 = arith.constant 0 : index
      %70 = memref.load %arg11[%c0_39] : memref<2xf32, #tpu.memory_space<smem>>
      %71 = arith.addf %70, %57 : f32
      %c0_40 = arith.constant 0 : index
      %72 = memref.load %arg11[%c0_40] : memref<2xf32, #tpu.memory_space<smem>>
      memref.store %71, %arg11[%c0_40] : memref<2xf32, #tpu.memory_space<smem>>
      %c1 = arith.constant 1 : index
      %73 = memref.load %arg11[%c1] : memref<2xf32, #tpu.memory_space<smem>>
      %74 = arith.addf %73, %69 : f32
      %c1_41 = arith.constant 1 : index
      %75 = memref.load %arg11[%c1_41] : memref<2xf32, #tpu.memory_space<smem>>
      memref.store %74, %arg11[%c1_41] : memref<2xf32, #tpu.memory_space<smem>>
    } else {
    }
    %c1_i32 = arith.constant 1 : i32
    %35 = arith.cmpi eq, %arg2, %c1_i32 : i32
    %36 = arith.extui %35 : i1 to i32
    %c0_i32_23 = arith.constant 0 : i32
    %37 = arith.cmpi ne, %36, %c0_i32_23 : i32
    scf.if %37 {
      %c0_24 = arith.constant 0 : index
      %c0_25 = arith.constant 0 : index
      %38 = vector.load %arg8[%c0_24, %c0_25] : memref<1x128xf32, #tpu.memory_space<vmem>>, vector<1x128xf32>
      %cst_26 = arith.constant 2.000000e+01 : f32
      %39 = vector.broadcast %cst_26 : f32 to vector<1x128xf32>
      %40 = arith.cmpf ogt, %38, %39 : vector<1x128xf32>
      %cst_27 = arith.constant 2.000000e+01 : f32
      %41 = vector.broadcast %cst_27 : f32 to vector<1x128xf32>
      %42 = arith.minimumf %38, %41 : vector<1x128xf32>
      %43 = math.exp %42 : vector<1x128xf32>
      %44 = math.log1p %43 : vector<1x128xf32>
      %45 = arith.select %40, %38, %44 : vector<1x128xi1>, vector<1x128xf32>
      %c0_28 = arith.constant 0 : index
      %c0_29 = arith.constant 0 : index
      %46 = vector.load %arg7[%c0_28, %c0_29] : memref<1x128xf32, #tpu.memory_space<vmem>>, vector<1x128xf32>
      %c0_30 = arith.constant 0 : index
      %c0_31 = arith.constant 0 : index
      %47 = vector.load %arg9[%c0_30, %c0_31] : memref<1x128xf32, #tpu.memory_space<vmem>>, vector<1x128xf32>
      %48 = arith.mulf %45, %47 : vector<1x128xf32>
      %49 = arith.addf %46, %48 : vector<1x128xf32>
      %c0_32 = arith.constant 0 : index
      %c0_33 = arith.constant 0 : index
      %50 = vector.load %arg12[%c0_32, %c0_33] : memref<8x128xf32, #tpu.memory_space<vmem>>, vector<8x128xf32>
      %51 = vector.broadcast %49 : vector<1x128xf32> to vector<8x128xf32>
      %52 = arith.addf %50, %51 : vector<8x128xf32>
      %c0_34 = arith.constant 0 : index
      %c0_35 = arith.constant 0 : index
      %53 = vector.load %arg10[%c0_34, %c0_35] : memref<8x128xf32, #tpu.memory_space<vmem>>, vector<8x128xf32>
      tpu.vector_store %arg10[%c0_34, %c0_35], %52 {strides = array<i32>} : memref<8x128xf32, #tpu.memory_space<vmem>>, vector<8x128xf32>,
    } else {
    }
    return
  }
  func.func @transform_0(%arg0: i32, %arg1: i32, %arg2: i32) -> (i32, i32) {
    %c0_i32 = arith.constant 0 : i32
    return %arg0, %arg2 : i32, i32
  }
  func.func @transform_1(%arg0: i32, %arg1: i32, %arg2: i32) -> (i32, i32) {
    %c0_i32 = arith.constant 0 : i32
    return %arg2, %arg1 : i32, i32
  }
  func.func @transform_2(%arg0: i32, %arg1: i32, %arg2: i32) -> (i32, i32) {
    %c0_i32 = arith.constant 0 : i32
    return %arg2, %arg1 : i32, i32
  }
  func.func @transform_3(%arg0: i32, %arg1: i32, %arg2: i32) -> (i32, i32) {
    %c0_i32 = arith.constant 0 : i32
    return %arg2, %arg1 : i32, i32
  }
  func.func @transform_4(%arg0: i32, %arg1: i32, %arg2: i32) -> (i32, i32) {
    %c0_i32 = arith.constant 0 : i32
    %c0_i32_0 = arith.constant 0 : i32
    return %c0_i32, %arg1 : i32, i32
  }
  func.func @transform_5(%arg0: i32, %arg1: i32, %arg2: i32) -> (i32, i32) {
    %c0_i32 = arith.constant 0 : i32
    %c0_i32_0 = arith.constant 0 : i32
    return %c0_i32, %arg1 : i32, i32
  }
  func.func @transform_6(%arg0: i32, %arg1: i32, %arg2: i32) -> (i32, i32) {
    %c0_i32 = arith.constant 0 : i32
    %c0_i32_0 = arith.constant 0 : i32
    return %c0_i32, %arg1 : i32, i32
  }
  func.func @transform_7(%arg0: i32, %arg1: i32, %arg2: i32) -> (i32, i32) {
    %c0_i32 = arith.constant 0 : i32
    return %arg0, %arg1 : i32, i32
  }
  func.func @transform_8(%arg0: i32, %arg1: i32, %arg2: i32) -> i32 {
    %c0_i32 = arith.constant 0 : i32
    %c0_i32_0 = arith.constant 0 : i32
    return %c0_i32 : i32
  }
}

</mosaic_0001>

<bundles_post_ra>
// kernel: tpu_custom_call.1
= control target key start
LH: loop header
LB: loop body
LE: loop exit
PB: predicated region body
PF: predicated region fallthrough
CT: control target
= control target key end

     0   :  { %s6991_s0 = inlined_call_operand.hbm [shape: f32[8,768], index: 0, kind: input, shape index: {}]   ;;  %s6992_s1 = inlined_call_operand.hbm [shape: f32[768,384], index: 1, kind: input, shape index: {}]   ;;  %s6993_s2 = inlined_call_operand.hbm [shape: f32[768,384], index: 2, kind: input, shape index: {}]   ;;  %s6994_s3 = inlined_call_operand.hbm [shape: f32[768,384], index: 3, kind: input, shape index: {}]   ;;  %s6995_s4 = inlined_call_operand.hbm [shape: f32[1,384], index: 4, kind: input, shape index: {}]   ;;  %s6996_s5 = inlined_call_operand.hbm [shape: f32[1,384], index: 5, kind: input, shape index: {}]   ;;  %s6997_s6 = inlined_call_operand.hbm [shape: f32[1,384], index: 6, kind: input, shape index: {}]   ;;  %s6998_s7 = inlined_call_operand.hbm [shape: f32[8,384], index: 7, kind: output, shape index: {0}]   ;;  %s6999_s8 = inlined_call_operand.hbm [shape: f32[2], index: 8, kind: output, shape index: {1}]  }
   0x1   :  { %7381 = sst [smem:[#allocation167_spill]] %s6991_s0 }
   0x2   :  { %7382 = sst [smem:[#allocation168_spill]] %s6992_s1 }
   0x3   :  { %7383 = sst [smem:[#allocation169_spill]] %s6993_s2 }
   0x4   :  { %7384 = sst [smem:[#allocation170_spill]] %s6994_s3 }
   0x5   :  { %7385 = sst [smem:[#allocation171_spill]] %s6995_s4 }
   0x6   :  { %7386 = sst [smem:[#allocation172_spill]] %s6996_s5 }
   0x7   :  { %7387 = sst [smem:[#allocation173_spill]] %s6997_s6 }
   0x8   :  { %7388 = sst [smem:[#allocation174_spill]] %s6998_s7 }
   0x9   :  { %7389 = sst [smem:[#allocation175_spill]] %s6999_s8 }
   0xa   :  { %14 = vsyncpa [#allocation4], 0 }
   0xb   :  { %16 = vsyncpa [#allocation4 + $0x1], 0 }
   0xc   :  { %17 = vsyncpa [#allocation8], 0 }
   0xd   :  { %19 = vsyncpa [#allocation8 + $0x1], 0 }
   0xe   :  { %20 = vsyncpa [#allocation11], 0 }
   0xf   :  { %22 = vsyncpa [#allocation11 + $0x1], 0 }
  0x10   :  { %23 = vsyncpa [#allocation14], 0 }
  0x11   :  { %25 = vsyncpa [#allocation14 + $0x1], 0 }
  0x12   :  { %26 = vsyncpa [#allocation5], 0 }
  0x13   :  { %28 = vsyncpa [#allocation5 + $0x1], 0 }
  0x14   :  { %29 = vsyncpa [#allocation6], 0  ;;  %s3674_s27 = smov 0   ;;  %s3676_s28 = smov 0  }
  0x15   :  { %s3678_s29 = smov 0   ;;  %s3680_s30 = smov 0  }
  0x16   :  { %s3682_s9 = smov 0   ;;  %s3684_s10 = smov 0  }
  0x17   :  { %s3686_s11 = smov 0   ;;  %s3688_s12 = smov 0  }
  0x18   :  { %s3690_s13 = smov 0   ;;  %s3692_s14 = smov 0  }
  0x19   :  { %s3694_s15 = smov 0   ;;  %s3696_s16 = smov 0  }
  0x1a   :  { %s3698_s17 = smov 0   ;;  %s3700_s18 = smov 0  }
  0x1b LB: > { %7390 = sst [smem:[#allocation25_spill]] %s3558_s27  ;;  %p7007_p0 = scmp.eq.s32.totalorder %s3610_s18, 0  ;;  %s3610_s18 = sphi %s3700_s18, %s35_s18   ;;  %s3606_s17 = sphi %s3698_s17, %s8293_s17   ;;  %s3602_s16 = sphi %s3696_s16, %s8292_s16   ;;  %s3598_s15 = sphi %s3694_s15, %s8281_s15   ;;  %s3594_s14 = sphi %s3692_s14, %s8291_s14   ;;  %s3590_s13 = sphi %s3690_s13, %s8290_s13   ;;  %s3586_s12 = sphi %s3688_s12, %s8289_s12   ;;  %s3582_s11 = sphi %s3686_s11, %s8280_s11   ;;  %s3578_s10 = sphi %s3684_s10, %s8288_s10   ;;  %s3574_s9 = sphi %s3682_s9, %s8287_s9   ;;  %s3570_s30 = sphi %s3680_s30, %s8278_s30   ;;  %s3566_s29 = sphi %s3678_s29, %s8286_s29   ;;  %s3562_s28 = sphi %s3676_s28, %s8285_s28   ;;  %s3558_s27 = sphi %s3674_s27, %s8275_s27  }
  0x1c   : > { %7391 = sst [smem:[#allocation26_spill]] %s3562_s28  ;;  %p98_p1 = scmp.ne.s32.totalorder %s3578_s10, %s3574_s9 }
  0x1d   : > { %7392 = sst [smem:[#allocation27_spill]] %s3566_s29  ;;  %p7006_p2 = scmp.lt.s32.totalorder %s3610_s18, 6 }
  0x1e   : > { %7393 = sst [smem:[#allocation28_spill]] %s3574_s9  ;;  %s3750_s20 = sand.u32 1, %s3610_s18  }
  0x1f   : > { %7394 = sst [smem:[#allocation29_spill]] %s3586_s12  ;;  %p100_p3 = por %p98_p1, %p7007_p0 }
  0x20   : > { %7395 = sst [smem:[#allocation30_spill]] %s3594_s14  ;;  %s334_s21 = sand.u32 1, %s3578_s10  }
  0x21   : > { %7396 = sst [smem:[#allocation31_spill]] %s3598_s15  ;;  %s3755_s22 = smul.u32 384, %s334_s21 }
  0x22   : > { %7397 = sst [smem:[#allocation32_spill]] %s3606_s17  ;;  %p3759_p4 = pnand %p7006_p2, %p100_p3 }
  0x23   : > { %s2749_s24 = smul.u32 144, %s3602_s16  ;;  %s336_s26 = scalar_lea.vmem [#allocation7], %s3755_s22 }
  0x24   : > { %s7398_s23 = scalar_select %p3759_p4, 1, 0 }
  0x25   : > { %s342_s25 = sadd.s32 %s3606_s17, %s2749_s24  ;;  %s345_s19 = sshll.u32 %s336_s26, 4  ;;  %s3768_s19 = int_to_ptr.vmem [resolvable:$true] %s345_s19 }
  0x26   : > { %s3766_s8 = sshll.u32 %s342_s25, 7  ;;  %s7399_s1 = sld [smem:[#allocation168_spill]] }
  0x27   : > { %p3782_p7 = pneg %p3759_p4 }
  0x29   : > { %s7400_s24 = scalar_select %p3782_p7, 1, 0 }
  0x2c   : > { %s3774_s21 = scalar_lea.hbm %s7399_s1, %s3766_s8  ;;  %s3227_s25 = scalar_lea.hbm %s7399_s1, 36864 }
  0x2d   : > { %s3222_s6 = scalar_lea.hbm %s3774_s21, 6144  ;;  %p3228_p10 = scmp.lt.u32.totalorder %s3774_s21, %s7399_s1 }
  0x2e   : > { %p3223_p6 = scmp.ne.s32.totalorder %s3774_s21, %s3222_s6  ;;  %p3229_p11 = scmp.lt.u32.totalorder %s3227_s25, %s3222_s6 }
  0x2f   : > { %p3231_p13 = scmp.lt.u32.totalorder %s3222_s6, %s3774_s21 }
  0x30   : > { %p3225_p8 = pnand %p3782_p7, %p3223_p6  ;;  %p3230_p12 = por %p3229_p11, %p3228_p10 }
  0x32   : > { %p3226_p9 = pneg %p3225_p8  ;;  %p3232_p1 = por %p3231_p13, %p3230_p12 }
  0x34   : > { %p3233_p3 = pnand %p3232_p1, %p3226_p9 }
  0x36   : > { %3236 = shalt.err (!%p3233_p3)
}
  0x37   : > { %s3237_s14 = scalar_lea.vmem %s3768_s19, 6144  ;;  %s3612_s7 = smov [#allocation7]  }
  0x38   : > { %p3238_p6 = scmp.ne.s32.totalorder %s3768_s19, %s3237_s14  ;;  %s3242_s15 = sshll.u32 %s3612_s7, 4  ;;  %s3243_s15 = int_to_ptr.vmem [resolvable:$false] %s3242_s15 }
  0x39   : > { %s3244_s4 = scalar_lea.vmem %s3243_s15, 12288  ;;  %p3245_p0 = scmp.lt.s32.totalorder %s3768_s19, %s3243_s15 }
  0x3a   : > { %p3240_p8 = pnand %p3238_p6, %p3782_p7  ;;  %p3246_p5 = scmp.lt.s32.totalorder %s3244_s4, %s3237_s14 }
  0x3c   : > { %p3241_p2 = pneg %p3240_p8  ;;  %p3247_p10 = por %p3246_p5, %p3245_p0 }
  0x3e   : > { %p3248_p11 = pnand %p3247_p10, %p3241_p2 }
  0x40   : > { %3251 = shalt.err (!%p3248_p11)
}
  0x41   : > { %s7010_s6 = smov 384   ;;  %s7012_s25 = smov 128  }
  0x42   : > { %s7015_s26 = smov 8   ;;  %s7401_s14 = scalar_lea.sflag [#allocation8], %s3750_s20 }
  0x43   : > { %2728 = dma.hbm_to_vmem [thread:$0]  (!%p3759_p4), %s3774_s21, 6144, %s3768_s19, %s7401_s14, %s7010_s6, %s7012_s25, %s7015_s26  }
  0x44   : > { %p450_p0 = scmp.lt.s32.totalorder %s3610_s18, 7  ;;  %s7402_s3 = sld [smem:[#allocation170_spill]] }
  0x45   : > { %p7403_p2 = scmp.ge.s32.totalorder %s3610_s18, 1  ;;  %s382_s2 = scalar_lea.vmem [#allocation10], %s3755_s22 }
  0x46   : > { %s391_s0 = sshll.u32 %s382_s2, 4  ;;  %s7014_s19 = scalar_lea.sflag [#allocation11], %s3750_s20  ;;  %s3824_s0 = int_to_ptr.vmem [resolvable:$true] %s391_s0 }
  0x47   : > { %p3819_p5 = pnand %p7403_p2, %p450_p0 }
  0x49   : > { %s7404_s1 = scalar_select %p3819_p5, 1, 0 }
  0x4a   : > { %s3815_s4 = scalar_lea.hbm %s7402_s3, %s3766_s8  ;;  %s3257_s15 = scalar_lea.hbm %s7402_s3, 36864 }
  0x4b   : > { %7405 = sst [smem:[#allocation33_spill]] %s7404_s1  ;;  %s3252_s21 = scalar_lea.hbm %s3815_s4, 6144 }
  0x4c   : > { %p3253_p9 = scmp.ne.s32.totalorder %s3815_s4, %s3252_s21  ;;  %p3258_p1 = scmp.lt.u32.totalorder %s3815_s4, %s7402_s3 }
  0x4d   : > { %p3259_p3 = scmp.lt.u32.totalorder %s3257_s15, %s3252_s21  ;;  %p3261_p8 = scmp.lt.u32.totalorder %s3252_s21, %s3815_s4 }
  0x4e   : > { %p3255_p12 = pnand %p3253_p9, %p3782_p7 }
  0x4f   : > { %p3260_p6 = por %p3259_p3, %p3258_p1 }
  0x50   : > { %p3256_p13 = pneg %p3255_p12 }
  0x51   : > { %p3262_p10 = por %p3261_p8, %p3260_p6 }
  0x53   : > { %p3263_p11 = pnand %p3262_p10, %p3256_p13 }
  0x55   : > { %3266 = shalt.err (!%p3263_p11)
}
  0x56   : > { %s3267_s2 = scalar_lea.vmem %s3824_s0, 6144  ;;  %s3616_s14 = smov [#allocation10]  }
  0x57   : > { %p3268_p0 = scmp.ne.s32.totalorder %s3824_s0, %s3267_s2  ;;  %s3272_s7 = sshll.u32 %s3616_s14, 4  ;;  %s3273_s7 = int_to_ptr.vmem [resolvable:$false] %s3272_s7 }
  0x58   : > { %s3274_s6 = scalar_lea.vmem %s3273_s7, 12288  ;;  %p3275_p12 = scmp.lt.s32.totalorder %s3824_s0, %s3273_s7 }
  0x59   : > { %p3270_p2 = pnand %p3268_p0, %p3782_p7  ;;  %p3276_p5 = scmp.lt.s32.totalorder %s3274_s6, %s3267_s2 }
  0x5b   : > { %p3271_p9 = pneg %p3270_p2  ;;  %p3277_p1 = por %p3276_p5, %p3275_p12 }
  0x5d   : > { %p3278_p3 = pnand %p3277_p1, %p3271_p9 }
  0x5f   : > { %3281 = shalt.err (!%p3278_p3)
}
  0x60   : > { %s7406_s25 = smov 128   ;;  %s7407_s21 = smov 384  }
  0x61   : > { %2734 = dma.hbm_to_vmem [thread:$0]  (!%p3759_p4), %s3815_s4, 6144, %s3824_s0, %s7014_s19, %s7407_s21, %s7406_s25, %s7015_s26  }
  0x62   : > { %s3854_s15 = sadd.s32 4294967295, %s3610_s18   ;;  %s2508_s2 = sadd.s32 4294967294, %s3610_s18  }
  0x63   : > { %7408 = sst [smem:[#allocation34_spill]] %s3854_s15  ;;  %s7016_s14 = sadd.s32 1, %s3602_s16 }
  0x64   : > { %p3860_p5 = scmp.ge.s32.totalorder %s7016_s14, 2  ;;  %s50_s6 = sadd.s32 1, %s3606_s17 }
  0x65   : > { %p7020_p13 = scmp.eq.s32.totalorder %s3854_s15, 0  ;;  %p104_p6 = scmp.ne.s32.totalorder %s3574_s9, %s3570_s30 }
  0x66   : > { %s7409_s7 = scalar_select %p3860_p5, 1, 0 }
  0x67   : > { %s8295_s6 = smov (!%p3860_p5, %s50_s6), %s3606_s17  ;;  %p3873_p8 = por %p104_p6, %p7020_p13 }
  0x68   : > { %s173_s4 = sadd.s32 1, %s3566_s29  ;;  %p52_p10 = scmp.ge.s32.totalorder %s8295_s6, 3 }
  0x69   : > { %s7410_s0 = scalar_select %p3873_p8, 1, 0 }
  0x6a   : > { %p180_p11 = scmp.ne.s32.totalorder %s3566_s29, %s3562_s28  ;;  %p186_p0 = scmp.ne.s32.totalorder %s3562_s28, %s3558_s27 }
  0x6b   : > { %7411 = sst [smem:[#allocation35_spill]] %s7410_s0  ;;  %p7032_p2 = scmp.eq.s32.totalorder %s3854_s15, 5 }
  0x6c   : > { %s8297_s6 = smov (%p52_p10, %s8295_s6), 0  ;;  %p7413_p9 = scmp.eq.s32.totalorder %s3610_s18, 0 }
  0x6d   : > { %7412 = sst [smem:[#allocation36_spill]] %s8297_s6  ;;  %p3889_p1 = por %p186_p0, %p7020_p13 }
  0x6e   : > { %p182_p12 = por %p180_p11, %p7413_p9  ;;  %s3895_s19 = ssub.s32 %s3606_s17, %s8297_s6 }
  0x6f   : > { %s7414_s30 = scalar_select %p3889_p1, 1, 0 }
  0x70   : > { %p3899_p3 = por %p7032_p2, %p180_p11  ;;  %p171_p6 = scmp.eq.s32.totalorder %s3895_s19, 0 }
  0x71   : > { %7415 = sst [smem:[#allocation37_spill]] %s7414_s30  ;;  %p270_p10 = scmp.eq.s32.totalorder %s2508_s2, 5 }
  0x72   : > { %s7416_s26 = scalar_select %p3899_p3, 1, 0 }
  0x73   : > { %s3905_s14 = sand.u32 1, %s3566_s29   ;;  %s3908_s3 = sshll.u32 %s3606_s17, 4 }
  0x74   : > { %7417 = sst [smem:[#allocation38_spill]] %s7416_s26  ;;  %p3913_p9 = por %p270_p10, %p186_p0 }
  0x75   : > { %s3911_s27 = scalar_select %p171_p6, %s3566_s29, %s173_s4  }
  0x76   : > { %s7419_s30 = scalar_select %p3913_p9, 1, 0 }
  0x77   : > { %7418 = sst [smem:[#allocation39_spill]] %s3911_s27  ;;  %p7421_p13 = scmp.lt.s32.totalorder %s3610_s18, 6 }
  0x78   : > { %7420 = sst [smem:[#allocation40_spill]] %s7419_s30  ;;  %s7424_s5 = sld [smem:[#allocation172_spill]] }
  0x79   : > { %p3919_p1 = pnand %p7421_p13, %p182_p12  ;;  %s421_s4 = scalar_lea.vmem [#allocation13], %s3905_s14 }
  0x7a   : > { %s428_s17 = sshll.u32 %s421_s4, 4  ;;  %s3930_s17 = int_to_ptr.vmem [resolvable:$true] %s428_s17 }
  0x7b   : > { %s7422_s6 = scalar_select %p3919_p1, 1, 0 }
  0x7c   : > { %p3937_p11 = pneg %p3919_p1 }
  0x7d   : > { %7423 = sst [smem:[#allocation41_spill]] %s7422_s6 }
  0x7e   : > { %s3927_s2 = scalar_lea.hbm %s7424_s5, %s3908_s3  ;;  %s3287_s0 = scalar_lea.hbm %s7424_s5, 48 }
  0x7f   : > { %s3282_s29 = scalar_lea.hbm %s3927_s2, 16  ;;  %p3288_p6 = scmp.lt.u32.totalorder %s3927_s2, %s7424_s5 }
  0x80   : > { %p3283_p13 = scmp.ne.s32.totalorder %s3927_s2, %s3282_s29  ;;  %p3289_p10 = scmp.lt.u32.totalorder %s3287_s0, %s3282_s29 }
  0x81   : > { %p3291_p9 = scmp.lt.u32.totalorder %s3282_s29, %s3927_s2 }
  0x82   : > { %p3285_p0 = pnand %p3937_p11, %p3283_p13  ;;  %p3290_p2 = por %p3289_p10, %p3288_p6 }
  0x84   : > { %p3286_p12 = pneg %p3285_p0  ;;  %p3292_p3 = por %p3291_p9, %p3290_p2 }
  0x86   : > { %p3293_p8 = pnand %p3292_p3, %p3286_p12 }
  0x88   : > { %3296 = shalt.err (!%p3293_p8)
}
  0x89   : > { %s3297_s27 = scalar_lea.vmem %s3930_s17, 16  ;;  %s3617_s28 = smov [#allocation13]  }
  0x8a   : > { %p3298_p13 = scmp.ne.s32.totalorder %s3930_s17, %s3297_s27  ;;  %s3302_s26 = sshll.u32 %s3617_s28, 4  ;;  %s3303_s26 = int_to_ptr.vmem [resolvable:$false] %s3302_s26 }
  0x8b   : > { %s3304_s9 = scalar_lea.vmem %s3303_s26, 32  ;;  %p3305_p7 = scmp.lt.s32.totalorder %s3930_s17, %s3303_s26 }
  0x8c   : > { %p3300_p0 = pnand %p3298_p13, %p3937_p11  ;;  %p3306_p5 = scmp.lt.s32.totalorder %s3304_s9, %s3297_s27 }
  0x8e   : > { %p3301_p4 = pneg %p3300_p0  ;;  %p3307_p6 = por %p3306_p5, %p3305_p7 }
  0x90   : > { %p3308_p10 = pnand %p3307_p6, %p3301_p4 }
  0x92   : > { %3311 = shalt.err (!%p3308_p10)
}
  0x93   : > { %s7426_s29 = scalar_lea.sflag [#allocation14], %s3750_s20  ;;  %s7427_s27 = sadd.s32 1, %s3602_s16 }
  0x94   : > { %2740 = dma.hbm_to_vmem [thread:$0]  (!%p3919_p1), %s3927_s2, 16, %s3930_s17, %s7426_s29  }
  0x95   : > { %p7428_p4 = scmp.ne.s32.totalorder %s7409_s7, 0  ;;  %s63_s0 = sadd.s32 1, %s3590_s13 }
  0x96   : > { %p70_p7 = scmp.ne.s32.totalorder %s3590_s13, %s3586_s12  ;;  %p76_p5 = scmp.ne.s32.totalorder %s3586_s12, %s3582_s11 }
  0x97   : > { %s8299_s27 = smov (%p7428_p4, %s7427_s27), 0  ;;  %p7430_p2 = scmp.eq.s32.totalorder %s3610_s18, 0 }
  0x98   : > { %7429 = sst [smem:[#allocation42_spill]] %s8299_s27  ;;  %s59_s4 = ssub.s32 %s3602_s16, %s8299_s27 }
  0x99   : > { %p61_p8 = scmp.eq.s32.totalorder %s59_s4, 0  ;;  %p72_p3 = por %p7430_p2, %p70_p7 }
  0x9a   : > { %p7431_p9 = scmp.eq.s32.totalorder %s3854_s15, 0  ;;  %s88_s26 = sor.u32 %s3895_s19, %s59_s4 }
  0x9b   : > { %s3985_s17 = scalar_select %p61_p8, %s3590_s13, %s63_s0  }
  0x9c   : > { %p3979_p12 = por %p7431_p9, %p76_p5  ;;  %p89_p13 = scmp.eq.s32.totalorder %s88_s26, 0 }
  0x9d   : > { %s311_s7 = sand.u32 1, %s3590_s13   ;;  %s7434_s9 = sadd.s32 1, %s3578_s10 }
  0x9e   : > { %s7432_s28 = scalar_select %p3979_p12, 1, 0 }
  0x9f   : > { %s2682_s2 = smul.u32 24, %s311_s7  ;;  %p7435_p0 = scmp.lt.s32.totalorder %s3610_s18, 6 }
  0xa0   : > { %7433 = sst [smem:[#allocation43_spill]] %s7432_s28  ;;  %s2536_s5 = smul.u32 384, %s3602_s16 }
  0xa1   : > { %s3991_s29 = scalar_select %p89_p13, %s3578_s10, %s7434_s9  }
  0xa2   : > { %s315_s27 = scalar_lea.vmem [#allocation3], %s2682_s2  ;;  %p3996_p6 = pnand %p7435_p0, %p72_p3 }
  0xa3   : > { %s325_s11 = sshll.u32 %s315_s27, 4  ;;  %s7437_s28 = sld [smem:[#allocation167_spill]]  ;;  %s4005_s11 = int_to_ptr.vmem [resolvable:$true] %s325_s11 }
  0xa4   : > { %s312_s0 = scalar_lea.sflag [#allocation4], %s311_s7  ;;  %p3314_p4 = pneg %p3996_p6 }
  0xa9   : > { %s7438_s6 = smov %s7437_s28  ;;  %s4003_s19 = scalar_lea.hbm %s7437_s28, %s2536_s5 }
  0xaa   : > { %s3312_s27 = scalar_lea.hbm %s4003_s19, 384  ;;  %s3317_s5 = scalar_lea.hbm %s7438_s6, 768 }
  0xab   : > { %p3313_p10 = scmp.ne.s32.totalorder %s4003_s19, %s3312_s27  ;;  %p3318_p8 = scmp.lt.u32.totalorder %s4003_s19, %s7438_s6 }
  0xac   : > { %p3319_p2 = scmp.lt.u32.totalorder %s3317_s5, %s3312_s27  ;;  %p3321_p9 = scmp.lt.u32.totalorder %s3312_s27, %s4003_s19 }
  0xad   : > { %p3315_p7 = pnand %p3314_p4, %p3313_p10 }
  0xae   : > { %p3320_p3 = por %p3319_p2, %p3318_p8 }
  0xaf   : > { %p3316_p5 = pneg %p3315_p7 }
  0xb0   : > { %p3322_p13 = por %p3321_p9, %p3320_p3 }
  0xb2   : > { %p3323_p0 = pnand %p3322_p13, %p3316_p5 }
  0xb4   : > { %3326 = shalt.err (!%p3323_p0)
}
  0xb5   : > { %s3327_s26 = scalar_lea.vmem %s4005_s11, 384  ;;  %s3618_s7 = smov [#allocation3]  }
  0xb6   : > { %p3328_p10 = scmp.ne.s32.totalorder %s4005_s11, %s3327_s26  ;;  %s3332_s2 = sshll.u32 %s3618_s7, 4  ;;  %s3333_s2 = int_to_ptr.vmem [resolvable:$false] %s3332_s2 }
  0xb7   : > { %s3334_s9 = scalar_lea.vmem %s3333_s2, 768  ;;  %p3335_p1 = scmp.lt.s32.totalorder %s4005_s11, %s3333_s2 }
  0xb8   : > { %p3330_p7 = pnand %p3328_p10, %p3314_p4  ;;  %p3336_p8 = scmp.lt.s32.totalorder %s3334_s9, %s3327_s26 }
  0xba   : > { %p3331_p12 = pneg %p3330_p7  ;;  %p3337_p2 = por %p3336_p8, %p3335_p1 }
  0xbc   : > { %p3338_p3 = pnand %p3337_p2, %p3331_p12 }
  0xbe   : > { %3341 = shalt.err (!%p3338_p3)
}
  0xbf   : > { %2725 = dma.hbm_to_vmem [thread:$0]  (!%p3996_p6), %s4003_s19, 384, %s4005_s11, %s312_s0  }
  0xc0   : > { %s7439_s15 = sld [smem:[#allocation169_spill]]  ;;  %s359_s28 = scalar_lea.vmem [#allocation9], %s3755_s22 }
  0xc1   : > { %s368_s26 = sshll.u32 %s359_s28, 4  ;;  %p7441_p12 = scmp.ne.s32.totalorder %s7400_s24, 0  ;;  %s4039_s26 = int_to_ptr.vmem [resolvable:$true] %s368_s26 }
  0xc6   : > { %s7440_s5 = smov %s7439_s15  ;;  %s4036_s4 = scalar_lea.hbm %s7439_s15, %s3766_s8 }
  0xc7   : > { %s3342_s12 = scalar_lea.hbm %s4036_s4, 6144  ;;  %s3347_s19 = scalar_lea.hbm %s7440_s5, 36864 }
  0xc8   : > { %p3343_p1 = scmp.ne.s32.totalorder %s4036_s4, %s3342_s12  ;;  %p3348_p6 = scmp.lt.u32.totalorder %s4036_s4, %s7440_s5 }
  0xc9   : > { %p3349_p9 = scmp.lt.u32.totalorder %s3347_s19, %s3342_s12  ;;  %p3351_p0 = scmp.lt.u32.totalorder %s3342_s12, %s4036_s4 }
  0xca   : > { %p3345_p4 = pnand %p3343_p1, %p7441_p12 }
  0xcb   : > { %p3350_p13 = por %p3349_p9, %p3348_p6 }
  0xcc   : > { %p3346_p5 = pneg %p3345_p4 }
  0xcd   : > { %p3352_p10 = por %p3351_p0, %p3350_p13 }
  0xcf   : > { %p3353_p7 = pnand %p3352_p10, %p3346_p5 }
  0xd1   : > { %3356 = shalt.err (!%p3353_p7)
}
  0xd2   : > { %s3357_s22 = scalar_lea.vmem %s4039_s26, 6144  ;;  %s3619_s2 = smov [#allocation9]  }
  0xd3   : > { %p3358_p8 = scmp.ne.s32.totalorder %s4039_s26, %s3357_s22  ;;  %s3362_s9 = sshll.u32 %s3619_s2, 4  ;;  %s3363_s9 = int_to_ptr.vmem [resolvable:$false] %s3362_s9 }
  0xd4   : > { %s3364_s27 = scalar_lea.vmem %s3363_s9, 12288  ;;  %p3365_p1 = scmp.lt.s32.totalorder %s4039_s26, %s3363_s9 }
  0xd5   : > { %p3360_p2 = pnand %p3358_p8, %p7441_p12  ;;  %p3366_p4 = scmp.lt.s32.totalorder %s3364_s27, %s3357_s22 }
  0xd7   : > { %p3361_p3 = pneg %p3360_p2  ;;  %p3367_p6 = por %p3366_p4, %p3365_p1 }
  0xd9   : > { %p3368_p9 = pnand %p3367_p6, %p3361_p3 }
  0xdb   : > { %3371 = shalt.err (!%p3368_p9)
}
  0xdc   : > { %p7442_p5 = scmp.ne.s32.totalorder %s7398_s23, 0  ;;  %s7443_s1 = smov 8  }
  0xdd   : > { %s7444_s15 = scalar_lea.sflag [#allocation8], %s3750_s20  ;;  %s7445_s12 = sld [smem:[#allocation171_spill]] }
  0xde   : > { %2731 = dma.hbm_to_vmem [thread:$0]  (!%p7442_p5), %s4036_s4, 6144, %s4039_s26, %s7444_s15, %s7407_s21, %s7406_s25, %s7443_s1  }
  0xdf   : > { %s404_s23 = scalar_lea.vmem [#allocation12], %s3905_s14 }
  0xe0   : > { %s411_s19 = sshll.u32 %s404_s23, 4  ;;  %s412_s19 = int_to_ptr.vmem [resolvable:$true] %s411_s19 }
  0xe3   : > { %s7446_s7 = smov %s7445_s12  ;;  %s4071_s11 = scalar_lea.hbm %s7445_s12, %s3908_s3 }
  0xe4   : > { %s3372_s0 = scalar_lea.hbm %s4071_s11, 16  ;;  %s3377_s25 = scalar_lea.hbm %s7446_s7, 48 }
  0xe5   : > { %p3373_p12 = scmp.ne.s32.totalorder %s4071_s11, %s3372_s0  ;;  %p3378_p10 = scmp.lt.u32.totalorder %s4071_s11, %s7446_s7 }
  0xe6   : > { %p3379_p7 = scmp.lt.u32.totalorder %s3377_s25, %s3372_s0  ;;  %p3381_p2 = scmp.lt.u32.totalorder %s3372_s0, %s4071_s11 }
  0xe7   : > { %p3375_p13 = pnand %p3373_p12, %p3937_p11 }
  0xe8   : > { %p3380_p8 = por %p3379_p7, %p3378_p10 }
  0xe9   : > { %p3376_p0 = pneg %p3375_p13 }
  0xea   : > { %p3382_p3 = por %p3381_p2, %p3380_p8 }
  0xec   : > { %p3383_p1 = pnand %p3382_p3, %p3376_p0 }
  0xee   : > { %3386 = shalt.err (!%p3383_p1)
}
  0xef   : > { %s3387_s26 = scalar_lea.vmem %s412_s19, 16  ;;  %s3620_s2 = smov [#allocation12]  }
  0xf0   : > { %p3388_p4 = scmp.ne.s32.totalorder %s412_s19, %s3387_s26  ;;  %s3392_s9 = sshll.u32 %s3620_s2, 4  ;;  %s3393_s9 = int_to_ptr.vmem [resolvable:$false] %s3392_s9 }
  0xf1   : > { %s3394_s27 = scalar_lea.vmem %s3393_s9, 32  ;;  %p3395_p5 = scmp.lt.s32.totalorder %s412_s19, %s3393_s9 }
  0xf2   : > { %p3390_p6 = pnand %p3388_p4, %p3937_p11  ;;  %p3396_p12 = scmp.lt.s32.totalorder %s3394_s27, %s3387_s26 }
  0xf4   : > { %p3391_p9 = pneg %p3390_p6  ;;  %p3397_p13 = por %p3396_p12, %p3395_p5 }
  0xf6   : > { %p3398_p7 = pnand %p3397_p13, %p3391_p9 }
  0xf8   : > { %3401 = shalt.err (!%p3398_p7)
}
  0xf9   : > { %s7447_s1 = sld [smem:[#allocation41_spill]]  ;;  %s7449_s15 = scalar_lea.sflag [#allocation11], %s3750_s20 }
  0xfa   : > { %s7450_s12 = sld [smem:[#allocation173_spill]]  ;;  %s438_s8 = scalar_lea.vmem [#allocation15], %s3905_s14 }
  0xfb   : > { %s445_s22 = sshll.u32 %s438_s8, 4  ;;  %s446_s22 = int_to_ptr.vmem [resolvable:$true] %s445_s22 }
  0xff   : > { %p7448_p10 = scmp.ne.s32.totalorder %s7447_s1, 0 }
 0x100   : > { %s7451_s23 = smov %s7450_s12  ;;  %s4097_s0 = scalar_lea.hbm %s7450_s12, %s3908_s3 }
 0x101   : > { %2737 = dma.hbm_to_vmem [thread:$0]  (!%p7448_p10), %s4071_s11, 16, %s412_s19, %s7449_s15  }
 0x102   : > { %s3402_s25 = scalar_lea.hbm %s4097_s0, 16  ;;  %s3407_s11 = scalar_lea.hbm %s7451_s23, 48 }
 0x103   : > { %p3403_p0 = scmp.ne.s32.totalorder %s4097_s0, %s3402_s25  ;;  %p3408_p3 = scmp.lt.u32.totalorder %s4097_s0, %s7451_s23 }
 0x104   : > { %p3409_p1 = scmp.lt.u32.totalorder %s3407_s11, %s3402_s25  ;;  %p3411_p6 = scmp.lt.u32.totalorder %s3402_s25, %s4097_s0 }
 0x105   : > { %p3405_p8 = pnand %p3403_p0, %p3937_p11 }
 0x106   : > { %p3410_p4 = por %p3409_p1, %p3408_p3 }
 0x107   : > { %p3406_p2 = pneg %p3405_p8 }
 0x108   : > { %p3412_p9 = por %p3411_p6, %p3410_p4 }
 0x10a   : > { %p3413_p5 = pnand %p3412_p9, %p3406_p2 }
 0x10c   : > { %3416 = shalt.err (!%p3413_p5)
}
 0x10d   : > { %s3417_s3 = scalar_lea.vmem %s446_s22, 16  ;;  %s3621_s14 = smov [#allocation15]  }
 0x10e   : > { %p3418_p12 = scmp.ne.s32.totalorder %s446_s22, %s3417_s3  ;;  %s3422_s2 = sshll.u32 %s3621_s14, 4  ;;  %s3423_s2 = int_to_ptr.vmem [resolvable:$false] %s3422_s2 }
 0x10f   : > { %s3424_s9 = scalar_lea.vmem %s3423_s2, 32  ;;  %p3425_p0 = scmp.lt.s32.totalorder %s446_s22, %s3423_s2 }
 0x110   : > { %p3420_p13 = pnand %p3418_p12, %p3937_p11  ;;  %p3426_p8 = scmp.lt.s32.totalorder %s3424_s9, %s3417_s3 }
 0x112   : > { %p3421_p7 = pneg %p3420_p13  ;;  %p3427_p10 = por %p3426_p8, %p3425_p0 }
 0x114   : > { %p3428_p1 = pnand %p3427_p10, %p3421_p7 }
 0x116   : > { %3431 = shalt.err (!%p3428_p1)
}
 0x117   : > { %p7452_p3 = scmp.ne.s32.totalorder %s7447_s1, 0  ;;  %s7453_s27 = scalar_lea.sflag [#allocation14], %s3750_s20 }
 0x118   : > { %s7454_s15 = sld [smem:[#allocation33_spill]] }
 0x119   : > { %2743 = dma.hbm_to_vmem [thread:$0]  (!%p7452_p3), %s4097_s0, 16, %s446_s22, %s7453_s27  }
 0x11e   : > { %p7455_p2 = scmp.ne.s32.totalorder %s7454_s15, 0 }
 0x120   : > { %454 = sbr.rel (%p7455_p2) target bundleno = 1135 (0x46f), region = 48 }
 0x127   : > { %s7456_s30 = sld [smem:[#allocation29_spill]]  ;;  %s7457_s24 = sld [smem:[#allocation43_spill]] }
 0x12d   : > { %s456_s28 = sand.u32 1, %s7456_s30   ;;  %p7458_p11 = scmp.ne.s32.totalorder %s7457_s24, 0 }
 0x12e   : > { %s2689_s12 = smul.u32 24, %s456_s28  ;;  %s457_s8 = scalar_lea.sflag [#allocation4], %s456_s28 }
 0x130   : > { %s4122_s25 = scalar_lea.vmem [#allocation3], %s2689_s12 }
 0x131   : > { %3529 = dma.done.wait (%p7458_p11), %s457_s8, 384  }
 0x132   : > { %3531 = vsyncadd (%p7458_p11), %s457_s8, 4294966912  ;;  %s7459_s1 = sld [smem:[#allocation34_spill]]  ;;  %s7460_s21 = sld [smem:[#allocation28_spill]] }
 0x133   : > { %s7461_s20 = sld [smem:[#allocation35_spill]] }
 0x138   : > { %s465_s4 = sand.u32 1, %s7459_s1   ;;  %s467_s0 = sand.u32 1, %s7460_s21  }
 0x139   : > { %s2690_s22 = smul.u32 384, %s467_s0  ;;  %s466_s11 = scalar_lea.sflag [#allocation8], %s465_s4 }
 0x13a   : > { %p7462_p10 = scmp.ne.s32.totalorder %s7461_s20, 0 }
 0x13b   : > { %s4130_s19 = scalar_lea.vmem [#allocation7], %s2690_s22 }
 0x13c   : > { %3533 = dma.done.wait (%p7462_p10), %s466_s11, 12288  }
 0x13d   : > { %3535 = vsyncadd (%p7462_p10), %s466_s11, 4294955008  ;;  %s4136_s26 = scalar_lea.vmem [#allocation9], %s2690_s22  ;;  %s484_s3 = scalar_lea.sflag [#allocation11], %s465_s4 }
 0x13e   : > { %s4138_s14 = scalar_lea.vmem [#allocation10], %s2690_s22 }
 0x13f   : > { %3537 = dma.done.wait (%p7462_p10), %s484_s3, 6144  }
 0x140   : > { %3539 = vsyncadd (%p7462_p10), %s484_s3, 4294961152  ;;  %s7463_s2 = sld [smem:[#allocation26_spill]]  ;;  %s7464_s9 = sld [smem:[#allocation37_spill]] }
 0x146   : > { %s4145_s27 = sand.u32 1, %s7463_s2   ;;  %p7465_p4 = scmp.ne.s32.totalorder %s7464_s9, 0 }
 0x147   : > { %s495_s15 = scalar_lea.vmem [#allocation12], %s4145_s27 }
 0x148   : > { %3541 = dma.done.wait (%p7465_p4), %s484_s3, 16  }
 0x149   : > { %3543 = vsyncadd (%p7465_p4), %s484_s3, 4294967280  ;;  %s501_s30 = scalar_lea.sflag [#allocation14], %s465_s4  ;;  %s503_s24 = scalar_lea.vmem [#allocation13], %s4145_s27 }
 0x14a   : > { %3545 = dma.done.wait (%p7465_p4), %s501_s30, 32  }
 0x14b   : > { %3547 = vsyncadd (%p7465_p4), %s501_s30, 4294967264  ;;  %s2519_s28 = sshll.u32 %s4145_s27, 3  ;;  %v575_v0 = vld [vmem:[%s4136_s26] sm:$0xff]  ;;  %v576_v1 = vld [vmem:[%s4136_s26 + $0x8] sm:$0xff]  ;;  %s7497_s12 = sld [smem:[#allocation30_spill]] }
 0x14c   : > { %v577_v2 = vld [vmem:[%s4136_s26 + $0x10] sm:$0xff]  ;;  %v578_v3 = vld [vmem:[%s4136_s26 + $0x18] sm:$0xff]  ;;  %v579_v4 = vld [vmem:[%s4136_s26 + $0x20] sm:$0xff]  ;;  %v671_v17 = vmin.f32 %v575_v0, 20.0  ;;  %v672_v20 = vmin.f32 %v576_v1, 20.0  ;;  %s511_s8 = scalar_lea.vmem [#allocation15], %s4145_s27 }
 0x14d   : > { %v580_v5 = vld [vmem:[%s4136_s26 + $0x28] sm:$0xff]  ;;  %v581_v6 = vld [vmem:[%s4136_s26 + $0x30] sm:$0xff]  ;;  %v4166_v7 = vld [vmem:[%s4136_s26 + $0x38] sm:$0xff]  ;;  %v673_v21 = vmin.f32 %v577_v2, 20.0  ;;  %v674_v22 = vmin.f32 %v578_v3, 20.0  ;;  %v675_v23 = vmin.f32 %v579_v4, 20.0 }
 0x14e   : > { %v4169_v8 = vld [vmem:[%s4136_s26 + $0x40] sm:$0xff]  ;;  %v4172_v9 = vld [vmem:[%s4136_s26 + $0x48] sm:$0xff]  ;;  %v4175_v10 = vld [vmem:[%s4136_s26 + $0x50] sm:$0xff]  ;;  %v676_v26 = vmin.f32 %v580_v5, 20.0  ;;  %v677_v27 = vmin.f32 %v581_v6, 20.0  ;;  %v678_v28 = vmin.f32 %v4166_v7, 20.0 }
 0x14f   : > { %v4178_v11 = vld [vmem:[%s4136_s26 + $0x58] sm:$0xff]  ;;  %v4181_v12 = vld [vmem:[%s4136_s26 + $0x60] sm:$0xff]  ;;  %v4184_v13 = vld [vmem:[%s4136_s26 + $0x68] sm:$0xff]  ;;  %v679_v29 = vmin.f32 %v4169_v8, 20.0  ;;  %v680_v32 = vmin.f32 %v4172_v9, 20.0  ;;  %v681_v33 = vmin.f32 %v4175_v10, 20.0 }
 0x150   : > { %v4187_v14 = vld [vmem:[%s4136_s26 + $0x70] sm:$0xff]  ;;  %v4190_v15 = vld [vmem:[%s4136_s26 + $0x78] sm:$0xff]  ;;  %v4193_v16 = vld [vmem:[%s4136_s26 + $0x80] sm:$0xff]  ;;  %v682_v34 = vmin.f32 %v4178_v11, 20.0  ;;  %v683_v35 = vmin.f32 %v4181_v12, 20.0  ;;  %v684_v38 = vmin.f32 %v4184_v13, 20.0 }
 0x151   : > { %v4196_v18 = vld [vmem:[%s4136_s26 + $0x88] sm:$0xff]  ;;  %v4199_v19 = vld [vmem:[%s4136_s26 + $0x90] sm:$0xff]  ;;  %v4202_v24 = vld [vmem:[%s4136_s26 + $0x98] sm:$0xff]  ;;  %v685_v39 = vmin.f32 %v4187_v14, 20.0  ;;  %v686_v40 = vmin.f32 %v4190_v15, 20.0  ;;  %v687_v41 = vmin.f32 %v4193_v16, 20.0 }
 0x152   : > { %v4205_v25 = vld [vmem:[%s4136_s26 + $0xa0] sm:$0xff]  ;;  %v4210_v30 = vld [vmem:[%s4136_s26 + $0xa8] sm:$0xff]  ;;  %v4213_v31 = vld [vmem:[%s4136_s26 + $0xb0] sm:$0xff]  ;;  %v688_v43 = vmin.f32 %v4196_v18, 20.0  ;;  %v689_v44 = vmin.f32 %v4199_v19, 20.0  ;;  %v690_v45 = vmin.f32 %v4202_v24, 20.0 }
 0x153   : > { %v4220_v36 = vld [vmem:[%s4136_s26 + $0xb8] sm:$0xff]  ;;  %v4223_v37 = vld [vmem:[%s4136_s26 + $0xc0] sm:$0xff]  ;;  %v4230_v42 = vld [vmem:[%s4136_s26 + $0xc8] sm:$0xff]  ;;  %v719_v46 = vmul.f32 1.442695, %v671_v17  ;;  %v691_v52 = vmin.f32 %v4205_v25, 20.0 }
 0x154   : > { %v721_v47 = vmul.f32 1.442695, %v672_v20  ;;  %v723_v48 = vmul.f32 1.442695, %v673_v21  ;;  %v725_v49 = vmul.f32 1.442695, %v674_v22 }
 0x155   : > { %v4236_v50 = vld [vmem:[%s4136_s26 + $0xd0] sm:$0xff]  ;;  %v4239_v51 = vld [vmem:[%s4136_s26 + $0xd8] sm:$0xff]  ;;  %v692_v53 = vmin.f32 %v4210_v30, 20.0  ;;  %2876 = vpow2.f32 %v719_v46  ;;  %v727_v54 = vmul.f32 1.442695, %v675_v23  ;;  %v4244_v55 = vld [vmem:[%s4136_s26 + $0xe0] sm:$0xff] }
 0x156   : > { %v4247_v56 = vld [vmem:[%s4136_s26 + $0xe8] sm:$0xff]  ;;  %v693_v57 = vmin.f32 %v4213_v31, 20.0  ;;  %v694_v58 = vmin.f32 %v4220_v36, 20.0  ;;  %2878 = vpow2.f32 %v721_v47  ;;  %v729_v59 = vmul.f32 1.442695, %v676_v26  ;;  %v4252_v60 = vld [vmem:[%s4136_s26 + $0xf0] sm:$0xff] }
 0x157   : > { %v4255_v61 = vld [vmem:[%s4136_s26 + $0xf8] sm:$0xff]  ;;  %v695_v62 = vmin.f32 %v4223_v37, 20.0  ;;  %v696_v63 = vmin.f32 %v4230_v42, 20.0  ;;  %2880 = vpow2.f32 %v723_v48  ;;  %v731_v0 = vmul.f32 1.442695, %v677_v27  ;;  %v4260_v1 = vld [vmem:[%s4136_s26 + $0x100] sm:$0xff] }
 0x158   : > { %v4263_v2 = vld [vmem:[%s4136_s26 + $0x108] sm:$0xff]  ;;  %v697_v3 = vmin.f32 %v4236_v50, 20.0  ;;  %v698_v4 = vmin.f32 %v4239_v51, 20.0  ;;  %2882 = vpow2.f32 %v725_v49  ;;  %v733_v5 = vmul.f32 1.442695, %v678_v28  ;;  %v4268_v6 = vld [vmem:[%s4136_s26 + $0x110] sm:$0xff] }
 0x159   : > { %v4271_v7 = vld [vmem:[%s4136_s26 + $0x118] sm:$0xff]  ;;  %v699_v8 = vmin.f32 %v4244_v55, 20.0  ;;  %v700_v9 = vmin.f32 %v4247_v56, 20.0  ;;  %2884 = vpow2.f32 %v727_v54  ;;  %v735_v10 = vmul.f32 1.442695, %v679_v29  ;;  %v4276_v11 = vld [vmem:[%s4136_s26 + $0x120] sm:$0xff] }
 0x15a   : > { %v4279_v17 = vld [vmem:[%s4136_s26 + $0x128] sm:$0xff]  ;;  %v701_v20 = vmin.f32 %v4252_v60, 20.0  ;;  %2886 = vpow2.f32 %v729_v59  ;;  %v737_v22 = vmul.f32 1.442695, %v680_v32  ;;  %v4284_v23 = vld [vmem:[%s4136_s26 + $0x130] sm:$0xff]  ;;  %v4287_v26 = vld [vmem:[%s4136_s26 + $0x138] sm:$0xff] }
 0x15b   : > { %2888 = vpow2.f32 %v731_v0  ;;  %v739_v29 = vmul.f32 1.442695, %v681_v33  ;;  %v4292_v46 = vld [vmem:[%s4136_s26 + $0x140] sm:$0xff]  ;;  %v4295_v47 = vld [vmem:[%s4136_s26 + $0x148] sm:$0xff]  ;;  %v741_v49 = vmul.f32 1.442695, %v682_v34 }
 0x15c   : > { %2890 = vpow2.f32 %v733_v5  ;;  %v4300_v54 = vld [vmem:[%s4136_s26 + $0x150] sm:$0xff]  ;;  %v4303_v59 = vld [vmem:[%s4136_s26 + $0x158] sm:$0xff]  ;;  %v743_v0 = vmul.f32 1.442695, %v683_v35  ;;  %v4310_v27 = vld [vmem:[%s4136_s26 + $0x160] sm:$0xff]  ;;  %v709_v5 = vmin.f32 %v4284_v23, 20.0 }
 0x15d   : > { %2892 = vpow2.f32 %v735_v10  ;;  %v4313_v48 = vld [vmem:[%s4136_s26 + $0x168] sm:$0xff]  ;;  %v710_v34 = vmin.f32 %v4287_v26, 20.0  ;;  %v745_v32 = vmul.f32 1.442695, %v684_v38  ;;  %v4322_v28 = vld [vmem:[%s4136_s26 + $0x170] sm:$0xff]  ;;  %v4325_v10 = vld [vmem:[%s4136_s26 + $0x178] sm:$0xff] }
 0x15e   : > { %2894 = vpow2.f32 %v737_v22  ;;  %v711_v12 = vmin.f32 %v4292_v46, 20.0  ;;  %v712_v35 = vmin.f32 %v4295_v47, 20.0  ;;  %v747_v23 = vmul.f32 1.442695, %v685_v39  ;;  %p1487_p6 = scmp.eq.s32.totalorder %s7497_s12, 0  ;;  %s6569_s1 = scalar_lea.vmem [#allocation16], %s2519_s28 }
 0x15f   : > { %v4319_v21 = vpop.eup %2876  ;;  %2896 = vpow2.f32 %v739_v29  ;;  %v713_v22 = vmin.f32 %v4300_v54, 20.0  ;;  %v714_v13 = vmin.f32 %v4303_v59, 20.0  ;;  %v749_v38 = vmul.f32 1.442695, %v686_v40  ;;  %p2520_p9 = scmp.ne.s32.totalorder %s7497_s12, 0 }
 0x160   : > { %v4331_v33 = vpop.eup %2878  ;;  %2898 = vpow2.f32 %v741_v49  ;;  %v715_v46 = vmin.f32 %v4310_v27, 20.0  ;;  %v716_v47 = vmin.f32 %v4313_v48, 20.0  ;;  %v751_v14 = vmul.f32 1.442695, %v687_v41 }
 0x161   : > { %v4337_v26 = vpop.eup %2880  ;;  %2900 = vpow2.f32 %v743_v0  ;;  %v717_v29 = vmin.f32 %v4322_v28, 20.0  ;;  %v718_v54 = vmin.f32 %v4325_v10, 20.0  ;;  %v753_v15 = vmul.f32 1.442695, %v688_v43 }
 0x162   : > { %v4343_v39 = vpop.eup %2882  ;;  %2902 = vpow2.f32 %v745_v32  ;;  %v755_v27 = vmul.f32 1.442695, %v689_v44  ;;  %v757_v16 = vmul.f32 1.442695, %v690_v45  ;;  %v759_v41 = vmul.f32 1.442695, %v691_v52 }
 0x163   : > { %v4349_v40 = vpop.eup %2884  ;;  %2904 = vpow2.f32 %v747_v23  ;;  %v761_v28 = vmul.f32 1.442695, %v692_v53  ;;  %v763_v18 = vmul.f32 1.442695, %v693_v57  ;;  %v765_v43 = vmul.f32 1.442695, %v694_v58 }
 0x164   : > { %v4357_v48 = vpop.eup %2886  ;;  %2906 = vpow2.f32 %v749_v38  ;;  %v767_v24 = vmul.f32 1.442695, %v695_v62  ;;  %v769_v25 = vmul.f32 1.442695, %v696_v63  ;;  %v771_v44 = vmul.f32 1.442695, %v697_v3 }
 0x165   : > { %v4365_v19 = vpop.eup %2888  ;;  %2908 = vpow2.f32 %v751_v14  ;;  %v773_v31 = vmul.f32 1.442695, %v698_v4  ;;  %v775_v36 = vmul.f32 1.442695, %v699_v8  ;;  %v777_v45 = vmul.f32 1.442695, %v700_v9 }
 0x166   : > { %v4373_v30 = vpop.eup %2890  ;;  %2910 = vpow2.f32 %v753_v15  ;;  %v779_v42 = vmul.f32 1.442695, %v701_v20  ;;  %v7466_v50 = vmin.f32 %v4255_v61, 20.0  ;;  %v7467_v53 = vmin.f32 %v4260_v1, 20.0 }
 0x167   : > { %v4381_v37 = vpop.eup %2892  ;;  %2912 = vpow2.f32 %v755_v27  ;;  %v7468_v55 = vmin.f32 %v4263_v2, 20.0  ;;  %v7469_v58 = vmin.f32 %v4268_v6, 20.0  ;;  %v7470_v60 = vmin.f32 %v4271_v7, 20.0 }
 0x168   : > { %v781_v52 = vmul.f32 1.442695, %v7466_v50  ;;  %v4389_v57 = vmul.f32 1.442695, %v7467_v53  ;;  %v4391_v51 = vpop.eup %2894  ;;  %2914 = vpow2.f32 %v757_v16  ;;  %v7471_v1 = vmin.f32 %v4276_v11, 20.0 }
 0x169   : > { %v4395_v56 = vmul.f32 1.442695, %v7468_v55  ;;  %v4399_v62 = vmul.f32 1.442695, %v7469_v58  ;;  %v4403_v63 = vmul.f32 1.442695, %v7470_v60  ;;  %v4405_v61 = vpop.eup %2896  ;;  %2916 = vpow2.f32 %v759_v41 }
 0x16a   : > { %v4409_v3 = vmul.f32 1.442695, %v7471_v1  ;;  %v7472_v4 = vmin.f32 %v4279_v17, 20.0  ;;  %v4415_v8 = vmul.f32 1.442695, %v709_v5  ;;  %v4417_v6 = vpop.eup %2898  ;;  %2918 = vpow2.f32 %v761_v28 }
 0x16b   : > { %v4419_v9 = vmul.f32 1.442695, %v710_v34  ;;  %v4421_v7 = vmul.f32 1.442695, %v711_v12  ;;  %v818_v20 = vmul.f32 -0.5, %v4319_v21  ;;  %v4424_v32 = vpop.eup %2900  ;;  %2920 = vpow2.f32 %v763_v18 }
 0x16c   : > { %v4413_v2 = vmul.f32 1.442695, %v7472_v4  ;;  %v4426_v11 = vmul.f32 1.442695, %v712_v35  ;;  %v827_v17 = vmul.f32 -0.5, %v4331_v33  ;;  %v836_v49 = vmul.f32 -0.5, %v4337_v26  ;;  %v4430_v59 = vpop.eup %2902 }
 0x16d   : > { %2922 = vpow2.f32 %v765_v43  ;;  %v4432_v0 = vmul.f32 1.442695, %v713_v22  ;;  %v4434_v5 = vmul.f32 1.442695, %v714_v13  ;;  %v4436_v34 = vmul.f32 1.442695, %v715_v46  ;;  %v4438_v10 = vpop.eup %2904 }
 0x16e   : > { %2924 = vpow2.f32 %v767_v24  ;;  %v4440_v12 = vmul.f32 1.442695, %v716_v47  ;;  %v4442_v35 = vmul.f32 1.442695, %v717_v29  ;;  %v4444_v23 = vmul.f32 1.442695, %v718_v54  ;;  %v4446_v38 = vpop.eup %2906 }
 0x16f   : > { %2926 = vpow2.f32 %v769_v25  ;;  %v4449_v14 = vadd.f32 1.0, %v4319_v21  ;;  %v819_v22 = vadd.f32 1.0, %v818_v20  ;;  %v845_v13 = vmul.f32 -0.5, %v4343_v39  ;;  %v4452_v46 = vpop.eup %2908 }
 0x170   : > { %2928 = vpow2.f32 %v771_v44  ;;  %v828_v47 = vadd.f32 1.0, %v827_v17  ;;  %v837_v27 = vadd.f32 1.0, %v836_v49  ;;  %v4455_v29 = vpop.eup %2910  ;;  %v4458_v54 = vadd.f32 1.0, %v4331_v33 }
 0x171   : > { %2930 = vpow2.f32 %v773_v31  ;;  %v854_v41 = vmul.f32 -0.5, %v4349_v40  ;;  %v4462_v28 = vpop.eup %2912  ;;  %v4465_v18 = vadd.f32 1.0, %v4337_v26  ;;  %v863_v24 = vmul.f32 -0.5, %v4357_v48 }
 0x172   : > { %2932 = vpow2.f32 %v775_v36  ;;  %v4469_v25 = vpop.eup %2914  ;;  %v4472_v44 = vmul.f32 %v4319_v21, %v819_v22  ;;  %v4475_v31 = vadd.f32 1.0, %v4343_v39  ;;  %v846_v50 = vadd.f32 1.0, %v845_v13 }
 0x173   : > { %2934 = vpow2.f32 %v777_v45  ;;  %v4477_v53 = vpop.eup %2916  ;;  %v4480_v36 = vmul.f32 %v4331_v33, %v828_v47  ;;  %v4483_v55 = vmul.f32 %v4337_v26, %v837_v27  ;;  %v872_v58 = vmul.f32 -0.5, %v4365_v19 }
 0x174   : > { %2936 = vpow2.f32 %v779_v42  ;;  %v4486_v60 = vpop.eup %2918  ;;  %v4490_v1 = vadd.f32 1.0, %v4349_v40  ;;  %v855_v4 = vadd.f32 1.0, %v854_v41  ;;  %v864_v42 = vadd.f32 1.0, %v863_v24 }
 0x175   : > { %7473 = vst [vmem:[#allocation44_spill] sm:$0xff] %v4483_v55  ;;  %2938 = vpow2.f32 %v781_v52  ;;  %v4492_v20 = vpop.eup %2920  ;;  %v881_v17 = vmul.f32 -0.5, %v4373_v30  ;;  %v890_v49 = vmul.f32 -0.5, %v4381_v37  ;;  %v4501_v52 = vmul.f32 %v4343_v39, %v846_v50 }
 0x176   : > { %2940 = vpow2.f32 %v4389_v57  ;;  %v4505_v47 = vadd.f32 1.0, %v4357_v48  ;;  %v4512_v41 = vadd.f32 1.0, %v4365_v19  ;;  %v873_v24 = vadd.f32 1.0, %v872_v58 }
 0x177   : > { %v4497_v22 = vpop.eup %2922  ;;  %2942 = vpow2.f32 %v4395_v56  ;;  %v4518_v56 = vmul.f32 %v4349_v40, %v855_v4  ;;  %v899_v13 = vmul.f32 -0.5, %v4391_v51  ;;  %v882_v57 = vadd.f32 1.0, %v881_v17 }
 0x178   : > { %v4507_v27 = vpop.eup %2924  ;;  %2944 = vpow2.f32 %v4399_v62  ;;  %v4526_v62 = vmul.f32 %v4357_v48, %v864_v42  ;;  %v891_v58 = vadd.f32 1.0, %v890_v49  ;;  %v908_v50 = vmul.f32 -0.5, %v4405_v61 }
 0x179   : > { %v4514_v45 = vpop.eup %2926  ;;  %2946 = vpow2.f32 %v4403_v63  ;;  %v4532_v63 = vadd.f32 1.0, %v4373_v30  ;;  %v4543_v42 = vadd.f32 1.0, %v4381_v37  ;;  %v917_v17 = vmul.f32 -0.5, %v4417_v6 }
 0x17a   : > { %7474 = vst [vmem:[#allocation45_spill] sm:$0xff] %v4514_v45  ;;  %v4522_v43 = vpop.eup %2928  ;;  %2948 = vpow2.f32 %v4409_v3  ;;  %v4540_v3 = vmul.f32 %v4365_v19, %v873_v24  ;;  %v4551_v4 = vadd.f32 1.0, %v4391_v51  ;;  %v4560_v24 = vmul.f32 %v4381_v37, %v891_v58 }
 0x17b   : > { %7475 = vst [vmem:[#allocation46_spill] sm:$0xff] %v4522_v43  ;;  %v4528_v16 = vpop.eup %2930  ;;  %2950 = vpow2.f32 %v4413_v2  ;;  %v909_v49 = vadd.f32 1.0, %v908_v50  ;;  %v944_v58 = vmul.f32 -0.5, %v4438_v10  ;;  %v4583_v50 = vadd.f32 1.0, %v4417_v6 }
 0x17c   : > { %7476 = vst [vmem:[#allocation47_spill] sm:$0xff] %v4528_v16  ;;  %v4536_v15 = vpop.eup %2932  ;;  %2952 = vpow2.f32 %v4415_v8  ;;  %v4557_v8 = vmul.f32 %v4373_v30, %v882_v57  ;;  %v935_v57 = vmul.f32 -0.5, %v4430_v59  ;;  %v7565_v55 = vand.u32 2147483647, %v4446_v38 }
 0x17d   : > { %7477 = vst [vmem:[#allocation48_spill] sm:$0xff] %v4536_v15  ;;  %v4546_v2 = vpop.eup %2934  ;;  %2954 = vpow2.f32 %v4419_v9  ;;  %v900_v15 = vadd.f32 1.0, %v899_v13  ;;  %v4568_v13 = vadd.f32 1.0, %v4405_v61  ;;  %v953_v9 = vmul.f32 -0.5, %v4446_v38 }
 0x17e   : > { %7478 = vst [vmem:[#allocation49_spill] sm:$0xff] %v4546_v2  ;;  %v4553_v16 = vpop.eup %2936  ;;  %2956 = vpow2.f32 %v4421_v7  ;;  %v926_v2 = vmul.f32 -0.5, %v4424_v32  ;;  %v918_v7 = vadd.f32 1.0, %v917_v17  ;;  %v4590_v17 = vadd.f32 1.0, %v4424_v32 }
 0x17f   : > { %7479 = vst [vmem:[#allocation50_spill] sm:$0xff] %v4553_v16  ;;  %v4563_v43 = vpop.eup %2938  ;;  %2958 = vpow2.f32 %v4426_v11  ;;  %v4579_v11 = vmul.f32 %v4391_v51, %v900_v15  ;;  %v962_v15 = vmul.f32 -0.5, %v4452_v46  ;;  %vm4851_vm15 = vcmp.lt.f32.partialorder %v7565_v55, 0.0004427343 }
 0x180   : > { %7480 = vst [vmem:[#allocation51_spill] sm:$0xff] %v4563_v43  ;;  %v4570_v16 = vpop.eup %2940  ;;  %2960 = vpow2.f32 %v4432_v0  ;;  %v936_v0 = vadd.f32 1.0, %v935_v57  ;;  %v971_v57 = vmul.f32 -0.5, %v4455_v29 }
 0x181   : > { %7481 = vst [vmem:[#allocation52_spill] sm:$0xff] %v4570_v16  ;;  %v4575_v45 = vpop.eup %2942  ;;  %2962 = vpow2.f32 %v4434_v5  ;;  %7483 = vst [vmem:[#allocation54_spill] sm:$0xff] %v4579_v11  ;;  %v4596_v5 = vmul.f32 %v4405_v61, %v909_v49  ;;  %v4629_v49 = vadd.f32 1.0, %v4446_v38 }
 0x182   : > { %7482 = vst [vmem:[#allocation53_spill] sm:$0xff] %v4575_v45  ;;  %v4585_v16 = vpop.eup %2944  ;;  %2964 = vpow2.f32 %v4436_v34  ;;  %v927_v45 = vadd.f32 1.0, %v926_v2  ;;  %v4604_v34 = vmul.f32 %v4417_v6, %v918_v7  ;;  %v945_v2 = vadd.f32 1.0, %v944_v58 }
 0x183   : > { %7484 = vst [vmem:[#allocation55_spill] sm:$0xff] %v4585_v16  ;;  %v4592_v43 = vpop.eup %2946  ;;  %2966 = vpow2.f32 %v4440_v12  ;;  %7486 = vst [vmem:[#allocation57_spill] sm:$0xff] %v4596_v5  ;;  %v4610_v12 = vadd.f32 1.0, %v4430_v59  ;;  %v4621_v7 = vadd.f32 1.0, %v4438_v10  ;;  %v963_v58 = vadd.f32 1.0, %v962_v15 }
 0x184   : > { %7485 = vst [vmem:[#allocation56_spill] sm:$0xff] %v4592_v43  ;;  %v4600_v16 = vpop.eup %2948  ;;  %2968 = vpow2.f32 %v4442_v35  ;;  %7488 = vst [vmem:[#allocation59_spill] sm:$0xff] %v4604_v34  ;;  %v4618_v35 = vmul.f32 %v4424_v32, %v927_v45  ;;  %v4638_v45 = vmul.f32 %v4438_v10, %v945_v2  ;;  %v989_v2 = vmul.f32 -0.5, %v4469_v25 }
 0x185   : > { %7487 = vst [vmem:[#allocation58_spill] sm:$0xff] %v4600_v16  ;;  %v4606_v11 = vpop.eup %2950  ;;  %2970 = vpow2.f32 %v4444_v23  ;;  %v7502_v15 = vand.u32 2147483647, %v4331_v33  ;;  %v7508_v33 = vmov 0 }
 0x186   : > { %7489 = vst [vmem:[#allocation60_spill] sm:$0xff] %v4606_v11  ;;  %v4614_v43 = vpop.eup %2952  ;;  %2972 = vlog2.f32 %v4449_v14  ;;  %v4635_v14 = vmul.f32 %v4430_v59, %v936_v0  ;;  %7494 = vst [vmem:[#allocation65_spill] sm:$0xff] %v4638_v45  ;;  %v972_v0 = vadd.f32 1.0, %v971_v57  ;;  %v4672_v57 = vadd.f32 1.0, %v4455_v29 }
 0x187   : > { %7490 = vst [vmem:[#allocation61_spill] sm:$0xff] %v4614_v43  ;;  %v4624_v23 = vpop.eup %2954  ;;  %2974 = vlog2.f32 %v4458_v54  ;;  %v954_v43 = vadd.f32 1.0, %v953_v9  ;;  %v4646_v9 = vadd.f32 1.0, %v4452_v46  ;;  %vm4663_vm1 = vcmp.lt.f32.partialorder %v7502_v15, 0.0004427343  ;;  %v7770_v54 = vld [vmem:[#allocation44_spill] sm:$0xff] }
 0x188   : > { %7491 = vst [vmem:[#allocation62_spill] sm:$0xff] %v4624_v23  ;;  %v4631_v11 = vpop.eup %2956  ;;  %2976 = vlog2.f32 %v4465_v18  ;;  %7493 = vst [vmem:[#allocation64_spill] sm:$0xff] %v4635_v14  ;;  %v980_v23 = vmul.f32 -0.5, %v4462_v28  ;;  %v7507_v18 = vand.u32 2147483647, %v4337_v26  ;;  %v4699_v26 = vmul.f32 %v4452_v46, %v963_v58 }
 0x189   : > { %7492 = vst [vmem:[#allocation63_spill] sm:$0xff] %v4631_v11  ;;  %v4641_v16 = vpop.eup %2958  ;;  %2978 = vlog2.f32 %v4475_v31  ;;  %v7499_v31 = vand.u32 2147483647, %v4319_v21  ;;  %v998_v21 = vmul.f32 -0.5, %v4477_v53  ;;  %v7519_v58 = vmov 0 }
 0x18a   : > { %7495 = vst [vmem:[#allocation66_spill] sm:$0xff] %v4641_v16  ;;  %v4648_v11 = vpop.eup %2960  ;;  %2980 = vlog2.f32 %v4490_v1  ;;  %v4669_v1 = vmul.f32 %v4446_v38, %v954_v43  ;;  %vm4679_vm2 = vcmp.lt.f32.partialorder %v7507_v18, 0.0004427343  ;;  %v4686_v43 = vadd.f32 1.0, %v4462_v28  ;;  %7514 = vst [vmem:[#allocation72_spill] sm:$0xff] %v4699_v26 }
 0x18b   : > { %7496 = vst [vmem:[#allocation67_spill] sm:$0xff] %v4648_v11  ;;  %v4653_v45 = vpop.eup %2962  ;;  %vm4657_vm0 = vcmp.lt.f32.partialorder %v7499_v31, 0.0004427343  ;;  %2982 = vlog2.f32 %v4505_v47  ;;  %v7509_v33 = vsel %vm4679_vm2, 4294967295, %v7508_v33  ;;  %v981_v15 = vadd.f32 1.0, %v980_v23  ;;  %v5542_v11 = vld [vmem:[%s4136_s26 + $0x128] sm:$0xff] }
 0x18c   : > { %7498 = vst [vmem:[#allocation68_spill] sm:$0xff] %v4653_v45  ;;  %7505 = vst [vmem:[#allocation69_spill] sm:$0xff] %v4669_v1  ;;  %v4675_v31 = vpop.eup %2964  ;;  %2984 = vlog2.f32 %v4512_v41  ;;  %v7511_v16 = vand.u32 2147483647, %v4343_v39  ;;  %v990_v18 = vadd.f32 1.0, %v989_v2  ;;  %v4706_v23 = vmul.f32 %v4455_v29, %v972_v0 }
 0x18d   : > { %7506 = vst [vmem:[#allocation70_spill] sm:$0xff] %v4675_v31  ;;  %v4689_v45 = vpop.eup %2966  ;;  %v7512_v31 = vmov 0  ;;  %2986 = vlog2.f32 %v4532_v63  ;;  %v999_v39 = vadd.f32 1.0, %v998_v21  ;;  %v7518_v63 = vand.u32 2147483647, %v4349_v40 }
 0x18e   : > { %7510 = vst [vmem:[#allocation71_spill] sm:$0xff] %v4689_v45  ;;  %vm4693_vm3 = vcmp.lt.f32.partialorder %v7511_v16, 0.0004427343  ;;  %v4702_v47 = vpop.eup %2968  ;;  %2988 = vlog2.f32 %v4543_v42  ;;  %7516 = vst [vmem:[#allocation74_spill] sm:$0xff] %v4706_v23  ;;  %v1007_v16 = vmul.f32 -0.5, %v4486_v60  ;;  %v986_v2 = vadd.f32 1.0, %v4469_v25 }
 0x18f   : > { %v7513_v31 = vsel %vm4693_vm3, 4294967295, %v7512_v31  ;;  %7515 = vst [vmem:[#allocation73_spill] sm:$0xff] %v4702_v47  ;;  %v4709_v45 = vpop.eup %2970  ;;  %vm4713_vm4 = vcmp.lt.f32.partialorder %v7518_v63, 0.0004427343  ;;  %2990 = vlog2.f32 %v4551_v4  ;;  %v4721_v0 = vadd.f32 1.0, %v4477_v53 }
 0x190   : > { %7517 = vst [vmem:[#allocation75_spill] sm:$0xff] %v4709_v45  ;;  %v7520_v58 = vsel %vm4713_vm4, 4294967295, %v7519_v58  ;;  %v2973_v21 = vpop.eup %2972  ;;  %v7521_v41 = vand.u32 2147483647, %v4357_v48  ;;  %v7522_v45 = vmov 0  ;;  %2992 = vlog2.f32 %v4568_v13 }
 0x191   : > { %v4731_v40 = vmul.f32 %v4462_v28, %v981_v15  ;;  %v1016_v63 = vmul.f32 -0.5, %v4492_v20  ;;  %v2975_v42 = vpop.eup %2974  ;;  %v7525_v47 = vand.u32 2147483647, %v4365_v19  ;;  %v7526_v23 = vmov 0 }
 0x192   : > { %vm4725_vm5 = vcmp.lt.f32.partialorder %v7521_v41, 0.0004427343  ;;  %2994 = vlog2.f32 %v4583_v50  ;;  %v4743_v48 = vmul.f32 %v4469_v25, %v990_v18  ;;  %v1004_v13 = vadd.f32 1.0, %v4486_v60  ;;  %v2977_v41 = vpop.eup %2976 }
 0x193   : > { %v7523_v45 = vsel %vm4725_vm5, 4294967295, %v7522_v45  ;;  %7524 = vst [vmem:[#allocation76_spill] sm:$0xff] %v4731_v40  ;;  %vm4737_vm6 = vcmp.lt.f32.partialorder %v7525_v47, 0.0004427343  ;;  %v1008_v15 = vadd.f32 1.0, %v1007_v16  ;;  %v7532_v19 = vmov 0  ;;  %v2979_v16 = vpop.eup %2978 }
 0x194   : > { %v7527_v23 = vsel %vm4737_vm6, 4294967295, %v7526_v23  ;;  %7529 = vst [vmem:[#allocation78_spill] sm:$0xff] %v4743_v48  ;;  %v4746_v40 = vmul.f32 0.6931472, %v2973_v21  ;;  %v4748_v4 = vmul.f32 0.6931472, %v2975_v42  ;;  %2996 = vlog2.f32 %v4590_v17 }
 0x195   : > { %7528 = vst [vmem:[#allocation77_spill] sm:$0xff] %v7527_v23  ;;  %v7531_v26 = vand.u32 2147483647, %v4373_v30  ;;  %v7534_v47 = vand.u32 2147483647, %v4381_v37  ;;  %v7535_v50 = vmov 0  ;;  %v4764_v18 = vmul.f32 %v4477_v53, %v999_v39 }
 0x196   : > { %7530 = vst [vmem:[#allocation79_spill] sm:$0xff] %v4746_v40  ;;  %v4766_v42 = vmul.f32 0.6931472, %v2977_v41  ;;  %v7539_v30 = vand.u32 2147483647, %v4391_v51  ;;  %2998 = vlog2.f32 %v4610_v12  ;;  %v1017_v21 = vadd.f32 1.0, %v1016_v63 }
 0x197   : > { %vm4752_vm7 = vcmp.lt.f32.partialorder %v7531_v26, 0.0004427343  ;;  %vm4758_vm8 = vcmp.lt.f32.partialorder %v7534_v47, 0.0004427343  ;;  %7537 = vst [vmem:[#allocation80_spill] sm:$0xff] %v4764_v18  ;;  %v7540_v26 = vmov 0  ;;  %v2981_v47 = vpop.eup %2980  ;;  %3000 = vlog2.f32 %v4621_v7 }
 0x198   : > { %v7533_v19 = vsel %vm4752_vm7, 4294967295, %v7532_v19  ;;  %v7536_v50 = vsel %vm4758_vm8, 4294967295, %v7535_v50  ;;  %7538 = vst [vmem:[#allocation81_spill] sm:$0xff] %v4766_v42  ;;  %vm4770_vm9 = vcmp.lt.f32.partialorder %v7539_v30, 0.0004427343  ;;  %v7544_v39 = vmov 0  ;;  %v2983_v30 = vpop.eup %2982 }
 0x199   : > { %v7541_v26 = vsel %vm4770_vm9, 4294967295, %v7540_v26  ;;  %v4776_v48 = vmul.f32 0.6931472, %v2979_v16  ;;  %v7543_v17 = vand.u32 2147483647, %v4405_v61  ;;  %v1013_v51 = vadd.f32 1.0, %v4492_v20 }
 0x19a   : > { %7542 = vst [vmem:[#allocation82_spill] sm:$0xff] %v7541_v26  ;;  %v7547_v12 = vand.u32 2147483647, %v4417_v6  ;;  %v7548_v63 = vmov 0  ;;  %3002 = vlog2.f32 %v4629_v49  ;;  %v4795_v61 = vmul.f32 %v4486_v60, %v1008_v15  ;;  %v7639_v18 = vld [vmem:[#allocation49_spill] sm:$0xff] }
 0x19b   : > { %vm4780_vm10 = vcmp.lt.f32.partialorder %v7543_v17, 0.0004427343  ;;  %v1022_v16 = vadd.f32 1.0, %v4497_v22  ;;  %v1025_v7 = vmul.f32 -0.5, %v4497_v22  ;;  %v2985_v17 = vpop.eup %2984  ;;  %v7553_v49 = vand.u32 2147483647, %v4424_v32 }
 0x19c   : > { %v7545_v39 = vsel %vm4780_vm10, 4294967295, %v7544_v39  ;;  %vm4789_vm11 = vcmp.lt.f32.partialorder %v7547_v12, 0.0004427343  ;;  %7551 = vst [vmem:[#allocation85_spill] sm:$0xff] %v4795_v61  ;;  %v4807_v12 = vmul.f32 0.6931472, %v2981_v47  ;;  %3004 = vlog2.f32 %v4646_v9  ;;  %v2987_v37 = vpop.eup %2986 }
 0x19d   : > { %7546 = vst [vmem:[#allocation83_spill] sm:$0xff] %v7545_v39  ;;  %v7549_v63 = vsel %vm4789_vm11, 4294967295, %v7548_v63  ;;  %vm4811_vm12 = vcmp.lt.f32.partialorder %v7553_v49, 0.0004427343  ;;  %v7554_v15 = vmov 0  ;;  %v7557_v47 = vmov 0  ;;  %v2989_v9 = vpop.eup %2988 }
 0x19e   : > { %7550 = vst [vmem:[#allocation84_spill] sm:$0xff] %v7549_v63  ;;  %7552 = vst [vmem:[#allocation86_spill] sm:$0xff] %v4807_v12  ;;  %v7555_v15 = vsel %vm4811_vm12, 4294967295, %v7554_v15  ;;  %v4820_v40 = vmul.f32 0.6931472, %v2983_v30  ;;  %3006 = vlog2.f32 %v4672_v57  ;;  %v4830_v32 = vmul.f32 %v4492_v20, %v1017_v21 }
 0x19f   : > { %v7556_v6 = vand.u32 2147483647, %v4430_v59  ;;  %v4836_v41 = vmul.f32 0.6931472, %v2985_v17  ;;  %v7561_v30 = vand.u32 2147483647, %v4438_v10  ;;  %3008 = vlog2.f32 %v4686_v43 }
 0x1a0   : > { %7560 = vst [vmem:[#allocation88_spill] sm:$0xff] %v4830_v32  ;;  %v7562_v59 = vmov 0  ;;  %v1026_v57 = vadd.f32 1.0, %v1025_v7  ;;  %v4845_v21 = vmul.f32 0.6931472, %v2987_v37  ;;  %v7566_v49 = vmov 0 }
 0x1a1   : > { %vm4824_vm13 = vcmp.lt.f32.partialorder %v7556_v6, 0.0004427343  ;;  %vm4840_vm14 = vcmp.lt.f32.partialorder %v7561_v30, 0.0004427343  ;;  %v2991_v6 = vpop.eup %2990  ;;  %v4847_v42 = vmul.f32 0.6931472, %v2989_v9  ;;  %3010 = vlog2.f32 %v986_v2 }
 0x1a2   : > { %v7558_v47 = vsel %vm4824_vm13, 4294967295, %v7557_v47  ;;  %v7563_v59 = vsel %vm4840_vm14, 4294967295, %v7562_v59  ;;  %v7567_v49 = vsel %vm4851_vm15, 4294967295, %v7566_v49  ;;  %v1028_v10 = vand.u32 2147483647, %v4497_v22  ;;  %v2993_v17 = vpop.eup %2992 }
 0x1a3   : > { %7559 = vst [vmem:[#allocation87_spill] sm:$0xff] %v7558_v47  ;;  %7564 = vst [vmem:[#allocation89_spill] sm:$0xff] %v7563_v59  ;;  %v4860_v7 = vmul.f32 0.6931472, %v2991_v6  ;;  %v7570_v37 = vand.u32 2147483647, %v4452_v46  ;;  %3012 = vlog2.f32 %v4721_v0  ;;  %v2995_v55 = vpop.eup %2994 }
 0x1a4   : > { %7568 = vst [vmem:[#allocation90_spill] sm:$0xff] %v7567_v49  ;;  %v7571_v9 = vmov 0  ;;  %v1031_v38 = vadd.f32 1.0, %v4507_v27  ;;  %v4874_v30 = vmul.f32 0.6931472, %v2993_v17  ;;  %v7576_v46 = vmov 0  ;;  %v2997_v0 = vpop.eup %2996 }
 0x1a5   : > { %7569 = vst [vmem:[#allocation91_spill] sm:$0xff] %v4860_v7  ;;  %vm4864_vm3 = vcmp.lt.f32.partialorder %v7570_v37, 0.0004427343  ;;  %v7575_v6 = vand.u32 2147483647, %v4455_v29  ;;  %3014 = vlog2.f32 %v1004_v13  ;;  %v1034_v37 = vmul.f32 -0.5, %v4507_v27  ;;  %v2999_v23 = vpop.eup %2998 }
 0x1a6   : > { %v7572_v9 = vsel %vm4864_vm3, 4294967295, %v7571_v9  ;;  %7574 = vst [vmem:[#allocation93_spill] sm:$0xff] %v4874_v30  ;;  %v4887_v12 = vmul.f32 0.6931472, %v2995_v55  ;;  %v7580_v17 = vand.u32 2147483647, %v4462_v28  ;;  %3016 = vlog2.f32 %v1013_v51 }
 0x1a7   : > { %7573 = vst [vmem:[#allocation92_spill] sm:$0xff] %v7572_v9  ;;  %vm4878_vm4 = vcmp.lt.f32.partialorder %v7575_v6, 0.0004427343  ;;  %v7581_v2 = vmov 0  ;;  %v7584_v29 = vand.u32 2147483647, %v4469_v25  ;;  %v4902_v6 = vmul.f32 %v4497_v22, %v1026_v57  ;;  %v3001_v22 = vpop.eup %3000 }
 0x1a8   : > { %v7577_v46 = vsel %vm4878_vm4, 4294967295, %v7576_v46  ;;  %7579 = vst [vmem:[#allocation95_spill] sm:$0xff] %v4887_v12  ;;  %vm4891_vm5 = vcmp.lt.f32.partialorder %v7580_v17, 0.0004427343  ;;  %v7585_v13 = vmov 0  ;;  %v7591_v51 = vmov 0  ;;  %v3003_v55 = vpop.eup %3002 }
 0x1a9   : > { %7578 = vst [vmem:[#allocation94_spill] sm:$0xff] %v7577_v46  ;;  %v7582_v2 = vsel %vm4891_vm5, 4294967295, %v7581_v2  ;;  %vm4897_vm2 = vcmp.lt.f32.partialorder %v7584_v29, 0.0004427343  ;;  %7588 = vst [vmem:[#allocation98_spill] sm:$0xff] %v4902_v6  ;;  %3018 = vlog2.f32 %v1022_v16  ;;  %v1035_v43 = vadd.f32 1.0, %v1034_v37  ;;  %v3005_v30 = vpop.eup %3004 }
 0x1aa   : > { %7583 = vst [vmem:[#allocation96_spill] sm:$0xff] %v7582_v2  ;;  %v7586_v13 = vsel %vm4897_vm2, 4294967295, %v7585_v13  ;;  %v4912_v25 = vmul.f32 0.6931472, %v2997_v0  ;;  %v7590_v17 = vand.u32 2147483647, %v4477_v53  ;;  %3020 = vlog2.f32 %v1031_v38 }
 0x1ab   : > { %7587 = vst [vmem:[#allocation97_spill] sm:$0xff] %v7586_v13  ;;  %v4924_v28 = vmul.f32 0.6931472, %v2999_v23  ;;  %v4930_v0 = vmul.f32 0.6931472, %v3001_v22  ;;  %v7602_v23 = vmov 0  ;;  %v4972_v12 = vmul.f32 %v4507_v27, %v1035_v43 }
 0x1ac   : > { %7589 = vst [vmem:[#allocation99_spill] sm:$0xff] %v4912_v25  ;;  %vm4916_vm6 = vcmp.lt.f32.partialorder %v7590_v17, 0.0004427343  ;;  %v7597_v16 = vand.u32 2147483647, %v4486_v60  ;;  %v7598_v17 = vmov 0  ;;  %vm7786_vm3 = vnez %v7523_v45 }
 0x1ad   : > { %v7592_v51 = vsel %vm4916_vm6, 4294967295, %v7591_v51  ;;  %7595 = vst [vmem:[#allocation101_spill] sm:$0xff] %v4924_v28  ;;  %7596 = vst [vmem:[#allocation102_spill] sm:$0xff] %v4930_v0  ;;  %v7601_v29 = vand.u32 2147483647, %v4492_v20  ;;  %v7605_v38 = vmov 0 }
 0x1ae   : > { %7593 = vst [vmem:[#allocation100_spill] sm:$0xff] %v7592_v51  ;;  %vm4934_vm8 = vcmp.lt.f32.partialorder %v7597_v16, 0.0004427343  ;;  %vm4944_vm7 = vcmp.lt.f32.partialorder %v1028_v10, 0.0004427343  ;;  %v7608_v22 = vld [vmem:[#allocation45_spill] sm:$0xff]  ;;  %v3007_v10 = vpop.eup %3006 }
 0x1af   : > { %v7599_v17 = vsel %vm4934_vm8, 4294967295, %v7598_v17  ;;  %vm4940_vm9 = vcmp.lt.f32.partialorder %v7601_v29, 0.0004427343  ;;  %v7606_v38 = vsel %vm4944_vm7, 4294967295, %v7605_v38  ;;  %v1037_v37 = vand.u32 2147483647, %v4507_v27  ;;  %v3009_v26 = vpop.eup %3008 }
 0x1b0   : > { %7600 = vst [vmem:[#allocation103_spill] sm:$0xff] %v7599_v17  ;;  %v7603_v23 = vsel %vm4940_vm9, 4294967295, %v7602_v23  ;;  %7607 = vst [vmem:[#allocation105_spill] sm:$0xff] %v7606_v38  ;;  %v1040_v53 = vadd.f32 1.0, %v7608_v22  ;;  %v4954_v16 = vmul.f32 0.6931472, %v3003_v55  ;;  %v3011_v63 = vpop.eup %3010 }
 0x1b1   : > { %7604 = vst [vmem:[#allocation104_spill] sm:$0xff] %v7603_v23  ;;  %v1043_v20 = vmul.f32 -0.5, %v7608_v22  ;;  %v1046_v29 = vand.u32 2147483647, %v7608_v22  ;;  %v4962_v39 = vmul.f32 0.6931472, %v3005_v30  ;;  %v3013_v55 = vpop.eup %3012 }
 0x1b2   : > { %7609 = vst [vmem:[#allocation45_spill] sm:$0xff] %v4954_v16  ;;  %3022 = vlog2.f32 %v1040_v53  ;;  %v7611_v7 = vld [vmem:[#allocation46_spill] sm:$0xff]  ;;  %v4969_v60 = vmul.f32 0.6931472, %v3007_v10  ;;  %7613 = vst [vmem:[#allocation107_spill] sm:$0xff] %v4972_v12  ;;  %v7616_v25 = vmov 0 }
 0x1b3   : > { %7610 = vst [vmem:[#allocation106_spill] sm:$0xff] %v4962_v39  ;;  %v1049_v57 = vadd.f32 1.0, %v7611_v7  ;;  %v1044_v34 = vadd.f32 1.0, %v1043_v20  ;;  %v4978_v53 = vmul.f32 0.6931472, %v3009_v26  ;;  %v1052_v10 = vmul.f32 -0.5, %v7611_v7 }
 0x1b4   : > { %7612 = vst [vmem:[#allocation46_spill] sm:$0xff] %v4969_v60  ;;  %vm4980_vm12 = vcmp.lt.f32.partialorder %v1037_v37, 0.0004427343  ;;  %v4989_v43 = vmul.f32 0.6931472, %v3011_v63  ;;  %v7620_v20 = vmov 0  ;;  %v3015_v37 = vpop.eup %3014 }
 0x1b5   : > { %7615 = vst [vmem:[#allocation108_spill] sm:$0xff] %v4978_v53  ;;  %v7617_v25 = vsel %vm4980_vm12, 4294967295, %v7616_v25  ;;  %3024 = vlog2.f32 %v1049_v57  ;;  %vm4991_vm13 = vcmp.lt.f32.partialorder %v1046_v29, 0.0004427343  ;;  %v1055_v26 = vand.u32 2147483647, %v7611_v7  ;;  %v3017_v27 = vpop.eup %3016 }
 0x1b6   : > { %7618 = vst [vmem:[#allocation109_spill] sm:$0xff] %v7617_v25  ;;  %7619 = vst [vmem:[#allocation110_spill] sm:$0xff] %v4989_v43  ;;  %v7621_v20 = vsel %vm4991_vm13, 4294967295, %v7620_v20  ;;  %v5000_v0 = vmul.f32 0.6931472, %v3013_v55  ;;  %v1053_v5 = vadd.f32 1.0, %v1052_v10  ;;  %v5010_v1 = vmul.f32 %v7608_v22, %v1044_v34  ;;  %v3019_v9 = vpop.eup %3018 }
 0x1b7   : > { %7622 = vst [vmem:[#allocation111_spill] sm:$0xff] %v7621_v20  ;;  %v7625_v59 = vld [vmem:[#allocation47_spill] sm:$0xff]  ;;  %v5007_v16 = vmul.f32 0.6931472, %v3015_v37  ;;  %v5021_v46 = vmul.f32 0.6931472, %v3017_v27  ;;  %v3021_v37 = vpop.eup %3020 }
 0x1b8   : > { %7624 = vst [vmem:[#allocation112_spill] sm:$0xff] %v5000_v0  ;;  %v1058_v49 = vadd.f32 1.0, %v7625_v59  ;;  %7628 = vst [vmem:[#allocation113_spill] sm:$0xff] %v5010_v1  ;;  %v1061_v28 = vmul.f32 -0.5, %v7625_v59  ;;  %v5027_v22 = vmul.f32 0.6931472, %v3019_v9  ;;  %v5034_v53 = vmul.f32 %v7611_v7, %v1053_v5 }
 0x1b9   : > { %7627 = vst [vmem:[#allocation47_spill] sm:$0xff] %v5007_v16  ;;  %7631 = vst [vmem:[#allocation114_spill] sm:$0xff] %v5021_v46  ;;  %vm5029_vm4 = vcmp.lt.f32.partialorder %v1055_v26, 0.0004427343  ;;  %v7633_v29 = vmov 0  ;;  %v7637_v39 = vld [vmem:[#allocation48_spill] sm:$0xff] }
 0x1ba   : > { %3026 = vlog2.f32 %v1058_v49  ;;  %7632 = vst [vmem:[#allocation115_spill] sm:$0xff] %v5027_v22  ;;  %v7634_v29 = vsel %vm5029_vm4, 4294967295, %v7633_v29  ;;  %v1062_v10 = vadd.f32 1.0, %v1061_v28  ;;  %7636 = vst [vmem:[#allocation117_spill] sm:$0xff] %v5034_v53  ;;  %v1064_v27 = vand.u32 2147483647, %v7625_v59 }
 0x1bb   : > { %7635 = vst [vmem:[#allocation116_spill] sm:$0xff] %v7634_v29  ;;  %v1067_v49 = vadd.f32 1.0, %v7637_v39  ;;  %v1070_v43 = vmul.f32 -0.5, %v7637_v39  ;;  %v5051_v7 = vmul.f32 0.6931472, %v3021_v37  ;;  %v1076_v17 = vadd.f32 1.0, %v7639_v18 }
 0x1bc   : > { %v3023_v28 = vpop.eup %3022  ;;  %v1073_v0 = vand.u32 2147483647, %v7637_v39  ;;  %v5058_v16 = vmul.f32 %v7625_v59, %v1062_v10  ;;  %v1079_v26 = vmul.f32 -0.5, %v7639_v18  ;;  %v7642_v46 = vld [vmem:[#allocation50_spill] sm:$0xff]  ;;  %vm5062_vm7 = vcmp.lt.f32.partialorder %v1064_v27, 0.0004427343 }
 0x1bd   : > { %7638 = vst [vmem:[#allocation48_spill] sm:$0xff] %v5051_v7  ;;  %3028 = vlog2.f32 %v1067_v49  ;;  %v1071_v34 = vadd.f32 1.0, %v1070_v43  ;;  %v5055_v9 = vmul.f32 0.6931472, %v3023_v28  ;;  %v1085_v32 = vadd.f32 1.0, %v7642_v46  ;;  %v7651_v22 = vld [vmem:[#allocation51_spill] sm:$0xff] }
 0x1be   : > { %7641 = vst [vmem:[#allocation118_spill] sm:$0xff] %v5058_v16  ;;  %v7643_v37 = vmov 0  ;;  %3030 = vlog2.f32 %v1076_v17  ;;  %v1082_v43 = vand.u32 2147483647, %v7639_v18  ;;  %v1088_v49 = vmul.f32 -0.5, %v7642_v46  ;;  %v7658_v12 = vld [vmem:[#allocation53_spill] sm:$0xff] }
 0x1bf   : > { %7640 = vst [vmem:[#allocation49_spill] sm:$0xff] %v5055_v9  ;;  %v3025_v38 = vpop.eup %3024  ;;  %v7644_v37 = vsel %vm5062_vm7, 4294967295, %v7643_v37  ;;  %v1080_v28 = vadd.f32 1.0, %v1079_v26  ;;  %3032 = vlog2.f32 %v1085_v32  ;;  %v5079_v17 = vmul.f32 %v7637_v39, %v1071_v34  ;;  %v7655_v34 = vld [vmem:[#allocation52_spill] sm:$0xff]  ;;  %v7666_v53 = vld [vmem:[#allocation55_spill] sm:$0xff]  ;;  %v7683_v16 = vld [vmem:[#allocation58_spill] sm:$0xff] }
 0x1c0   : > { %7645 = vst [vmem:[#allocation50_spill] sm:$0xff] %v7644_v37  ;;  %v5072_v10 = vmul.f32 0.6931472, %v3025_v38  ;;  %vm5081_vm9 = vcmp.lt.f32.partialorder %v1073_v0, 0.0004427343  ;;  %v7648_v5 = vmov 0 }
 0x1c1   : > { %7647 = vst [vmem:[#allocation120_spill] sm:$0xff] %v5079_v17  ;;  %v7649_v5 = vsel %vm5081_vm9, 4294967295, %v7648_v5  ;;  %v1094_v6 = vadd.f32 1.0, %v7651_v22  ;;  %vm5086_vm8 = vcmp.lt.f32.partialorder %v1082_v43, 0.0004427343  ;;  %v7652_v59 = vmov 0 }
 0x1c2   : > { %7646 = vst [vmem:[#allocation119_spill] sm:$0xff] %v5072_v10  ;;  %7650 = vst [vmem:[#allocation121_spill] sm:$0xff] %v7649_v5  ;;  %v7653_v59 = vsel %vm5086_vm8, 4294967295, %v7652_v59  ;;  %v1089_v38 = vadd.f32 1.0, %v1088_v49  ;;  %v1091_v32 = vand.u32 2147483647, %v7642_v46  ;;  %v5101_v9 = vmul.f32 %v7639_v18, %v1080_v28 }
 0x1c3   : > { %7654 = vst [vmem:[#allocation51_spill] sm:$0xff] %v7653_v59  ;;  %v1097_v26 = vmul.f32 -0.5, %v7651_v22  ;;  %3034 = vlog2.f32 %v1094_v6  ;;  %v1100_v0 = vand.u32 2147483647, %v7651_v22  ;;  %v1103_v27 = vadd.f32 1.0, %v7655_v34  ;;  %v7673_v37 = vld [vmem:[#allocation56_spill] sm:$0xff] }
 0x1c4   : > { %v3027_v20 = vpop.eup %3026  ;;  %7657 = vst [vmem:[#allocation122_spill] sm:$0xff] %v5101_v9  ;;  %v1106_v1 = vmul.f32 -0.5, %v7655_v34  ;;  %v1109_v7 = vand.u32 2147483647, %v7655_v34  ;;  %v1112_v25 = vadd.f32 1.0, %v7658_v12  ;;  %v1115_v39 = vmul.f32 -0.5, %v7658_v12 }
 0x1c5   : > { %v5098_v43 = vmul.f32 0.6931472, %v3027_v20  ;;  %v1098_v49 = vadd.f32 1.0, %v1097_v26  ;;  %3036 = vlog2.f32 %v1103_v27  ;;  %v5108_v6 = vmul.f32 %v7642_v46, %v1089_v38  ;;  %v5343_v13 = vld [vmem:[%s4136_s26 + $0x50] sm:$0xff]  ;;  %v5358_v55 = vld [vmem:[%s4136_s26 + $0x60] sm:$0xff]  ;;  %v5375_v30 = vld [vmem:[%s4136_s26 + $0x78] sm:$0xff] }
 0x1c6   : > { %vm5110_vm4 = vcmp.lt.f32.partialorder %v1091_v32, 0.0004427343  ;;  %v7660_v10 = vmov 0  ;;  %v1107_v20 = vadd.f32 1.0, %v1106_v1  ;;  %v1118_v18 = vand.u32 2147483647, %v7658_v12 }
 0x1c7   : > { %7656 = vst [vmem:[#allocation52_spill] sm:$0xff] %v5098_v43  ;;  %7659 = vst [vmem:[#allocation53_spill] sm:$0xff] %v5108_v6  ;;  %v7661_v10 = vsel %vm5110_vm4, 4294967295, %v7660_v10  ;;  %v3029_v28 = vpop.eup %3028  ;;  %vm5115_vm13 = vcmp.lt.f32.partialorder %v1100_v0, 0.0004427343  ;;  %v7663_v26 = vmov 0  ;;  %3038 = vlog2.f32 %v1112_v25 }
 0x1c8   : > { %7662 = vst [vmem:[#allocation123_spill] sm:$0xff] %v7661_v10  ;;  %v7664_v26 = vsel %vm5115_vm13, 4294967295, %v7663_v26  ;;  %v1116_v27 = vadd.f32 1.0, %v1115_v39  ;;  %v1121_v29 = vadd.f32 1.0, %v7666_v53  ;;  %v5124_v38 = vmul.f32 0.6931472, %v3029_v28  ;;  %v3031_v0 = vpop.eup %3030 }
 0x1c9   : > { %7665 = vst [vmem:[#allocation124_spill] sm:$0xff] %v7664_v26  ;;  %v5127_v1 = vmul.f32 %v7651_v22, %v1098_v49  ;;  %v1124_v32 = vmul.f32 -0.5, %v7666_v53  ;;  %v5131_v23 = vmul.f32 %v7655_v34, %v1107_v20  ;;  %vm5133_vm12 = vcmp.lt.f32.partialorder %v1109_v7, 0.0004427343  ;;  %v3033_v28 = vpop.eup %3032  ;;  %v7704_v26 = vld [vmem:[#allocation63_spill] sm:$0xff]  ;;  %7737 = vst [vmem:[#allocation148_spill] sm:$0xff] %v5375_v30 }
 0x1ca   : > { %7667 = vst [vmem:[#allocation55_spill] sm:$0xff] %v5124_v38  ;;  %v7670_v25 = vmov 0  ;;  %3040 = vlog2.f32 %v1121_v29  ;;  %v1127_v39 = vand.u32 2147483647, %v7666_v53  ;;  %v1130_v46 = vadd.f32 1.0, %v7673_v37  ;;  %v7686_v38 = vld [vmem:[#allocation60_spill] sm:$0xff] }
 0x1cb   : > { %7668 = vst [vmem:[#allocation125_spill] sm:$0xff] %v5127_v1  ;;  %7669 = vst [vmem:[#allocation126_spill] sm:$0xff] %v5131_v23  ;;  %v7671_v25 = vsel %vm5133_vm12, 4294967295, %v7670_v25  ;;  %v5139_v43 = vmul.f32 0.6931472, %v3031_v0  ;;  %v7675_v22 = vmov 0  ;;  %v5149_v7 = vmul.f32 %v7658_v12, %v1116_v27 }
 0x1cc   : > { %7672 = vst [vmem:[#allocation127_spill] sm:$0xff] %v7671_v25  ;;  %vm5141_vm7 = vcmp.lt.f32.partialorder %v1118_v18, 0.0004427343  ;;  %v1125_v49 = vadd.f32 1.0, %v1124_v32  ;;  %v1133_v34 = vmul.f32 -0.5, %v7673_v37  ;;  %3042 = vlog2.f32 %v1130_v46  ;;  %v5339_v25 = vld [vmem:[%s4136_s26 + $0x48] sm:$0xff] }
 0x1cd   : > { %7674 = vst [vmem:[#allocation56_spill] sm:$0xff] %v5139_v43  ;;  %v7676_v22 = vsel %vm5141_vm7, 4294967295, %v7675_v22  ;;  %v5146_v20 = vmul.f32 0.6931472, %v3033_v28  ;;  %7679 = vst [vmem:[#allocation130_spill] sm:$0xff] %v5149_v7  ;;  %v7680_v18 = vmov 0  ;;  %v3035_v28 = vpop.eup %3034 }
 0x1ce   : > { %7677 = vst [vmem:[#allocation128_spill] sm:$0xff] %v7676_v22  ;;  %v1136_v29 = vand.u32 2147483647, %v7673_v37  ;;  %vm5156_vm6 = vcmp.lt.f32.partialorder %v1127_v39, 0.0004427343  ;;  %v1134_v32 = vadd.f32 1.0, %v1133_v34  ;;  %v5166_v27 = vmul.f32 %v7666_v53, %v1125_v49 }
 0x1cf   : > { %7678 = vst [vmem:[#allocation129_spill] sm:$0xff] %v5146_v20  ;;  %v7681_v18 = vsel %vm5156_vm6, 4294967295, %v7680_v18  ;;  %v1139_v61 = vadd.f32 1.0, %v7683_v16  ;;  %v1142_v46 = vmul.f32 -0.5, %v7683_v16  ;;  %v1145_v0 = vand.u32 2147483647, %v7683_v16  ;;  %v3037_v5 = vpop.eup %3036 }
 0x1d0   : > { %7682 = vst [vmem:[#allocation131_spill] sm:$0xff] %v7681_v18  ;;  %7684 = vst [vmem:[#allocation58_spill] sm:$0xff] %v5166_v27  ;;  %v5174_v34 = vmul.f32 0.6931472, %v3035_v28  ;;  %v1148_v17 = vadd.f32 1.0, %v7686_v38  ;;  %v7687_v12 = vmov 0  ;;  %v5186_v10 = vmul.f32 %v7673_v37, %v1134_v32 }
 0x1d1   : > { %3044 = vlog2.f32 %v1139_v61  ;;  %vm5177_vm9 = vcmp.lt.f32.partialorder %v1136_v29, 0.0004427343  ;;  %v1143_v53 = vadd.f32 1.0, %v1142_v46  ;;  %v1151_v49 = vmul.f32 -0.5, %v7686_v38  ;;  %v7692_v28 = vld [vmem:[#allocation61_spill] sm:$0xff]  ;;  %v3039_v39 = vpop.eup %3038  ;;  %v7701_v29 = vld [vmem:[#allocation62_spill] sm:$0xff] }
 0x1d2   : > { %7685 = vst [vmem:[#allocation132_spill] sm:$0xff] %v5174_v34  ;;  %v7688_v12 = vsel %vm5177_vm9, 4294967295, %v7687_v12  ;;  %v1154_v43 = vand.u32 2147483647, %v7686_v38  ;;  %v5183_v9 = vmul.f32 0.6931472, %v3037_v5  ;;  %3046 = vlog2.f32 %v1148_v17 }
 0x1d3   : > { %7689 = vst [vmem:[#allocation60_spill] sm:$0xff] %v7688_v12  ;;  %7691 = vst [vmem:[#allocation134_spill] sm:$0xff] %v5186_v10  ;;  %v1157_v61 = vadd.f32 1.0, %v7692_v28  ;;  %vm5193_vm4 = vcmp.lt.f32.partialorder %v1145_v0, 0.0004427343  ;;  %v7693_v46 = vmov 0  ;;  %v5201_v37 = vmul.f32 %v7683_v16, %v1143_v53 }
 0x1d4   : > { %7690 = vst [vmem:[#allocation133_spill] sm:$0xff] %v5183_v9  ;;  %v7694_v46 = vsel %vm5193_vm4, 4294967295, %v7693_v46  ;;  %v1152_v20 = vadd.f32 1.0, %v1151_v49  ;;  %v1160_v5 = vmul.f32 -0.5, %v7692_v28  ;;  %v5198_v6 = vmul.f32 0.6931472, %v3039_v39  ;;  %v3041_v32 = vpop.eup %3040 }
 0x1d5   : > { %7695 = vst [vmem:[#allocation61_spill] sm:$0xff] %v7694_v46  ;;  %7697 = vst [vmem:[#allocation136_spill] sm:$0xff] %v5201_v37  ;;  %3048 = vlog2.f32 %v1157_v61  ;;  %v1163_v17 = vand.u32 2147483647, %v7692_v28  ;;  %vm5204_vm8 = vcmp.lt.f32.partialorder %v1154_v43, 0.0004427343 }
 0x1d6   : > { %7696 = vst [vmem:[#allocation135_spill] sm:$0xff] %v5198_v6  ;;  %v7698_v59 = vmov 0  ;;  %v1161_v0 = vadd.f32 1.0, %v1160_v5  ;;  %v1166_v34 = vadd.f32 1.0, %v7701_v29  ;;  %v1169_v49 = vmul.f32 -0.5, %v7701_v29  ;;  %v3043_v61 = vpop.eup %3042  ;;  %v5287_v10 = vld [vmem:[%s4136_s26 + $0x10] sm:$0xff] }
 0x1d7   : > { %v7699_v59 = vsel %vm5204_vm8, 4294967295, %v7698_v59  ;;  %v5214_v16 = vmul.f32 0.6931472, %v3041_v32  ;;  %v5217_v53 = vmul.f32 %v7686_v38, %v1152_v20  ;;  %v1172_v43 = vand.u32 2147483647, %v7701_v29  ;;  %v5301_v46 = vld [vmem:[%s4136_s26 + $0x18] sm:$0xff] }
 0x1d8   : > { %7700 = vst [vmem:[#allocation137_spill] sm:$0xff] %v7699_v59  ;;  %3050 = vlog2.f32 %v1166_v34  ;;  %v1170_v1 = vadd.f32 1.0, %v1169_v49  ;;  %v1175_v51 = vadd.f32 1.0, %v7704_v26  ;;  %v5225_v57 = vmul.f32 0.6931472, %v3043_v61  ;;  %v7710_v49 = vld [vmem:[#allocation66_spill] sm:$0xff] }
 0x1d9   : > { %7702 = vst [vmem:[#allocation62_spill] sm:$0xff] %v5214_v16  ;;  %7703 = vst [vmem:[#allocation138_spill] sm:$0xff] %v5217_v53  ;;  %v5228_v32 = vmul.f32 %v7692_v28, %v1161_v0  ;;  %vm5230_vm12 = vcmp.lt.f32.partialorder %v1163_v17, 0.0004427343  ;;  %v7707_v38 = vmov 0  ;;  %v1178_v20 = vmul.f32 -0.5, %v7704_v26 }
 0x1da   : > { %7705 = vst [vmem:[#allocation63_spill] sm:$0xff] %v5225_v57  ;;  %v7708_v38 = vsel %vm5230_vm12, 4294967295, %v7707_v38  ;;  %3052 = vlog2.f32 %v1175_v51  ;;  %v1181_v34 = vand.u32 2147483647, %v7704_v26  ;;  %v1184_v61 = vadd.f32 1.0, %v7710_v49  ;;  %v7716_v16 = vld [vmem:[#allocation67_spill] sm:$0xff] }
 0x1db   : > { %7706 = vst [vmem:[#allocation139_spill] sm:$0xff] %v5228_v32  ;;  %7709 = vst [vmem:[#allocation140_spill] sm:$0xff] %v7708_v38  ;;  %v3045_v39 = vpop.eup %3044  ;;  %v5242_v28 = vmul.f32 %v7701_v29, %v1170_v1  ;;  %vm5244_vm7 = vcmp.lt.f32.partialorder %v1172_v43, 0.0004427343  ;;  %v7712_v17 = vmov 0  ;;  %v1179_v0 = vadd.f32 1.0, %v1178_v20 }
 0x1dc   : > { %v7713_v17 = vsel %vm5244_vm7, 4294967295, %v7712_v17  ;;  %v1187_v6 = vmul.f32 -0.5, %v7710_v49  ;;  %v1190_v7 = vand.u32 2147483647, %v7710_v49  ;;  %v5254_v5 = vmul.f32 0.6931472, %v3045_v39  ;;  %v3047_v29 = vpop.eup %3046 }
 0x1dd   : > { %7711 = vst [vmem:[#allocation66_spill] sm:$0xff] %v5242_v28  ;;  %7714 = vst [vmem:[#allocation141_spill] sm:$0xff] %v7713_v17  ;;  %3054 = vlog2.f32 %v1184_v61  ;;  %v1193_v1 = vadd.f32 1.0, %v7716_v16  ;;  %v5258_v43 = vmul.f32 %v7704_v26, %v1179_v0  ;;  %vm5260_vm6 = vcmp.lt.f32.partialorder %v1181_v34, 0.0004427343  ;;  %v7725_v0 = vld [vmem:[#allocation68_spill] sm:$0xff] }
 0x1de   : > { %7715 = vst [vmem:[#allocation142_spill] sm:$0xff] %v5254_v5  ;;  %v7718_v20 = vmov 0  ;;  %v1188_v27 = vadd.f32 1.0, %v1187_v6  ;;  %v1196_v12 = vmul.f32 -0.5, %v7716_v16  ;;  %v5265_v51 = vmul.f32 0.6931472, %v3047_v29 }
 0x1df   : > { %7717 = vst [vmem:[#allocation67_spill] sm:$0xff] %v5258_v43  ;;  %v7719_v20 = vsel %vm5260_vm6, 4294967295, %v7718_v20  ;;  %vm5267_vm9 = vcmp.lt.f32.partialorder %v1190_v7, 0.0004427343  ;;  %v7722_v39 = vmov 0  ;;  %3056 = vlog2.f32 %v1193_v1  ;;  %v3049_v26 = vpop.eup %3048  ;;  %v5279_v7 = vld [vmem:[%s4136_s26] sm:$0xff] }
 0x1e0   : > { %7720 = vst [vmem:[#allocation143_spill] sm:$0xff] %v7719_v20  ;;  %7721 = vst [vmem:[#allocation144_spill] sm:$0xff] %v5265_v51  ;;  %v7723_v39 = vsel %vm5267_vm9, 4294967295, %v7722_v39  ;;  %v1199_v61 = vand.u32 2147483647, %v7716_v16  ;;  %v1197_v6 = vadd.f32 1.0, %v1196_v12  ;;  %v5297_v5 = vmul.f32 %v7710_v49, %v1188_v27 }
 0x1e1   : > { %7724 = vst [vmem:[#allocation145_spill] sm:$0xff] %v7723_v39  ;;  %v1202_v57 = vadd.f32 1.0, %v7725_v0  ;;  %v1205_v29 = vmul.f32 -0.5, %v7725_v0  ;;  %v5283_v1 = vld [vmem:[%s4136_s26 + $0x8] sm:$0xff]  ;;  %v5294_v34 = vmul.f32 0.6931472, %v3049_v26  ;;  %vm7769_vm7 = vnez %v7509_v33 }
 0x1e2   : > { %7727 = vst [vmem:[#allocation146_spill] sm:$0xff] %v5297_v5  ;;  %v1208_v37 = vand.u32 2147483647, %v7725_v0  ;;  %v5305_v18 = vld [vmem:[%s4136_s26 + $0x20] sm:$0xff]  ;;  %vm5308_vm13 = vcmp.lt.f32.partialorder %v1199_v61, 0.0004427343  ;;  %v3051_v12 = vpop.eup %3050 }
 0x1e3   : > { %7726 = vst [vmem:[#allocation68_spill] sm:$0xff] %v5294_v34  ;;  %3058 = vlog2.f32 %v1202_v57  ;;  %v1206_v26 = vadd.f32 1.0, %v1205_v29  ;;  %v7730_v27 = vld [vmem:[#allocation70_spill] sm:$0xff]  ;;  %v5318_v53 = vld [vmem:[%s4136_s26 + $0x30] sm:$0xff]  ;;  %v5322_v22 = vld [vmem:[%s4136_s26 + $0x38] sm:$0xff]  ;;  %v5334_v29 = vmul.f32 %v7716_v16, %v1197_v6  ;;  %vm7764_vm8 = vcmp.gt.f32.partialorder %v5279_v7, 20.0 }
 0x1e4   : > { %v1211_v49 = vadd.f32 1.0, %v7730_v27  ;;  %v5314_v51 = vld [vmem:[%s4136_s26 + $0x28] sm:$0xff]  ;;  %v5326_v57 = vld [vmem:[%s4136_s26 + $0x40] sm:$0xff]  ;;  %v1214_v9 = vmul.f32 -0.5, %v7730_v27  ;;  %v1217_v23 = vand.u32 2147483647, %v7730_v27  ;;  %v3053_v34 = vpop.eup %3052 }
 0x1e5   : > { %v5346_v38 = vmul.f32 0.6931472, %v3051_v12  ;;  %vm5348_vm2 = vcmp.lt.f32.partialorder %v1208_v37, 0.0004427343  ;;  %v7734_v16 = vld [vmem:[#allocation71_spill] sm:$0xff]  ;;  %v5354_v32 = vld [vmem:[%s4136_s26 + $0x58] sm:$0xff] }
 0x1e6   : > { %3060 = vlog2.f32 %v1211_v49  ;;  %v1220_v6 = vadd.f32 1.0, %v7734_v16  ;;  %v5362_v12 = vld [vmem:[%s4136_s26 + $0x68] sm:$0xff]  ;;  %v5366_v37 = vld [vmem:[%s4136_s26 + $0x70] sm:$0xff]  ;;  %v5370_v49 = vmul.f32 %v7725_v0, %v1206_v26  ;;  %v1215_v2 = vadd.f32 1.0, %v1214_v9  ;;  %v7743_v9 = vld [vmem:[#allocation73_spill] sm:$0xff] }
 0x1e7   : > { %7731 = vst [vmem:[#allocation70_spill] sm:$0xff] %v5346_v38  ;;  %7735 = vst [vmem:[#allocation71_spill] sm:$0xff] %v5362_v12  ;;  %v1223_v60 = vmul.f32 -0.5, %v7734_v16  ;;  %v1226_v63 = vand.u32 2147483647, %v7734_v16  ;;  %v5379_v12 = vld [vmem:[%s4136_s26 + $0x80] sm:$0xff]  ;;  %v3055_v14 = vpop.eup %3054 }
 0x1e8   : > { %7736 = vst [vmem:[#allocation147_spill] sm:$0xff] %v5366_v37  ;;  %7738 = vst [vmem:[#allocation149_spill] sm:$0xff] %v5379_v12  ;;  %v5382_v37 = vmul.f32 0.6931472, %v3053_v34  ;;  %vm5384_vm12 = vcmp.lt.f32.partialorder %v1217_v23, 0.0004427343  ;;  %3062 = vlog2.f32 %v1220_v6 }
 0x1e9   : > { %v7740_v0 = vmov 0  ;;  %v1229_v26 = vadd.f32 1.0, %v7743_v9  ;;  %v5390_v47 = vld [vmem:[%s4136_s26 + $0x88] sm:$0xff]  ;;  %v5394_v30 = vld [vmem:[%s4136_s26 + $0x90] sm:$0xff]  ;;  %v5398_v34 = vld [vmem:[%s4136_s26 + $0x98] sm:$0xff]  ;;  %v1232_v12 = vmul.f32 -0.5, %v7743_v9 }
 0x1ea   : > { %7739 = vst [vmem:[#allocation150_spill] sm:$0xff] %v5382_v37  ;;  %v7741_v0 = vsel %vm5384_vm12, 4294967295, %v7740_v0  ;;  %7744 = vst [vmem:[#allocation73_spill] sm:$0xff] %v5390_v47  ;;  %v5402_v23 = vld [vmem:[%s4136_s26 + $0xa0] sm:$0xff]  ;;  %v5410_v47 = vmul.f32 %v7730_v27, %v1215_v2  ;;  %vm5423_vm4 = vcmp.lt.f32.partialorder %v1226_v63, 0.0004427343 }
 0x1eb   : > { %7742 = vst [vmem:[#allocation151_spill] sm:$0xff] %v7741_v0  ;;  %7745 = vst [vmem:[#allocation152_spill] sm:$0xff] %v5394_v30  ;;  %v1224_v30 = vadd.f32 1.0, %v1223_v60  ;;  %v5418_v0 = vld [vmem:[%s4136_s26 + $0xb0] sm:$0xff]  ;;  %3064 = vlog2.f32 %v1229_v26  ;;  %v1235_v2 = vand.u32 2147483647, %v7743_v9  ;;  %v3057_v60 = vpop.eup %3056 }
 0x1ec   : > { %7746 = vst [vmem:[#allocation153_spill] sm:$0xff] %v5398_v34  ;;  %7747 = vst [vmem:[#allocation154_spill] sm:$0xff] %v5402_v23  ;;  %v5414_v34 = vld [vmem:[%s4136_s26 + $0xa8] sm:$0xff]  ;;  %v5421_v23 = vmul.f32 0.6931472, %v3055_v14  ;;  %v5429_v27 = vld [vmem:[%s4136_s26 + $0xb8] sm:$0xff] }
 0x1ed   : > { %7748 = vst [vmem:[#allocation155_spill] sm:$0xff] %v5418_v0  ;;  %7752 = vst [vmem:[#allocation157_spill] sm:$0xff] %v5429_v27  ;;  %v5433_v38 = vld [vmem:[%s4136_s26 + $0xc0] sm:$0xff]  ;;  %v5437_v14 = vld [vmem:[%s4136_s26 + $0xc8] sm:$0xff]  ;;  %v1233_v28 = vadd.f32 1.0, %v1232_v12  ;;  %v5469_v37 = vmul.f32 %v7734_v16, %v1224_v30  ;;  %v3059_v12 = vpop.eup %3058  ;;  %vm7767_vm9 = vcmp.gt.f32.partialorder %v5283_v1, 20.0 }
 0x1ee   : > { %7749 = vst [vmem:[#allocation156_spill] sm:$0xff] %v5421_v23  ;;  %7753 = vst [vmem:[#allocation158_spill] sm:$0xff] %v5433_v38  ;;  %v5441_v63 = vld [vmem:[%s4136_s26 + $0xd0] sm:$0xff]  ;;  %v5451_v0 = vld [vmem:[%s4136_s26 + $0xd8] sm:$0xff]  ;;  %v5466_v26 = vmul.f32 0.6931472, %v3057_v60 }
 0x1ef   : > { %7754 = vst [vmem:[#allocation159_spill] sm:$0xff] %v5437_v14  ;;  %7755 = vst [vmem:[#allocation160_spill] sm:$0xff] %v5441_v63  ;;  %v7756_v17 = vld [vmem:[#allocation75_spill] sm:$0xff]  ;;  %v5455_v14 = vld [vmem:[%s4136_s26 + $0xe0] sm:$0xff]  ;;  %v5485_v60 = vmul.f32 %v7743_v9, %v1233_v28  ;;  %vm5487_vm5 = vcmp.lt.f32.partialorder %v1235_v2, 0.0004427343 }
 0x1f0   : > { %v1238_v27 = vadd.f32 1.0, %v7756_v17  ;;  %v1241_v38 = vmul.f32 -0.5, %v7756_v17  ;;  %v5459_v63 = vld [vmem:[%s4136_s26 + $0xe8] sm:$0xff]  ;;  %v1244_v43 = vand.u32 2147483647, %v7756_v17  ;;  %v5473_v20 = vld [vmem:[%s4136_s26 + $0xf0] sm:$0xff] }
 0x1f1   : > { %7757 = vst [vmem:[#allocation75_spill] sm:$0xff] %v5459_v63  ;;  %v5477_v63 = vld [vmem:[%s4136_s26 + $0xf8] sm:$0xff]  ;;  %v5481_v39 = vld [vmem:[%s4136_s26 + $0x100] sm:$0xff]  ;;  %v5492_v23 = vld [vmem:[%s4136_s26 + $0x108] sm:$0xff] }
 0x1f2   : > { %3066 = vlog2.f32 %v1238_v27  ;;  %v1242_v16 = vadd.f32 1.0, %v1241_v38  ;;  %v5496_v5 = vld [vmem:[%s4136_s26 + $0x110] sm:$0xff]  ;;  %v5500_v28 = vld [vmem:[%s4136_s26 + $0x118] sm:$0xff]  ;;  %v5504_v9 = vld [vmem:[%s4136_s26 + $0x120] sm:$0xff] }
 0x1f3   : > { %7760 = vst [vmem:[#allocation161_spill] sm:$0xff] %v5496_v5  ;;  %7761 = vst [vmem:[#allocation162_spill] sm:$0xff] %v5504_v9  ;;  %v7762_v2 = vld [vmem:[#allocation79_spill] sm:$0xff]  ;;  %v7766_v9 = vsel %vm4663_vm1, %v4480_v36, %v4748_v4  ;;  %v5550_v33 = vld [vmem:[%s4136_s26 + $0x138] sm:$0xff]  ;;  %v5553_v4 = vmul.f32 0.6931472, %v3059_v12 }
 0x1f4   : > { %v7763_v27 = vsel %vm4657_vm0, %v4472_v44, %v7762_v2  ;;  %v5529_v38 = vsel %vm7767_vm9, %v5283_v1, %v7766_v9  ;;  %v7771_v44 = vld [vmem:[#allocation81_spill] sm:$0xff]  ;;  %vm7773_vm0 = vcmp.gt.f32.partialorder %v5287_v10, 20.0  ;;  %v5546_v36 = vld [vmem:[%s4136_s26 + $0x130] sm:$0xff]  ;;  %v5556_v1 = vmul.f32 %v7756_v17, %v1242_v16  ;;  %v7782_v17 = vld [vmem:[#allocation86_spill] sm:$0xff] }
 0x1f5   : > { %v5519_v5 = vsel %vm7764_vm8, %v5279_v7, %v7763_v27  ;;  %7768 = vst [vmem:[#allocation163_spill] sm:$0xff] %v5529_v38  ;;  %v7772_v2 = vsel %vm7769_vm7, %v7770_v54, %v7771_v44  ;;  %vm5558_vm9 = vcmp.lt.f32.partialorder %v1244_v43, 0.0004427343  ;;  %vm7779_vm8 = vcmp.gt.f32.partialorder %v5301_v46, 20.0  ;;  %v5583_v16 = vld [vmem:[%s4136_s26 + $0x140] sm:$0xff]  ;;  %v7951_v30 = vld [vmem:[#allocation51_spill] sm:$0xff] }
 0x1f6   : > { %7765 = vst [vmem:[#allocation79_spill] sm:$0xff] %v5519_v5  ;;  %v5539_v7 = vsel %vm7773_vm0, %v5287_v10, %v7772_v2  ;;  %vm7777_vm0 = vnez %v7513_v31  ;;  %vm7781_vm7 = vnez %v7520_v58  ;;  %vm7784_vm1 = vcmp.gt.f32.partialorder %v5305_v18, 20.0  ;;  %v3061_v31 = vpop.eup %3060  ;;  %v5591_v58 = vld [vmem:[%s4136_s26 + $0x150] sm:$0xff]  ;;  %v7905_v6 = vld [vmem:[#allocation105_spill] sm:$0xff] }
 0x1f7   : > { %7774 = vst [vmem:[#allocation44_spill] sm:$0xff] %v5539_v7  ;;  %v7778_v9 = vsel %vm7777_vm0, %v4501_v52, %v4776_v48  ;;  %v7783_v12 = vsel %vm7781_vm7, %v4518_v56, %v7782_v17  ;;  %v5587_v52 = vld [vmem:[%s4136_s26 + $0x148] sm:$0xff]  ;;  %v5595_v56 = vld [vmem:[%s4136_s26 + $0x158] sm:$0xff]  ;;  %v7787_v48 = vsel %vm7786_vm3, %v4526_v62, %v4820_v40  ;;  %vm7788_vm0 = vcmp.gt.f32.partialorder %v5314_v51, 20.0  ;;  %v6061_v59 = vld [vmem:[%s4138_s14 + $0x70] sm:$0xff] }
 0x1f8   : > { %v5570_v27 = vsel %vm7779_vm8, %v5301_v46, %v7778_v9  ;;  %v5580_v43 = vsel %vm7784_vm1, %v5305_v18, %v7783_v12  ;;  %v5606_v18 = vsel %vm7788_vm0, %v5314_v51, %v7787_v48  ;;  %v7790_v46 = vld [vmem:[#allocation77_spill] sm:$0xff]  ;;  %vm7793_vm7 = vcmp.gt.f32.partialorder %v5318_v53, 20.0  ;;  %v7818_v48 = vld [vmem:[#allocation95_spill] sm:$0xff] }
 0x1f9   : > { %7780 = vst [vmem:[#allocation81_spill] sm:$0xff] %v5570_v27  ;;  %7785 = vst [vmem:[#allocation86_spill] sm:$0xff] %v5580_v43  ;;  %vm7791_vm8 = vnez %v7790_v46  ;;  %vm7795_vm1 = vnez %v7533_v19  ;;  %vm7797_vm3 = vcmp.gt.f32.partialorder %v5322_v22, 20.0  ;;  %vm7799_vm0 = vnez %v7536_v50  ;;  %v5647_v19 = vld [vmem:[%s4136_s26 + $0x170] sm:$0xff]  ;;  %v5651_v50 = vld [vmem:[%s4136_s26 + $0x178] sm:$0xff] }
 0x1fa   : > { %7789 = vst [vmem:[#allocation164_spill] sm:$0xff] %v5606_v18  ;;  %v7792_v54 = vsel %vm7791_vm8, %v4540_v3, %v4836_v41  ;;  %v7796_v62 = vsel %vm7795_vm1, %v4557_v8, %v4845_v21  ;;  %v7800_v3 = vsel %vm7799_vm0, %v4560_v24, %v4847_v42  ;;  %vm7801_vm8 = vcmp.gt.f32.partialorder %v5326_v57, 20.0  ;;  %v5639_v41 = vld [vmem:[%s4136_s26 + $0x160] sm:$0xff]  ;;  %v5643_v8 = vld [vmem:[%s4136_s26 + $0x168] sm:$0xff] }
 0x1fb   : > { %v5616_v44 = vsel %vm7793_vm7, %v5318_v53, %v7792_v54  ;;  %v5626_v45 = vsel %vm7797_vm3, %v5322_v22, %v7796_v62  ;;  %v5636_v40 = vsel %vm7801_vm8, %v5326_v57, %v7800_v3  ;;  %vm667_vm7 = vcmp.gt.f32.partialorder %v5639_v41, 20.0  ;;  %v7803_v21 = vld [vmem:[#allocation82_spill] sm:$0xff]  ;;  %v7806_v53 = vld [vmem:[#allocation91_spill] sm:$0xff]  ;;  %v7811_v9 = vld [vmem:[#allocation57_spill] sm:$0xff] }
 0x1fc   : > { %7794 = vst [vmem:[#allocation77_spill] sm:$0xff] %v5616_v44  ;;  %7798 = vst [vmem:[#allocation165_spill] sm:$0xff] %v5626_v45  ;;  %vm669_vm3 = vcmp.gt.f32.partialorder %v5647_v19, 20.0  ;;  %vm670_vm0 = vcmp.gt.f32.partialorder %v5651_v50, 20.0  ;;  %v1210_v24 = vsel %vm5348_vm2, %v5370_v49, %v5553_v4  ;;  %v5658_v42 = vmul.f32 0.6931472, %v3061_v31  ;;  %v3063_v49 = vpop.eup %3062 }
 0x1fd   : > { %7802 = vst [vmem:[#allocation166_spill] sm:$0xff] %v5636_v40  ;;  %vm7804_vm8 = vnez %v7803_v21  ;;  %v7805_v22 = vld [vmem:[#allocation54_spill] sm:$0xff]  ;;  %vm7808_vm1 = vcmp.gt.f32.partialorder %v5339_v25, 20.0  ;;  %v7812_v17 = vld [vmem:[#allocation93_spill] sm:$0xff]  ;;  %vm7814_vm2 = vcmp.gt.f32.partialorder %v5343_v13, 20.0  ;;  %v7817_v31 = vld [vmem:[#allocation59_spill] sm:$0xff] }
 0x1fe   : > { %v7807_v51 = vsel %vm7804_vm8, %v7805_v22, %v7806_v53  ;;  %v7813_v12 = vsel %vm4780_vm10, %v7811_v9, %v7812_v17  ;;  %v7819_v46 = vsel %vm4789_vm11, %v7817_v31, %v7818_v48  ;;  %vm7822_vm8 = vnez %v7555_v15  ;;  %v7823_v54 = vld [vmem:[#allocation99_spill] sm:$0xff]  ;;  %v7829_v21 = vld [vmem:[#allocation64_spill] sm:$0xff]  ;;  %v7830_v22 = vld [vmem:[#allocation101_spill] sm:$0xff] }
 0x1ff   : > { %v5668_v57 = vsel %vm7808_vm1, %v5339_v25, %v7807_v51  ;;  %v5678_v61 = vsel %vm7814_vm2, %v5343_v13, %v7813_v12  ;;  %vm7820_vm1 = vcmp.gt.f32.partialorder %v5354_v32, 20.0  ;;  %v7824_v62 = vsel %vm7822_vm8, %v4618_v35, %v7823_v54  ;;  %v7827_v3 = vld [vmem:[#allocation87_spill] sm:$0xff]  ;;  %v7836_v15 = vld [vmem:[#allocation65_spill] sm:$0xff]  ;;  %v7837_v9 = vld [vmem:[#allocation102_spill] sm:$0xff] }
 0x200   : > { %7809 = vst [vmem:[#allocation82_spill] sm:$0xff] %v5668_v57  ;;  %7815 = vst [vmem:[#allocation54_spill] sm:$0xff] %v5678_v61  ;;  %v5688_v25 = vsel %vm7820_vm1, %v5354_v32, %v7819_v46  ;;  %vm7825_vm10 = vcmp.gt.f32.partialorder %v5358_v55, 20.0  ;;  %vm7828_vm2 = vnez %v7827_v3  ;;  %v7832_v51 = vld [vmem:[#allocation71_spill] sm:$0xff]  ;;  %v7838_v35 = vsel %vm4840_vm14, %v7836_v15, %v7837_v9  ;;  %v7844_v46 = vld [vmem:[#allocation69_spill] sm:$0xff] }
 0x201   : > { %7821 = vst [vmem:[#allocation91_spill] sm:$0xff] %v5688_v25  ;;  %v5698_v13 = vsel %vm7825_vm10, %v5358_v55, %v7824_v62  ;;  %v7831_v53 = vsel %vm7828_vm2, %v7829_v21, %v7830_v22  ;;  %vm7833_vm11 = vcmp.gt.f32.partialorder %v7832_v51, 20.0  ;;  %v7839_v17 = vld [vmem:[#allocation147_spill] sm:$0xff]  ;;  %v1219_v4 = vsel %vm5384_vm12, %v5410_v47, %v5658_v42  ;;  %v7845_v54 = vld [vmem:[#allocation45_spill] sm:$0xff]  ;;  %v7847_v3 = vld [vmem:[#allocation148_spill] sm:$0xff]  ;;  %v3065_v42 = vpop.eup %3064 }
 0x202   : > { %7826 = vst [vmem:[#allocation83_spill] sm:$0xff] %v5698_v13  ;;  %v5708_v32 = vsel %vm7833_vm11, %v7832_v51, %v7831_v53  ;;  %vm7840_vm1 = vcmp.gt.f32.partialorder %v7839_v17, 20.0  ;;  %v1222_v31 = vmul.f32 0.6931472, %v3063_v49  ;;  %v7846_v62 = vsel %vm4851_vm15, %v7844_v46, %v7845_v54  ;;  %v7850_v22 = vld [vmem:[#allocation92_spill] sm:$0xff]  ;;  %v7853_v51 = vld [vmem:[#allocation106_spill] sm:$0xff] }
 0x203   : > { %7834 = vst [vmem:[#allocation57_spill] sm:$0xff] %v5708_v32  ;;  %v5718_v55 = vsel %vm7840_vm1, %v7839_v17, %v7838_v35  ;;  %vm7848_vm8 = vcmp.gt.f32.partialorder %v7847_v3, 20.0  ;;  %vm7851_vm14 = vnez %v7850_v22  ;;  %v7852_v53 = vld [vmem:[#allocation72_spill] sm:$0xff]  ;;  %v7855_v15 = vld [vmem:[#allocation149_spill] sm:$0xff]  ;;  %v7858_v49 = vld [vmem:[#allocation94_spill] sm:$0xff] }
 0x204   : > { %7841 = vst [vmem:[#allocation93_spill] sm:$0xff] %v5718_v55  ;;  %v5732_v21 = vsel %vm7848_vm8, %v7847_v3, %v7846_v62  ;;  %v7854_v2 = vsel %vm7851_vm14, %v7852_v53, %v7853_v51  ;;  %vm7856_vm10 = vcmp.gt.f32.partialorder %v7855_v15, 20.0  ;;  %vm7859_vm12 = vnez %v7858_v49  ;;  %v7860_v9 = vld [vmem:[#allocation74_spill] sm:$0xff]  ;;  %v7863_v12 = vld [vmem:[#allocation73_spill] sm:$0xff]  ;;  %v7866_v46 = vld [vmem:[#allocation96_spill] sm:$0xff] }
 0x205   : > { %7849 = vst [vmem:[#allocation84_spill] sm:$0xff] %v5732_v21  ;;  %v5742_v47 = vsel %vm7856_vm10, %v7855_v15, %v7854_v2  ;;  %v7861_v35 = vld [vmem:[#allocation46_spill] sm:$0xff]  ;;  %vm7864_vm15 = vcmp.gt.f32.partialorder %v7863_v12, 20.0  ;;  %vm7867_vm2 = vnez %v7866_v46  ;;  %v7868_v54 = vld [vmem:[#allocation76_spill] sm:$0xff]  ;;  %v7874_v51 = vld [vmem:[#allocation97_spill] sm:$0xff] }
 0x206   : > { %7857 = vst [vmem:[#allocation59_spill] sm:$0xff] %v5742_v47  ;;  %v7862_v17 = vsel %vm7859_vm12, %v7860_v9, %v7861_v35  ;;  %v7869_v62 = vld [vmem:[#allocation108_spill] sm:$0xff]  ;;  %vm7875_vm1 = vnez %v7874_v51  ;;  %v7876_v2 = vld [vmem:[#allocation78_spill] sm:$0xff]  ;;  %v7879_v9 = vld [vmem:[#allocation153_spill] sm:$0xff]  ;;  %v1231_v51 = vmul.f32 0.6931472, %v3065_v42 }
 0x207   : > { %v5752_v48 = vsel %vm7864_vm15, %v7863_v12, %v7862_v17  ;;  %v7870_v3 = vsel %vm7867_vm2, %v7868_v54, %v7869_v62  ;;  %v7871_v22 = vld [vmem:[#allocation152_spill] sm:$0xff]  ;;  %v7877_v15 = vld [vmem:[#allocation110_spill] sm:$0xff]  ;;  %vm7880_vm8 = vcmp.gt.f32.partialorder %v7879_v9, 20.0  ;;  %vm7895_vm15 = vcmp.gt.f32.partialorder %v5414_v34, 20.0  ;;  %v7908_v42 = vld [vmem:[#allocation115_spill] sm:$0xff] }
 0x208   : > { %7865 = vst [vmem:[#allocation95_spill] sm:$0xff] %v5752_v48  ;;  %vm7872_vm11 = vcmp.gt.f32.partialorder %v7871_v22, 20.0  ;;  %v7878_v49 = vsel %vm7875_vm1, %v7876_v2, %v7877_v15  ;;  %v7882_v17 = vld [vmem:[#allocation100_spill] sm:$0xff]  ;;  %v7887_v62 = vld [vmem:[#allocation154_spill] sm:$0xff]  ;;  %v7890_v2 = vld [vmem:[#allocation103_spill] sm:$0xff] }
 0x209   : > { %v5762_v53 = vsel %vm7872_vm11, %v7871_v22, %v7870_v3  ;;  %v5772_v35 = vsel %vm7880_vm8, %v7879_v9, %v7878_v49  ;;  %vm7883_vm14 = vnez %v7882_v17  ;;  %v7884_v12 = vld [vmem:[#allocation80_spill] sm:$0xff]  ;;  %vm7888_vm10 = vcmp.gt.f32.partialorder %v7887_v62, 20.0  ;;  %v7892_v15 = vld [vmem:[#allocation85_spill] sm:$0xff]  ;;  %v7893_v49 = vld [vmem:[#allocation47_spill] sm:$0xff] }
 0x20a   : > { %7873 = vst [vmem:[#allocation99_spill] sm:$0xff] %v5762_v53  ;;  %7881 = vst [vmem:[#allocation87_spill] sm:$0xff] %v5772_v35  ;;  %v7885_v46 = vld [vmem:[#allocation112_spill] sm:$0xff]  ;;  %v1228_v22 = vsel %vm5423_vm4, %v5469_v37, %v1222_v31  ;;  %vm7891_vm12 = vnez %v7890_v2  ;;  %vm7906_vm11 = vnez %v7905_v6  ;;  %v7907_v31 = vld [vmem:[#allocation98_spill] sm:$0xff] }
 0x20b   : > { %v7886_v54 = vsel %vm7883_vm14, %v7884_v12, %v7885_v46  ;;  %v7894_v9 = vsel %vm7891_vm12, %v7892_v15, %v7893_v49  ;;  %v7897_v12 = vld [vmem:[#allocation104_spill] sm:$0xff]  ;;  %v7909_v2 = vsel %vm7906_vm11, %v7907_v31, %v7908_v42  ;;  %v7910_v15 = vld [vmem:[#allocation157_spill] sm:$0xff]  ;;  %vm7942_vm11 = vcmp.gt.f32.partialorder %v5451_v0, 20.0 }
 0x20c   : > { %v5782_v3 = vsel %vm7888_vm10, %v7887_v62, %v7886_v54  ;;  %v5795_v17 = vsel %vm7895_vm15, %v5414_v34, %v7894_v9  ;;  %vm7898_vm2 = vnez %v7897_v12  ;;  %v7899_v46 = vld [vmem:[#allocation88_spill] sm:$0xff]  ;;  %v7900_v54 = vld [vmem:[#allocation114_spill] sm:$0xff]  ;;  %vm7911_vm1 = vcmp.gt.f32.partialorder %v7910_v15, 20.0  ;;  %v7913_v49 = vld [vmem:[#allocation109_spill] sm:$0xff] }
 0x20d   : > { %7889 = vst [vmem:[#allocation64_spill] sm:$0xff] %v5782_v3  ;;  %7896 = vst [vmem:[#allocation101_spill] sm:$0xff] %v5795_v17  ;;  %v7901_v62 = vsel %vm7898_vm2, %v7899_v46, %v7900_v54  ;;  %v7902_v3 = vld [vmem:[#allocation155_spill] sm:$0xff]  ;;  %v5815_v34 = vsel %vm7911_vm1, %v7910_v15, %v7909_v2  ;;  %vm7914_vm8 = vnez %v7913_v49  ;;  %v7916_v12 = vld [vmem:[#allocation48_spill] sm:$0xff] }
 0x20e   : > { %vm7903_vm4 = vcmp.gt.f32.partialorder %v7902_v3, 20.0  ;;  %7912 = vst [vmem:[#allocation89_spill] sm:$0xff] %v5815_v34  ;;  %v7915_v9 = vld [vmem:[#allocation107_spill] sm:$0xff]  ;;  %v7918_v54 = vld [vmem:[#allocation158_spill] sm:$0xff]  ;;  %v7923_v6 = vld [vmem:[#allocation113_spill] sm:$0xff] }
 0x20f   : > { %v5805_v37 = vsel %vm7903_vm4, %v7902_v3, %v7901_v62  ;;  %v7917_v46 = vsel %vm7914_vm8, %v7915_v9, %v7916_v12  ;;  %vm7919_vm14 = vcmp.gt.f32.partialorder %v7918_v54, 20.0  ;;  %v7921_v62 = vld [vmem:[#allocation111_spill] sm:$0xff]  ;;  %v7924_v31 = vld [vmem:[#allocation49_spill] sm:$0xff]  ;;  %v7929_v15 = vld [vmem:[#allocation116_spill] sm:$0xff]  ;;  %vm7949_vm8 = vcmp.gt.f32.partialorder %v5455_v14, 20.0  ;;  %8063 = vst [vmem:[#allocation155_spill] sm:$0xff] %v6061_v59 }
 0x210   : > { %7904 = vst [vmem:[#allocation71_spill] sm:$0xff] %v5805_v37  ;;  %v5825_v3 = vsel %vm7919_vm14, %v7918_v54, %v7917_v46  ;;  %vm7922_vm10 = vnez %v7921_v62  ;;  %v7926_v37 = vld [vmem:[#allocation159_spill] sm:$0xff]  ;;  %vm7930_vm15 = vnez %v7929_v15  ;;  %v7931_v49 = vld [vmem:[#allocation117_spill] sm:$0xff]  ;;  %v7934_v34 = vld [vmem:[#allocation160_spill] sm:$0xff]  ;;  %v3067_v54 = vpop.eup %3066  ;;  %v1237_v62 = vsel %vm5487_vm5, %v5485_v60, %v1231_v51 }
 0x211   : > { %7920 = vst [vmem:[#allocation65_spill] sm:$0xff] %v5825_v3  ;;  %v7925_v42 = vsel %vm7922_vm10, %v7923_v6, %v7924_v31  ;;  %vm7927_vm12 = vcmp.gt.f32.partialorder %v7926_v37, 20.0  ;;  %v7932_v9 = vld [vmem:[#allocation119_spill] sm:$0xff]  ;;  %vm7935_vm2 = vcmp.gt.f32.partialorder %v7934_v34, 20.0  ;;  %v7937_v6 = vld [vmem:[#allocation50_spill] sm:$0xff]  ;;  %vm7952_vm5 = vnez %v7951_v30  ;;  %v7968_v30 = vld [vmem:[#allocation125_spill] sm:$0xff] }
 0x212   : > { %v5835_v2 = vsel %vm7927_vm12, %v7926_v37, %v7925_v42  ;;  %v7933_v12 = vsel %vm7930_vm15, %v7931_v49, %v7932_v9  ;;  %vm7938_vm4 = vnez %v7937_v6  ;;  %v7939_v31 = vld [vmem:[#allocation118_spill] sm:$0xff]  ;;  %v7940_v37 = vld [vmem:[#allocation52_spill] sm:$0xff]  ;;  %v7944_v49 = vld [vmem:[#allocation121_spill] sm:$0xff]  ;;  %vm7964_vm12 = vcmp.gt.f32.partialorder %v5473_v20, 20.0 }
 0x213   : > { %7928 = vst [vmem:[#allocation102_spill] sm:$0xff] %v5835_v2  ;;  %v5845_v46 = vsel %vm7935_vm2, %v7934_v34, %v7933_v12  ;;  %v7941_v42 = vsel %vm7938_vm4, %v7939_v31, %v7940_v37  ;;  %vm7945_vm1 = vnez %v7944_v49  ;;  %v7946_v34 = vld [vmem:[#allocation120_spill] sm:$0xff]  ;;  %v7947_v9 = vld [vmem:[#allocation55_spill] sm:$0xff]  ;;  %v7953_v51 = vld [vmem:[#allocation122_spill] sm:$0xff]  ;;  %vm7971_vm2 = vcmp.gt.f32.partialorder %v5477_v63, 20.0 }
 0x214   : > { %7936 = vst [vmem:[#allocation147_spill] sm:$0xff] %v5845_v46  ;;  %v5858_v15 = vsel %vm7942_vm11, %v5451_v0, %v7941_v42  ;;  %v7948_v12 = vsel %vm7945_vm1, %v7946_v34, %v7947_v9  ;;  %v7954_v6 = vld [vmem:[#allocation56_spill] sm:$0xff]  ;;  %v7956_v37 = vld [vmem:[#allocation75_spill] sm:$0xff]  ;;  %v1240_v42 = vmul.f32 0.6931472, %v3067_v54  ;;  %v7961_v34 = vld [vmem:[#allocation53_spill] sm:$0xff] }
 0x215   : > { %7943 = vst [vmem:[#allocation151_spill] sm:$0xff] %v5858_v15  ;;  %v5868_v60 = vsel %vm7949_vm8, %v5455_v14, %v7948_v12  ;;  %v7955_v31 = vsel %vm7952_vm5, %v7953_v51, %v7954_v6  ;;  %vm7957_vm14 = vcmp.gt.f32.partialorder %v7956_v37, 20.0  ;;  %v7959_v49 = vld [vmem:[#allocation123_spill] sm:$0xff]  ;;  %v7962_v9 = vld [vmem:[#allocation129_spill] sm:$0xff]  ;;  %v7966_v12 = vld [vmem:[#allocation124_spill] sm:$0xff]  ;;  %vm7978_vm11 = vcmp.gt.f32.partialorder %v5481_v39, 20.0 }
 0x216   : > { %7950 = vst [vmem:[#allocation90_spill] sm:$0xff] %v5868_v60  ;;  %v5878_v0 = vsel %vm7957_vm14, %v7956_v37, %v7955_v31  ;;  %vm7960_vm10 = vnez %v7959_v49  ;;  %vm7967_vm15 = vnez %v7966_v12  ;;  %v7969_v51 = vld [vmem:[#allocation132_spill] sm:$0xff]  ;;  %v7973_v54 = vld [vmem:[#allocation127_spill] sm:$0xff]  ;;  %v7975_v37 = vld [vmem:[#allocation126_spill] sm:$0xff]  ;;  %vm7989_vm8 = vcmp.gt.f32.partialorder %v5492_v23, 20.0 }
 0x217   : > { %7958 = vst [vmem:[#allocation69_spill] sm:$0xff] %v5878_v0  ;;  %v7963_v15 = vsel %vm7960_vm10, %v7961_v34, %v7962_v9  ;;  %v7970_v6 = vsel %vm7967_vm15, %v7968_v30, %v7969_v51  ;;  %vm7974_vm4 = vnez %v7973_v54  ;;  %v7976_v49 = vld [vmem:[#allocation133_spill] sm:$0xff]  ;;  %v5914_v9 = vld [vmem:[%s4138_s14 + $0x8] sm:$0xff]  ;;  %v5917_v12 = vld [vmem:[%s4138_s14 + $0x10] sm:$0xff] }
 0x218   : > { %v5888_v14 = vsel %vm7964_vm12, %v5473_v20, %v7963_v15  ;;  %v5898_v31 = vsel %vm7971_vm2, %v5477_v63, %v7970_v6  ;;  %v7977_v34 = vsel %vm7974_vm4, %v7975_v37, %v7976_v49  ;;  %v5911_v15 = vld [vmem:[%s4138_s14] sm:$0xff]  ;;  %7981 = vst [vmem:[#allocation106_spill] sm:$0xff] %v5914_v9  ;;  %7982 = vst [vmem:[#allocation149_spill] sm:$0xff] %v5917_v12  ;;  %v5920_v63 = vld [vmem:[%s4138_s14 + $0x18] sm:$0xff]  ;;  %vm8004_vm12 = vcmp.gt.f32.partialorder %v5500_v28, 20.0 }
 0x219   : > { %7965 = vst [vmem:[#allocation45_spill] sm:$0xff] %v5888_v14  ;;  %7972 = vst [vmem:[#allocation148_spill] sm:$0xff] %v5898_v31  ;;  %v5908_v20 = vsel %vm7978_vm11, %v5481_v39, %v7977_v34  ;;  %v7984_v30 = vld [vmem:[#allocation128_spill] sm:$0xff]  ;;  %v7986_v51 = vld [vmem:[#allocation130_spill] sm:$0xff]  ;;  %vm8023_vm11 = vcmp.gt.f32.partialorder %v5542_v11, 20.0 }
 0x21a   : > { %7979 = vst [vmem:[#allocation92_spill] sm:$0xff] %v5908_v20  ;;  %7980 = vst [vmem:[#allocation72_spill] sm:$0xff] %v5911_v15  ;;  %vm7985_vm1 = vnez %v7984_v30  ;;  %v7987_v6 = vld [vmem:[#allocation135_spill] sm:$0xff]  ;;  %v7993_v49 = vld [vmem:[#allocation58_spill] sm:$0xff] }
 0x21b   : > { %7983 = vst [vmem:[#allocation94_spill] sm:$0xff] %v5920_v63  ;;  %v7988_v54 = vsel %vm7985_vm1, %v7986_v51, %v7987_v6  ;;  %v7991_v37 = vld [vmem:[#allocation131_spill] sm:$0xff]  ;;  %v7994_v34 = vld [vmem:[#allocation62_spill] sm:$0xff]  ;;  %v7996_v31 = vld [vmem:[#allocation161_spill] sm:$0xff] }
 0x21c   : > { %v5930_v39 = vsel %vm7989_vm8, %v5492_v23, %v7988_v54  ;;  %vm7992_vm5 = vnez %v7991_v37  ;;  %vm7997_vm14 = vcmp.gt.f32.partialorder %v7996_v31, 20.0  ;;  %v7999_v30 = vld [vmem:[#allocation60_spill] sm:$0xff]  ;;  %v8001_v0 = vld [vmem:[#allocation134_spill] sm:$0xff]  ;;  %v8002_v51 = vld [vmem:[#allocation63_spill] sm:$0xff]  ;;  %vm8030_vm8 = vcmp.gt.f32.partialorder %v5546_v36, 20.0 }
 0x21d   : > { %7990 = vst [vmem:[#allocation74_spill] sm:$0xff] %v5930_v39  ;;  %v7995_v20 = vsel %vm7992_vm5, %v7993_v49, %v7994_v34  ;;  %vm8000_vm10 = vnez %v7999_v30  ;;  %v8006_v54 = vld [vmem:[#allocation61_spill] sm:$0xff]  ;;  %v8008_v37 = vld [vmem:[#allocation136_spill] sm:$0xff]  ;;  %v8009_v39 = vld [vmem:[#allocation142_spill] sm:$0xff]  ;;  %vm8037_vm5 = vcmp.gt.f32.partialorder %v5550_v33, 20.0 }
 0x21e   : > { %v5940_v14 = vsel %vm7997_vm14, %v7996_v31, %v7995_v20  ;;  %v8003_v6 = vsel %vm8000_vm10, %v8001_v0, %v8002_v51  ;;  %vm8007_vm15 = vnez %v8006_v54  ;;  %v8011_v34 = vld [vmem:[#allocation162_spill] sm:$0xff]  ;;  %v5969_v0 = vld [vmem:[%s4138_s14 + $0x30] sm:$0xff]  ;;  %v8018_v51 = vld [vmem:[#allocation137_spill] sm:$0xff]  ;;  %vm8047_vm14 = vcmp.gt.f32.partialorder %v5583_v16, 20.0 }
 0x21f   : > { %7998 = vst [vmem:[#allocation46_spill] sm:$0xff] %v5940_v14  ;;  %v5950_v23 = vsel %vm8004_vm12, %v5500_v28, %v8003_v6  ;;  %v8010_v49 = vsel %vm8007_vm15, %v8008_v37, %v8009_v39  ;;  %vm8012_vm2 = vcmp.gt.f32.partialorder %v8011_v34, 20.0  ;;  %v5963_v20 = vld [vmem:[%s4138_s14 + $0x20] sm:$0xff]  ;;  %v5966_v30 = vld [vmem:[%s4138_s14 + $0x28] sm:$0xff]  ;;  %8016 = vst [vmem:[#allocation152_spill] sm:$0xff] %v5969_v0  ;;  %v1246_v39 = vsel %vm5558_vm9, %v5556_v1, %v1240_v42 }
 0x220   : > { %8005 = vst [vmem:[#allocation73_spill] sm:$0xff] %v5950_v23  ;;  %v5960_v31 = vsel %vm8012_vm2, %v8011_v34, %v8010_v49  ;;  %8014 = vst [vmem:[#allocation76_spill] sm:$0xff] %v5963_v20  ;;  %v5972_v28 = vld [vmem:[%s4138_s14 + $0x38] sm:$0xff]  ;;  %vm8019_vm4 = vnez %v8018_v51  ;;  %v8020_v6 = vld [vmem:[#allocation138_spill] sm:$0xff]  ;;  %vm8054_vm12 = vcmp.gt.f32.partialorder %v5587_v52, 20.0  ;;  %vm8059_vm15 = vcmp.gt.f32.partialorder %v5595_v56, 20.0 }
 0x221   : > { %8013 = vst [vmem:[#allocation96_spill] sm:$0xff] %v5960_v31  ;;  %8015 = vst [vmem:[#allocation108_spill] sm:$0xff] %v5966_v30  ;;  %v8021_v54 = vld [vmem:[#allocation144_spill] sm:$0xff]  ;;  %v8027_v31 = vld [vmem:[#allocation139_spill] sm:$0xff] }
 0x222   : > { %8017 = vst [vmem:[#allocation97_spill] sm:$0xff] %v5972_v28  ;;  %v8022_v37 = vsel %vm8019_vm4, %v8020_v6, %v8021_v54  ;;  %v8025_v34 = vld [vmem:[#allocation140_spill] sm:$0xff]  ;;  %v8032_v1 = vld [vmem:[#allocation141_spill] sm:$0xff]  ;;  %v8034_v42 = vld [vmem:[#allocation66_spill] sm:$0xff] }
 0x223   : > { %v5985_v49 = vsel %vm8023_vm11, %v5542_v11, %v8022_v37  ;;  %vm8026_vm1 = vnez %v8025_v34  ;;  %v8028_v23 = vld [vmem:[#allocation68_spill] sm:$0xff]  ;;  %vm8033_vm9 = vnez %v8032_v1  ;;  %v8035_v51 = vld [vmem:[#allocation70_spill] sm:$0xff] }
 0x224   : > { %8024 = vst [vmem:[#allocation78_spill] sm:$0xff] %v5985_v49  ;;  %v8029_v14 = vsel %vm8026_vm1, %v8027_v31, %v8028_v23  ;;  %v8036_v6 = vsel %vm8033_vm9, %v8034_v42, %v8035_v51  ;;  %v6008_v54 = vld [vmem:[%s4138_s14 + $0x40] sm:$0xff]  ;;  %v6011_v37 = vld [vmem:[%s4138_s14 + $0x48] sm:$0xff]  ;;  %v6014_v23 = vld [vmem:[%s4138_s14 + $0x50] sm:$0xff] }
 0x225   : > { %v5995_v10 = vsel %vm8030_vm8, %v5546_v36, %v8029_v14  ;;  %v6005_v11 = vsel %vm8037_vm5, %v5550_v33, %v8036_v6  ;;  %8039 = vst [vmem:[#allocation100_spill] sm:$0xff] %v6008_v54  ;;  %8040 = vst [vmem:[#allocation80_spill] sm:$0xff] %v6011_v37  ;;  %v6017_v36 = vld [vmem:[%s4138_s14 + $0x58] sm:$0xff]  ;;  %v8044_v31 = vld [vmem:[#allocation67_spill] sm:$0xff]  ;;  %v8056_v14 = vsel %vm5308_vm13, %v5334_v29, %v5466_v26  ;;  %vm8066_vm13 = vcmp.gt.f32.partialorder %v5643_v8, 20.0 }
 0x226   : > { %8031 = vst [vmem:[#allocation110_spill] sm:$0xff] %v5995_v10  ;;  %8038 = vst [vmem:[#allocation153_spill] sm:$0xff] %v6005_v11  ;;  %v8045_v34 = vld [vmem:[#allocation150_spill] sm:$0xff]  ;;  %v8049_v42 = vld [vmem:[#allocation145_spill] sm:$0xff]  ;;  %v6069_v26 = vsel %vm667_vm7, %v5639_v41, %v1219_v4 }
 0x227   : > { %8041 = vst [vmem:[#allocation112_spill] sm:$0xff] %v6014_v23  ;;  %8042 = vst [vmem:[#allocation154_spill] sm:$0xff] %v6017_v36  ;;  %v8046_v1 = vsel %vm5260_vm6, %v8044_v31, %v8045_v34  ;;  %vm8050_vm10 = vnez %v8049_v42  ;;  %v8051_v51 = vld [vmem:[#allocation146_spill] sm:$0xff]  ;;  %v8052_v6 = vld [vmem:[#allocation156_spill] sm:$0xff]  ;;  %vm8057_vm6 = vcmp.gt.f32.partialorder %v5591_v58, 20.0  ;;  %v6052_v31 = vsel %vm8059_vm15, %v5595_v56, %v1210_v24 }
 0x228   : > { %v6027_v33 = vsel %vm8047_vm14, %v5583_v16, %v8046_v1  ;;  %v8053_v11 = vsel %vm8050_vm10, %v8051_v51, %v8052_v6  ;;  %v6047_v16 = vsel %vm8057_vm6, %v5591_v58, %v8056_v14  ;;  %8060 = vst [vmem:[#allocation104_spill] sm:$0xff] %v6052_v31  ;;  %v6064_v29 = vld [vmem:[%s4138_s14 + $0x78] sm:$0xff]  ;;  %8065 = vst [vmem:[#allocation98_spill] sm:$0xff] %v6069_v26  ;;  %v6087_v41 = vld [vmem:[%s4138_s14 + $0x80] sm:$0xff] }
 0x229   : > { %8048 = vst [vmem:[#allocation103_spill] sm:$0xff] %v6027_v33  ;;  %v6037_v10 = vsel %vm8054_vm12, %v5587_v52, %v8053_v11  ;;  %8058 = vst [vmem:[#allocation47_spill] sm:$0xff] %v6047_v16  ;;  %v6055_v52 = vld [vmem:[%s4138_s14 + $0x60] sm:$0xff]  ;;  %v6058_v11 = vld [vmem:[%s4138_s14 + $0x68] sm:$0xff]  ;;  %v6074_v58 = vsel %vm8066_vm13, %v5643_v8, %v1228_v22  ;;  %v6079_v56 = vsel %vm669_vm3, %v5647_v19, %v1237_v62 }
 0x22a   : > { %8055 = vst [vmem:[#allocation85_spill] sm:$0xff] %v6037_v10  ;;  %8061 = vst [vmem:[#allocation88_spill] sm:$0xff] %v6055_v52  ;;  %v6084_v24 = vsel %vm670_vm0, %v5651_v50, %v1246_v39  ;;  %v6090_v4 = vld [vmem:[%s4138_s14 + $0x88] sm:$0xff]  ;;  %v6093_v34 = vld [vmem:[%s4138_s14 + $0x90] sm:$0xff]  ;;  %v6112_v39 = vmul.f32 %v5911_v15, %v5519_v5  ;;  %v6116_v1 = vmul.f32 %v5914_v9, %v5529_v38 }
 0x22b   : > { %8062 = vst [vmem:[#allocation114_spill] sm:$0xff] %v6058_v11  ;;  %8064 = vst [vmem:[#allocation105_spill] sm:$0xff] %v6064_v29  ;;  %v6096_v8 = vld [vmem:[%s4138_s14 + $0x98] sm:$0xff]  ;;  %v6099_v22 = vld [vmem:[%s4138_s14 + $0xa0] sm:$0xff]  ;;  %v6120_v42 = vmul.f32 %v5917_v12, %v5539_v7  ;;  %v6124_v51 = vmul.f32 %v5920_v63, %v5570_v27  ;;  %v6140_v12 = vmul.f32 %v5963_v20, %v5580_v43 }
 0x22c   : > { %8067 = vst [vmem:[#allocation115_spill] sm:$0xff] %v6074_v58  ;;  %8068 = vst [vmem:[#allocation157_spill] sm:$0xff] %v6079_v56  ;;  %v6102_v19 = vld [vmem:[%s4138_s14 + $0xa8] sm:$0xff]  ;;  %v6105_v62 = vld [vmem:[%s4138_s14 + $0xb0] sm:$0xff]  ;;  %v6144_v63 = vmul.f32 %v5966_v30, %v5606_v18  ;;  %v6148_v9 = vmul.f32 %v5969_v0, %v5616_v44  ;;  %v6152_v27 = vmul.f32 %v5972_v28, %v5626_v45 }
 0x22d   : > { %8069 = vst [vmem:[#allocation109_spill] sm:$0xff] %v6084_v24  ;;  %8070 = vst [vmem:[#allocation107_spill] sm:$0xff] %v6087_v41  ;;  %v6108_v50 = vld [vmem:[%s4138_s14 + $0xb8] sm:$0xff]  ;;  %v6127_v6 = vld [vmem:[%s4138_s14 + $0xc0] sm:$0xff]  ;;  %v6168_v0 = vmul.f32 %v6008_v54, %v5636_v40  ;;  %v6172_v28 = vmul.f32 %v6011_v37, %v5668_v57  ;;  %v6176_v30 = vmul.f32 %v6014_v23, %v5678_v61 }
 0x22e   : > { %8071 = vst [vmem:[#allocation48_spill] sm:$0xff] %v6090_v4  ;;  %8072 = vst [vmem:[#allocation158_spill] sm:$0xff] %v6093_v34  ;;  %v6130_v14 = vld [vmem:[%s4138_s14 + $0xc8] sm:$0xff]  ;;  %v6133_v15 = vld [vmem:[%s4138_s14 + $0xd0] sm:$0xff]  ;;  %v6180_v45 = vmul.f32 %v6017_v36, %v5688_v25  ;;  %v6196_v23 = vmul.f32 %v6055_v52, %v5698_v13  ;;  %v6200_v36 = vmul.f32 %v6058_v11, %v5708_v32 }
 0x22f   : > { %8073 = vst [vmem:[#allocation111_spill] sm:$0xff] %v6096_v8  ;;  %8074 = vst [vmem:[#allocation113_spill] sm:$0xff] %v6099_v22  ;;  %v6136_v5 = vld [vmem:[%s4138_s14 + $0xd8] sm:$0xff]  ;;  %v6155_v7 = vld [vmem:[%s4138_s14 + $0xe0] sm:$0xff]  ;;  %v6204_v37 = vmul.f32 %v6061_v59, %v5718_v55  ;;  %v6208_v25 = vmul.f32 %v6064_v29, %v5732_v21  ;;  %v6224_v59 = vmul.f32 %v6087_v41, %v5742_v47 }
 0x230   : > { %8075 = vst [vmem:[#allocation49_spill] sm:$0xff] %v6102_v19  ;;  %8076 = vst [vmem:[#allocation159_spill] sm:$0xff] %v6105_v62  ;;  %v6158_v38 = vld [vmem:[%s4138_s14 + $0xe8] sm:$0xff]  ;;  %v6161_v20 = vld [vmem:[%s4138_s14 + $0xf0] sm:$0xff]  ;;  %v6228_v29 = vmul.f32 %v6090_v4, %v5752_v48  ;;  %v6232_v11 = vmul.f32 %v6093_v34, %v5762_v53  ;;  %v6236_v21 = vmul.f32 %v6096_v8, %v5772_v35 }
 0x231   : > { %8077 = vst [vmem:[#allocation116_spill] sm:$0xff] %v6108_v50  ;;  %8078 = vst [vmem:[#allocation117_spill] sm:$0xff] %v6127_v6  ;;  %v6164_v43 = vld [vmem:[%s4138_s14 + $0xf8] sm:$0xff]  ;;  %v6183_v44 = vld [vmem:[%s4138_s14 + $0x100] sm:$0xff]  ;;  %v6256_v8 = vmul.f32 %v6102_v19, %v5795_v17 }
 0x232   : > { %8079 = vst [vmem:[#allocation119_spill] sm:$0xff] %v6130_v14  ;;  %8080 = vst [vmem:[#allocation160_spill] sm:$0xff] %v6133_v15  ;;  %v6186_v18 = vld [vmem:[%s4138_s14 + $0x108] sm:$0xff]  ;;  %v6189_v54 = vld [vmem:[%s4138_s14 + $0x110] sm:$0xff] }
 0x233   : > { %8081 = vst [vmem:[#allocation50_spill] sm:$0xff] %v6136_v5  ;;  %8082 = vst [vmem:[#allocation118_spill] sm:$0xff] %v6155_v7  ;;  %v6192_v40 = vld [vmem:[%s4138_s14 + $0x118] sm:$0xff]  ;;  %v6211_v61 = vld [vmem:[%s4138_s14 + $0x120] sm:$0xff] }
 0x234   : > { %8083 = vst [vmem:[#allocation52_spill] sm:$0xff] %v6158_v38  ;;  %8084 = vst [vmem:[#allocation121_spill] sm:$0xff] %v6161_v20  ;;  %v6214_v57 = vld [vmem:[%s4138_s14 + $0x128] sm:$0xff]  ;;  %v6217_v52 = vld [vmem:[%s4138_s14 + $0x130] sm:$0xff] }
 0x235   : > { %8085 = vst [vmem:[#allocation120_spill] sm:$0xff] %v6164_v43  ;;  %8086 = vst [vmem:[#allocation55_spill] sm:$0xff] %v6183_v44  ;;  %v6220_v13 = vld [vmem:[%s4138_s14 + $0x138] sm:$0xff]  ;;  %v6239_v55 = vld [vmem:[%s4138_s14 + $0x140] sm:$0xff] }
 0x236   : > { %8087 = vst [vmem:[#allocation51_spill] sm:$0xff] %v6186_v18  ;;  %8088 = vst [vmem:[#allocation122_spill] sm:$0xff] %v6189_v54  ;;  %v6242_v32 = vld [vmem:[%s4138_s14 + $0x148] sm:$0xff]  ;;  %v6245_v41 = vld [vmem:[%s4138_s14 + $0x150] sm:$0xff] }
 0x237   : > { %8089 = vst [vmem:[#allocation56_spill] sm:$0xff] %v6192_v40  ;;  %8090 = vst [vmem:[#allocation75_spill] sm:$0xff] %v6211_v61  ;;  %v6248_v47 = vld [vmem:[%s4138_s14 + $0x158] sm:$0xff]  ;;  %v8102_v35 = vld [vmem:[#allocation71_spill] sm:$0xff] }
 0x238   : > { %8091 = vst [vmem:[#allocation123_spill] sm:$0xff] %v6214_v57  ;;  %8092 = vst [vmem:[#allocation53_spill] sm:$0xff] %v6217_v52  ;;  %v8101_v4 = vld [vmem:[#allocation64_spill] sm:$0xff]  ;;  %v6260_v53 = vmul.f32 %v6105_v62, %v8102_v35  ;;  %v8104_v48 = vld [vmem:[#allocation89_spill] sm:$0xff]  ;;  %v6280_v35 = vmul.f32 %v6127_v6, %v5825_v3 }
 0x239   : > { %8093 = vst [vmem:[#allocation129_spill] sm:$0xff] %v6220_v13  ;;  %8094 = vst [vmem:[#allocation124_spill] sm:$0xff] %v6228_v29  ;;  %v6252_v34 = vmul.f32 %v6099_v22, %v8101_v4  ;;  %v6270_v29 = vld [vmem:[%s4138_s14 + $0x168] sm:$0xff]  ;;  %v6273_v4 = vld [vmem:[%s4138_s14 + $0x170] sm:$0xff] }
 0x23a   : > { %8095 = vst [vmem:[#allocation125_spill] sm:$0xff] %v6232_v11  ;;  %8096 = vst [vmem:[#allocation132_spill] sm:$0xff] %v6236_v21  ;;  %v6264_v21 = vmul.f32 %v6108_v50, %v8104_v48  ;;  %v6267_v11 = vld [vmem:[%s4138_s14 + $0x160] sm:$0xff]  ;;  %v6276_v22 = vld [vmem:[%s4138_s14 + $0x178] sm:$0xff]  ;;  %v6284_v48 = vmul.f32 %v6130_v14, %v5835_v2  ;;  %v6288_v50 = vmul.f32 %v6133_v15, %v5845_v46 }
 0x23b   : > { %8097 = vst [vmem:[#allocation127_spill] sm:$0xff] %v6239_v55  ;;  %8098 = vst [vmem:[#allocation126_spill] sm:$0xff] %v6242_v32  ;;  %v8112_v62 = vld [vmem:[#allocation151_spill] sm:$0xff]  ;;  %v1343_v17 = vld [vmem:[%s4130_s19] sm:$0xff]  ;;  %v6300_v14 = vmul.f32 %v6155_v7, %v5868_v60 }
 0x23c   : > { %8099 = vst [vmem:[#allocation133_spill] sm:$0xff] %v6245_v41  ;;  %8100 = vst [vmem:[#allocation128_spill] sm:$0xff] %v6248_v47  ;;  %v6292_v19 = vmul.f32 %v6136_v5, %v8112_v62  ;;  %v1346_v6 = vld [vmem:[%s4130_s19 + $0x18] sm:$0xff] }
 0x23d   : > { %8103 = vst [vmem:[#allocation130_spill] sm:$0xff] %v6260_v53  ;;  %8105 = vst [vmem:[#allocation135_spill] sm:$0xff] %v6264_v21  ;;  %v1344_v21 = vld [vmem:[%s4130_s19 + $0x8] sm:$0xff]  ;;  %v1345_v53 = vld [vmem:[%s4130_s19 + $0x10] sm:$0xff] }
 0x23e   : > { %8106 = vst [vmem:[#allocation131_spill] sm:$0xff] %v6267_v11  ;;  %8107 = vst [vmem:[#allocation58_spill] sm:$0xff] %v6270_v29  ;;  %v8115_v2 = vld [vmem:[#allocation69_spill] sm:$0xff]  ;;  %v8119_v5 = vld [vmem:[#allocation148_spill] sm:$0xff] }
 0x23f   : > { %8108 = vst [vmem:[#allocation62_spill] sm:$0xff] %v6273_v4  ;;  %8109 = vst [vmem:[#allocation161_spill] sm:$0xff] %v6276_v22  ;;  %v6304_v15 = vmul.f32 %v6158_v38, %v8115_v2  ;;  %v8117_v46 = vld [vmem:[#allocation45_spill] sm:$0xff]  ;;  %v6312_v3 = vmul.f32 %v6164_v43, %v8119_v5  ;;  %v8121_v60 = vld [vmem:[#allocation92_spill] sm:$0xff] }
 0x240   : > { %8110 = vst [vmem:[#allocation60_spill] sm:$0xff] %v6284_v48  ;;  %8111 = vst [vmem:[#allocation134_spill] sm:$0xff] %v6288_v50  ;;  %v6308_v62 = vmul.f32 %v6161_v20, %v8117_v46  ;;  %v1348_v50 = vld [vmem:[%s4130_s19 + $0x28] sm:$0xff]  ;;  %v1349_v48 = vld [vmem:[%s4130_s19 + $0x30] sm:$0xff]  ;;  %v6320_v2 = vmul.f32 %v6183_v44, %v8121_v60 }
 0x241   : > { %8113 = vst [vmem:[#allocation63_spill] sm:$0xff] %v6292_v19  ;;  %8114 = vst [vmem:[#allocation61_spill] sm:$0xff] %v6300_v14  ;;  %v1347_v19 = vld [vmem:[%s4130_s19 + $0x20] sm:$0xff]  ;;  %v1350_v7 = vld [vmem:[%s4130_s19 + $0x38] sm:$0xff] }
 0x242   : > { %8116 = vst [vmem:[#allocation136_spill] sm:$0xff] %v6304_v15  ;;  %8118 = vst [vmem:[#allocation142_spill] sm:$0xff] %v6308_v62  ;;  %v8122_v38 = vld [vmem:[#allocation74_spill] sm:$0xff]  ;;  %v8126_v43 = vld [vmem:[#allocation73_spill] sm:$0xff] }
 0x243   : > { %8120 = vst [vmem:[#allocation162_spill] sm:$0xff] %v6312_v3  ;;  %v6324_v46 = vmul.f32 %v6186_v18, %v8122_v38  ;;  %v8124_v20 = vld [vmem:[#allocation46_spill] sm:$0xff]  ;;  %v6332_v3 = vmul.f32 %v6192_v40, %v8126_v43  ;;  %v1353_v14 = vld [vmem:[%s4130_s19 + $0x50] sm:$0xff]  ;;  %v1354_v60 = vld [vmem:[%s4130_s19 + $0x58] sm:$0xff] }
 0x244   : > { %v6328_v5 = vmul.f32 %v6189_v54, %v8124_v20  ;;  %v1351_v62 = vld [vmem:[%s4130_s19 + $0x40] sm:$0xff]  ;;  %v1352_v15 = vld [vmem:[%s4130_s19 + $0x48] sm:$0xff]  ;;  %v8128_v44 = vld [vmem:[#allocation96_spill] sm:$0xff]  ;;  %v6344_v20 = vmul.f32 %v6214_v57, %v5985_v49  ;;  %v6360_v57 = vmul.f32 %v6239_v55, %v6027_v33  ;;  %v6380_v33 = vmul.f32 %v6267_v11, %v6069_v26 }
 0x245   : > { %8123 = vst [vmem:[#allocation137_spill] sm:$0xff] %v6324_v46  ;;  %8127 = vst [vmem:[#allocation144_spill] sm:$0xff] %v6332_v3  ;;  %v6340_v38 = vmul.f32 %v6211_v61, %v8128_v44  ;;  %v8129_v54 = vld [vmem:[#allocation110_spill] sm:$0xff]  ;;  %v8130_v40 = vld [vmem:[#allocation153_spill] sm:$0xff]  ;;  %v6399_v26 = vadd.f32 %v6112_v39, %v1343_v17  ;;  %v6417_v17 = vadd.f32 %v6144_v63, %v1348_v50 }
 0x246   : > { %8125 = vst [vmem:[#allocation138_spill] sm:$0xff] %v6328_v5  ;;  %v6348_v43 = vmul.f32 %v6217_v52, %v8129_v54  ;;  %v6352_v18 = vmul.f32 %v6220_v13, %v8130_v40  ;;  %v1355_v3 = vld [vmem:[%s4130_s19 + $0x60] sm:$0xff]  ;;  %v1356_v5 = vld [vmem:[%s4130_s19 + $0x68] sm:$0xff]  ;;  %v1357_v46 = vld [vmem:[%s4130_s19 + $0x70] sm:$0xff]  ;;  %v6364_v54 = vmul.f32 %v6242_v32, %v6037_v10  ;;  %v6368_v40 = vmul.f32 %v6245_v41, %v6047_v16 }
 0x247   : > { %v1358_v44 = vld [vmem:[%s4130_s19 + $0x78] sm:$0xff]  ;;  %v6372_v13 = vmul.f32 %v6248_v47, %v6052_v31  ;;  %v1359_v52 = vld [vmem:[%s4130_s19 + $0x80] sm:$0xff]  ;;  %v1360_v61 = vld [vmem:[%s4130_s19 + $0x88] sm:$0xff]  ;;  %v6384_v32 = vmul.f32 %v6270_v29, %v6074_v58  ;;  %v6388_v41 = vmul.f32 %v6273_v4, %v6079_v56  ;;  %v6392_v47 = vmul.f32 %v6276_v22, %v6084_v24 }
 0x248   : > { %v1361_v49 = vld [vmem:[%s4130_s19 + $0x90] sm:$0xff]  ;;  %v1362_v55 = vld [vmem:[%s4130_s19 + $0x98] sm:$0xff]  ;;  %v1363_v31 = vld [vmem:[%s4130_s19 + $0xa0] sm:$0xff]  ;;  %v6402_v29 = vadd.f32 %v6116_v1, %v1344_v21  ;;  %v6405_v4 = vadd.f32 %v6120_v42, %v1345_v53  ;;  %v6408_v22 = vadd.f32 %v6124_v51, %v1346_v6  ;;  %v6420_v21 = vadd.f32 %v6148_v9, %v1349_v48 }
 0x249   : > { %8131 = vst [vmem:[#allocation140_spill] sm:$0xff] %v6392_v47  ;;  %v1364_v16 = vld [vmem:[%s4130_s19 + $0xa8] sm:$0xff]  ;;  %v1365_v10 = vld [vmem:[%s4130_s19 + $0xb0] sm:$0xff]  ;;  %v1366_v11 = vld [vmem:[%s4130_s19 + $0xb8] sm:$0xff]  ;;  %v6414_v47 = vadd.f32 %v6140_v12, %v1347_v19  ;;  %v6423_v53 = vadd.f32 %v6152_v27, %v1350_v7  ;;  %v6429_v51 = vadd.f32 %v6168_v0, %v1351_v62  ;;  %v6432_v12 = vadd.f32 %v6172_v28, %v1352_v15 }
 0x24a   : > { %v1367_v24 = vld [vmem:[%s4130_s19 + $0xc0] sm:$0xff]  ;;  %v1368_v56 = vld [vmem:[%s4130_s19 + $0xc8] sm:$0xff]  ;;  %v1369_v58 = vld [vmem:[%s4130_s19 + $0xd0] sm:$0xff]  ;;  %v6435_v63 = vadd.f32 %v6176_v30, %v1353_v14  ;;  %v6438_v9 = vadd.f32 %v6180_v45, %v1354_v60  ;;  %v6444_v50 = vadd.f32 %v6196_v23, %v1355_v3  ;;  %v6447_v0 = vadd.f32 %v6200_v36, %v1356_v5 }
 0x24b   : > { %v1370_v39 = vld [vmem:[%s4130_s19 + $0xd8] sm:$0xff]  ;;  %v1371_v1 = vld [vmem:[%s4130_s19 + $0xe0] sm:$0xff]  ;;  %v1372_v42 = vld [vmem:[%s4130_s19 + $0xe8] sm:$0xff]  ;;  %v6450_v15 = vadd.f32 %v6204_v37, %v1357_v46  ;;  %v6453_v30 = vadd.f32 %v6208_v25, %v1358_v44  ;;  %v6459_v14 = vadd.f32 %v6224_v59, %v1359_v52  ;;  %v6474_v60 = vadd.f32 %v6252_v34, %v1363_v31 }
 0x24c   : > { %8132 = vst [vmem:[#allocation139_spill] sm:$0xff] %v6435_v63  ;;  %8133 = vst [vmem:[#allocation68_spill] sm:$0xff] %v6438_v9  ;;  %v1373_v7 = vld [vmem:[%s4130_s19 + $0xf0] sm:$0xff]  ;;  %v1374_v27 = vld [vmem:[%s4130_s19 + $0xf8] sm:$0xff]  ;;  %v6477_v52 = vadd.f32 %v6256_v8, %v1364_v16 }
 0x24d   : > { %v1375_v19 = vld [vmem:[%s4130_s19 + $0x100] sm:$0xff]  ;;  %8134 = vst [vmem:[#allocation141_spill] sm:$0xff] %v6444_v50  ;;  %8135 = vst [vmem:[#allocation66_spill] sm:$0xff] %v6447_v0  ;;  %v1376_v45 = vld [vmem:[%s4130_s19 + $0x108] sm:$0xff] }
 0x24e   : > { %8136 = vst [vmem:[#allocation70_spill] sm:$0xff] %v6450_v15  ;;  %8137 = vst [vmem:[#allocation143_spill] sm:$0xff] %v6453_v30  ;;  %v1377_v28 = vld [vmem:[%s4130_s19 + $0x110] sm:$0xff]  ;;  %v1378_v6 = vld [vmem:[%s4130_s19 + $0x118] sm:$0xff] }
 0x24f   : > { %v8138_v3 = vld [vmem:[#allocation124_spill] sm:$0xff]  ;;  %v8139_v36 = vld [vmem:[#allocation125_spill] sm:$0xff]  ;;  %v1380_v46 = vld [vmem:[%s4130_s19 + $0x128] sm:$0xff] }
 0x250   : > { %v6462_v23 = vadd.f32 %v8138_v3, %v1360_v61  ;;  %v6465_v48 = vadd.f32 %v8139_v36, %v1361_v49  ;;  %v8140_v37 = vld [vmem:[#allocation132_spill] sm:$0xff]  ;;  %v1379_v25 = vld [vmem:[%s4130_s19 + $0x120] sm:$0xff]  ;;  %v8142_v49 = vld [vmem:[#allocation135_spill] sm:$0xff] }
 0x251   : > { %v6468_v62 = vadd.f32 %v8140_v37, %v1362_v55  ;;  %v1381_v5 = vld [vmem:[%s4130_s19 + $0x130] sm:$0xff]  ;;  %v8141_v61 = vld [vmem:[#allocation130_spill] sm:$0xff]  ;;  %v6483_v44 = vadd.f32 %v8142_v49, %v1366_v11  ;;  %v1382_v55 = vld [vmem:[%s4130_s19 + $0x138] sm:$0xff]  ;;  %v6489_v37 = vadd.f32 %v6280_v35, %v1367_v24 }
 0x252   : > { %v6480_v59 = vadd.f32 %v8141_v61, %v1365_v10  ;;  %v1383_v3 = vld [vmem:[%s4130_s19 + $0x140] sm:$0xff]  ;;  %v1384_v36 = vld [vmem:[%s4130_s19 + $0x148] sm:$0xff]  ;;  %v8143_v31 = vld [vmem:[#allocation60_spill] sm:$0xff] }
 0x253   : > { %v6492_v34 = vadd.f32 %v8143_v31, %v1368_v56  ;;  %v8144_v16 = vld [vmem:[#allocation134_spill] sm:$0xff]  ;;  %v8145_v10 = vld [vmem:[#allocation63_spill] sm:$0xff]  ;;  %v1386_v11 = vld [vmem:[%s4130_s19 + $0x158] sm:$0xff]  ;;  %1490 = sbr.rel (%p2520_p9) target bundleno = 604 (0x25c), region = 80 }
 0x254   : > { %v6495_v8 = vadd.f32 %v8144_v16, %v1369_v58  ;;  %v6498_v61 = vadd.f32 %v8145_v10, %v1370_v39  ;;  %v1385_v30 = vld [vmem:[%s4130_s19 + $0x150] sm:$0xff]  ;;  %v1387_v49 = vld [vmem:[%s4130_s19 + $0x160] sm:$0xff]  ;;  %v1388_v58 = vld [vmem:[%s4130_s19 + $0x168] sm:$0xff]  ;;  %v6519_v39 = vadd.f32 %v6320_v2, %v1375_v19  ;;  %v6537_v2 = vadd.f32 %v6348_v43, %v1381_v5 }
 0x255   : > { %v8147_v15 = vld [vmem:[#allocation61_spill] sm:$0xff]  ;;  %v8148_v50 = vld [vmem:[#allocation136_spill] sm:$0xff]  ;;  %v8149_v24 = vld [vmem:[#allocation142_spill] sm:$0xff]  ;;  %v6540_v19 = vadd.f32 %v6352_v18, %v1382_v55  ;;  %v6558_v43 = vadd.f32 %v6384_v32, %v1388_v58 }
 0x256   : > { %8146 = vst [vmem:[#allocation67_spill] sm:$0xff] %v6498_v61  ;;  %v6504_v0 = vadd.f32 %v8147_v15, %v1371_v1  ;;  %v6507_v9 = vadd.f32 %v8148_v50, %v1372_v42  ;;  %v6510_v35 = vadd.f32 %v8149_v24, %v1373_v7  ;;  %v8150_v56 = vld [vmem:[#allocation162_spill] sm:$0xff]  ;;  %v1389_v16 = vld [vmem:[%s4130_s19 + $0x170] sm:$0xff]  ;;  %v1390_v63 = vld [vmem:[%s4130_s19 + $0x178] sm:$0xff]  ;;  %v6534_v15 = vadd.f32 %v6344_v20, %v1380_v46 }
 0x257   : > { %v6513_v31 = vadd.f32 %v8150_v56, %v1374_v27  ;;  %v8151_v10 = vld [vmem:[#allocation137_spill] sm:$0xff]  ;;  %v8152_v1 = vld [vmem:[#allocation138_spill] sm:$0xff]  ;;  %v8153_v50 = vld [vmem:[#allocation144_spill] sm:$0xff]  ;;  %v6531_v27 = vadd.f32 %v6340_v38, %v1379_v25  ;;  %v6552_v38 = vadd.f32 %v6372_v13, %v1386_v11  ;;  %v6555_v20 = vadd.f32 %v6380_v33, %v1387_v49 }
 0x258   : > { %v6522_v61 = vadd.f32 %v8151_v10, %v1376_v45  ;;  %v6525_v42 = vadd.f32 %v8152_v1, %v1377_v28  ;;  %v6528_v7 = vadd.f32 %v8153_v50, %v1378_v6  ;;  %v6543_v45 = vadd.f32 %v6360_v57, %v1383_v3  ;;  %v8154_v57 = vld [vmem:[#allocation140_spill] sm:$0xff] }
 0x259   : > { %v6546_v28 = vadd.f32 %v6364_v54, %v1384_v36  ;;  %v6549_v6 = vadd.f32 %v6368_v40, %v1385_v30  ;;  %v6561_v18 = vadd.f32 %v6388_v41, %v1389_v16  ;;  %v6564_v25 = vadd.f32 %v8154_v57, %v1390_v63 }
 0x25a   : > { %v3622_v13 = vmov 0.0  }
 0x25b   : > { %1491 = vst [vmem:[#allocation2] sm:$0xff] %v3622_v13 }
 0x25c PF: > { %v2626_v32 = vpack.c.bf16 %v6462_v23, %v6459_v14  ;;  %v2628_v33 = vpack.c.bf16 %v6402_v29, %v6399_v26  ;;  %v2630_v41 = vpack.c.bf16 %v6468_v62, %v6465_v48  ;;  %v3623_v54 = vmov 0.0|0.0   ;;  %v1494_v63 = vld [vmem:[%s4122_s25 + $0x8] sm:$0xff]  ;;  %s3626_s20 = smov 0.0  }
 0x25d   : > { %2658 = vmatprep.subr.bf16.mxu1 %v3623_v54  ;;  %v2659_v40 = vpack.c.bf16 %v6522_v61, %v6519_v39  ;;  %v2632_v30 = vpack.c.bf16 %v6408_v22, %v6405_v4  ;;  %v2662_v46 = vpack.c.bf16 %v6528_v7, %v6525_v42  ;;  %v2634_v5 = vpack.c.bf16 %v6477_v52, %v6474_v60  ;;  %v8156_v1 = vld [vmem:[#allocation139_spill] sm:$0xff]  ;;  %v8157_v50 = vld [vmem:[#allocation68_spill] sm:$0xff] }
 0x25e   : > { %2627 = vmatprep.subr.bf16.mxu0 %v2626_v32  ;;  %1560 = vmatprep.mubr.f32.mxu0 %v1494_v63  ;;  %v2636_v55 = vpack.c.bf16 %v6417_v17, %v6414_v47  ;;  %v2665_v3 = vpack.c.bf16 %v6534_v15, %v6531_v27  ;;  %v2638_v36 = vpack.c.bf16 %v6483_v44, %v6480_v59  ;;  %vm3624_vm7 = vmmov 0  }
 0x25f   : > { %2629 = vmatpush3.bf16.msra.mxu0 %v2628_v33  ;;  %2660 = vmatpush3.bf16.msra.mxu1 %v2659_v40  ;;  %v2640_v11 = vpack.c.bf16 %v6423_v53, %v6420_v21  ;;  %v2668_v49 = vpack.c.bf16 %v6540_v19, %v6537_v2  ;;  %v2642_v24 = vpack.c.bf16 %v6492_v34, %v6489_v37  ;;  %v8155_v16 = vld [vmem:[#allocation67_spill] sm:$0xff]  ;;  %v3625_v33 = vmov 0.0   ;;  %v8159_v40 = vld [vmem:[#allocation66_spill] sm:$0xff] }
 0x260   : > { %2631 = vmatprep.subr.bf16.mxu0 %v2630_v41  ;;  %2661 = vmatprep.subr.bf16.mxu1 %v3623_v54  ;;  %v2644_v56 = vpack.c.bf16 %v6432_v12, %v6429_v51  ;;  %v2671_v58 = vpack.c.bf16 %v6546_v28, %v6543_v45  ;;  %v2646_v10 = vpack.c.bf16 %v8155_v16, %v6495_v8  ;;  %v8158_v41 = vld [vmem:[#allocation141_spill] sm:$0xff]  ;;  %vm2184_vm2 = vcmask (%p1487_p6), 1040384  }
 0x261   : > { %v2648_v57 = vpack.c.bf16 %v8157_v50, %v8156_v1  ;;  %v2674_v13 = vpack.c.bf16 %v6552_v38, %v6549_v6  ;;  %v2650_v32 = vpack.c.bf16 %v6507_v9, %v6504_v0  ;;  %2623 = vmatprep.mubr.msk.f32.mxu1 %vm3624_vm7, %v3625_v33  ;;  %v2652_v63 = vpack.c.bf16 %v8159_v40, %v8158_v41  ;;  %v1495_v33 = vld [vmem:[%s4122_s25 + $0x10] sm:$0xff] }
 0x263   : > { %2633 = vmatpush3.bf16.msra.mxu0 %v2632_v30  ;;  %2663 = vmatpush3.bf16.msra.mxu1 %v2662_v46  ;;  %v2677_v30 = vpack.c.bf16 %v6558_v43, %v6555_v20  ;;  %v2654_v46 = vpack.c.bf16 %v6513_v31, %v6510_v35 }
 0x264   : > { %2635 = vmatprep.subr.bf16.mxu0 %v2634_v5  ;;  %2664 = vmatprep.subr.bf16.mxu1 %v3623_v54  ;;  %v1653_v5 = vmul.f32 -0.5, %v6399_v26 }
 0x267   : > { %2637 = vmatpush3.bf16.msra.mxu0 %v2636_v55  ;;  %2666 = vmatpush3.bf16.msra.mxu1 %v2665_v3  ;;  %v1654_v55 = vmul.f32 -0.5, %v6402_v29  ;;  %v1655_v3 = vmul.f32 -0.5, %v6405_v4 }
 0x268   : > { %2639 = vmatprep.subr.bf16.mxu0 %v2638_v36  ;;  %2667 = vmatprep.subr.bf16.mxu1 %v3623_v54  ;;  %v8160_v36 = vld [vmem:[#allocation70_spill] sm:$0xff] }
 0x26b   : > { %2641 = vmatpush3.bf16.msra.mxu0 %v2640_v11  ;;  %2669 = vmatpush3.bf16.msra.mxu1 %v2668_v49  ;;  %v8161_v11 = vld [vmem:[#allocation143_spill] sm:$0xff] }
 0x26c   : > { %2643 = vmatprep.subr.bf16.mxu0 %v2642_v24  ;;  %2670 = vmatprep.subr.bf16.mxu1 %v3623_v54  ;;  %v2656_v49 = vpack.c.bf16 %v8161_v11, %v8160_v36  ;;  %v2680_v24 = vpack.c.bf16 %v6564_v25, %v6561_v18 }
 0x26f   : > { %2645 = vmatpush3.bf16.msra.mxu0 %v2644_v56  ;;  %2672 = vmatpush3.bf16.msra.mxu1 %v2671_v58  ;;  %v1656_v56 = vmul.f32 -0.5, %v6408_v22  ;;  %v1701_v58 = vmul.f32 %v1653_v5, %v6399_v26 }
 0x270   : > { %2647 = vmatprep.subr.bf16.mxu0 %v2646_v10  ;;  %2673 = vmatprep.subr.bf16.mxu1 %v3623_v54  ;;  %v1702_v10 = vmul.f32 %v1654_v55, %v6402_v29  ;;  %v1660_v29 = vmul.f32 -0.5, %v6423_v53 }
 0x273   : > { %2649 = vmatpush3.bf16.msra.mxu0 %v2648_v57  ;;  %2675 = vmatpush3.bf16.msra.mxu1 %v2674_v13  ;;  %v1657_v57 = vmul.f32 -0.5, %v6414_v47  ;;  %v1703_v13 = vmul.f32 %v1655_v3, %v6405_v4  ;;  %v1661_v3 = vmul.f32 -0.5, %v6429_v51 }
 0x274   : > { %2651 = vmatprep.subr.bf16.mxu0 %v2650_v32  ;;  %2676 = vmatprep.subr.bf16.mxu1 %v3623_v54  ;;  %v1493_v32 = vld [vmem:[%s4122_s25] sm:$0xff]  ;;  %s8258_s25 = sld [smem:[#allocation31_spill]] }
 0x275   : > { %v1705_v26 = vmul.f32 %v1657_v57, %v6414_v47  ;;  %v1709_v47 = vmul.f32 %v1661_v3, %v6429_v51  ;;  %v1670_v3 = vmul.f32 -0.5, %v6462_v23 }
 0x277   : > { %2653 = vmatpush3.bf16.msra.mxu0 %v2652_v63  ;;  %2678 = vmatpush3.bf16.msra.mxu1 %v2677_v30  ;;  %v1658_v63 = vmul.f32 -0.5, %v6417_v17  ;;  %v1704_v30 = vmul.f32 %v1656_v56, %v6408_v22  ;;  %v1662_v22 = vmul.f32 -0.5, %v6432_v12  ;;  %v1708_v56 = vmul.f32 %v1660_v29, %v6423_v53 }
 0x278   : > { %2655 = vmatprep.subr.bf16.mxu0 %v2654_v46  ;;  %2679 = vmatprep.subr.bf16.mxu1 %v3623_v54  ;;  %v1749_v46 = vadd.f32 %v1702_v10, %v1701_v58  ;;  %v1659_v54 = vmul.f32 -0.5, %v6420_v21  ;;  %v1663_v10 = vmul.f32 -0.5, %v8156_v1 }
 0x279   : > { %v1706_v4 = vmul.f32 %v1658_v63, %v6417_v17  ;;  %v1710_v17 = vmul.f32 %v1662_v22, %v6432_v12 }
 0x27a   : > { %v1750_v5 = vadd.f32 %v1749_v46, %v1703_v13  ;;  %v1664_v13 = vmul.f32 -0.5, %v8157_v50  ;;  %p1639_p5 = scmp.eq.s32.totalorder %s8258_s25, 0 }
 0x27b   : > { %2657 = vmatpush3.bf16.msra.mxu0 %v2656_v49  ;;  %2681 = vmatpush3.bf16.msra.mxu1 %v2680_v24  ;;  %v1707_v49 = vmul.f32 %v1659_v54, %v6420_v21  ;;  %v1711_v21 = vmul.f32 %v1663_v10, %v8156_v1  ;;  %v1667_v54 = vmul.f32 -0.5, %v8160_v36  ;;  %v1673_v10 = vmul.f32 -0.5, %v6474_v60 }
 0x27c   : > { %v1751_v55 = vadd.f32 %v1750_v5, %v1704_v30  ;;  %v1666_v30 = vmul.f32 -0.5, %v8159_v40  ;;  %v1712_v53 = vmul.f32 %v1664_v13, %v8157_v50  ;;  %v1668_v5 = vmul.f32 -0.5, %v8161_v11  ;;  %p1642_p12 = pnand %p1639_p5, %p1487_p6 }
 0x27d   : > { %v1715_v1 = vmul.f32 %v1667_v54, %v8160_v36  ;;  %v1679_v54 = vmul.f32 -0.5, %v6495_v8 }
 0x27e   : > { %1561 = vmatmul.mubr.f32.vlgmr.msra.gmra.mrb[0].mxu0 %v1493_v32  ;;  %2624 = vmatmul.mubr.f32.vlgmr.msra.gmra.mrb[0].mxu1 %v1495_v33  ;;  %v1752_v24 = vadd.f32 %v1751_v55, %v1705_v26  ;;  %v1665_v33 = vmul.f32 -0.5, %v8158_v41  ;;  %v1714_v12 = vmul.f32 %v1666_v30, %v8159_v40  ;;  %v1716_v50 = vmul.f32 %v1668_v5, %v8161_v11  ;;  %2714 = sst [smem:[#allocation17]] (!%p1642_p12), %s3626_s20 }
 0x27f   : > { %v1718_v40 = vmul.f32 %v1670_v3, %v6462_v23  ;;  %2715 = sst [smem:[#allocation17 + $0x1]] (!%p1642_p12), %s3626_s20  ;;  %s2151_s4 = sld [smem:[#allocation17]] }
 0x280   : > { %v1753_v58 = vadd.f32 %v1752_v24, %v1706_v4  ;;  %v1713_v51 = vmul.f32 %v1665_v33, %v8158_v41  ;;  %v1669_v4 = vmul.f32 -0.5, %v6459_v14  ;;  %v1671_v24 = vmul.f32 -0.5, %v6465_v48  ;;  %s2524_s19 = sld [smem:[#allocation17 + $0x1]] }
 0x281   : > { %v1676_v33 = vmul.f32 -0.5, %v6483_v44 }
 0x282   : > { %v1754_v57 = vadd.f32 %v1753_v58, %v1707_v49  ;;  %v1717_v41 = vmul.f32 %v1669_v4, %v6459_v14  ;;  %v1719_v36 = vmul.f32 %v1671_v24, %v6465_v48  ;;  %v1721_v14 = vmul.f32 %v1673_v10, %v6474_v60 }
 0x283   : > { %v1682_v4 = vmul.f32 -0.5, %v6507_v9  ;;  %v1685_v24 = vmul.f32 -0.5, %v6519_v39 }
 0x284   : > { %v1755_v32 = vadd.f32 %v1754_v57, %v1708_v56  ;;  %v1672_v56 = vmul.f32 -0.5, %v6468_v62  ;;  %v1674_v57 = vmul.f32 -0.5, %v6477_v52 }
 0x285   : > { %v1733_v10 = vmul.f32 %v1685_v24, %v6519_v39  ;;  %v1691_v39 = vmul.f32 -0.5, %v6537_v2 }
 0x286   : > { %v1756_v63 = vadd.f32 %v1755_v32, %v1709_v47  ;;  %v1720_v11 = vmul.f32 %v1672_v56, %v6468_v62  ;;  %v1722_v23 = vmul.f32 %v1674_v57, %v6477_v52  ;;  %v1724_v62 = vmul.f32 %v1676_v33, %v6483_v44 }
 0x287   : > { %v1692_v33 = vmul.f32 -0.5, %v6540_v19 }
 0x288   : > { %v1757_v46 = vadd.f32 %v1756_v63, %v1710_v17  ;;  %v1675_v17 = vmul.f32 -0.5, %v6480_v59  ;;  %v1677_v63 = vmul.f32 -0.5, %v6489_v37 }
 0x28a   : > { %v1758_v26 = vadd.f32 %v1757_v46, %v1711_v21  ;;  %v1723_v48 = vmul.f32 %v1675_v17, %v6480_v59  ;;  %v1725_v60 = vmul.f32 %v1677_v63, %v6489_v37  ;;  %v1727_v59 = vmul.f32 %v1679_v54, %v6495_v8 }
 0x28c   : > { %v1759_v29 = vadd.f32 %v1758_v26, %v1712_v53  ;;  %v1678_v53 = vmul.f32 -0.5, %v6492_v34  ;;  %v1680_v26 = vmul.f32 -0.5, %v8155_v16 }
 0x28e   : > { %v1760_v55 = vadd.f32 %v1759_v29, %v1713_v51  ;;  %v1726_v52 = vmul.f32 %v1678_v53, %v6492_v34  ;;  %v1728_v44 = vmul.f32 %v1680_v26, %v8155_v16  ;;  %v1730_v34 = vmul.f32 %v1682_v4, %v6507_v9 }
 0x28f   : > { %v1686_v16 = vmul.f32 -0.5, %v6522_v61  ;;  %v1696_v53 = vmul.f32 -0.5, %v6552_v38  ;;  %v1740_v4 = vmul.f32 %v1692_v33, %v6540_v19 }
 0x290   : > { %v1761_v49 = vadd.f32 %v1760_v55, %v1714_v12  ;;  %v1681_v12 = vmul.f32 -0.5, %v6504_v0  ;;  %v1683_v55 = vmul.f32 -0.5, %v6510_v35 }
 0x291   : > { %v1734_v57 = vmul.f32 %v1686_v16, %v6522_v61  ;;  %v8174_v16 = vld [vmem:[#allocation149_spill] sm:$0xff] }
 0x292   : > { %v1762_v22 = vadd.f32 %v1761_v49, %v1715_v1  ;;  %v1729_v37 = vmul.f32 %v1681_v12, %v6504_v0  ;;  %v1731_v8 = vmul.f32 %v1683_v55, %v6510_v35  ;;  %v1687_v0 = vmul.f32 -0.5, %v6525_v42 }
 0x293   : > { %v1688_v35 = vmul.f32 -0.5, %v6528_v7  ;;  %v1739_v12 = vmul.f32 %v1691_v39, %v6537_v2 }
 0x294   : > { %v1763_v58 = vadd.f32 %v1762_v22, %v1716_v50  ;;  %v1684_v50 = vmul.f32 -0.5, %v6513_v31  ;;  %v8162_v22 = vld [vmem:[#allocation79_spill] sm:$0xff] }
 0x295   : > { %3116 = vlog2.f32 %v8162_v22  ;;  %v1736_v61 = vmul.f32 %v1688_v35, %v6528_v7  ;;  %v1700_v7 = vmul.f32 -0.5, %v6564_v25  ;;  %v8173_v22 = vld [vmem:[#allocation82_spill] sm:$0xff] }
 0x296   : > { %v1764_v47 = vadd.f32 %v1763_v58, %v1717_v41  ;;  %v1732_v56 = vmul.f32 %v1684_v50, %v6513_v31  ;;  %v8163_v58 = vld [vmem:[#allocation163_spill] sm:$0xff]  ;;  %v1735_v31 = vmul.f32 %v1687_v0, %v6525_v42  ;;  %v1695_v42 = vmul.f32 -0.5, %v6549_v6  ;;  %v8171_v50 = vld [vmem:[#allocation72_spill] sm:$0xff] }
 0x297   : > { %3118 = vlog2.f32 %v8163_v58 }
 0x298   : > { %v1765_v13 = vadd.f32 %v1764_v47, %v1718_v40  ;;  %v8165_v47 = vld [vmem:[#allocation81_spill] sm:$0xff]  ;;  %v1743_v2 = vmul.f32 %v1695_v42, %v6549_v6 }
 0x29a   : > { %v1766_v32 = vadd.f32 %v1765_v13, %v1719_v36  ;;  %v8164_v36 = vld [vmem:[#allocation44_spill] sm:$0xff]  ;;  %v1689_v13 = vmul.f32 -0.5, %v6531_v27 }
 0x29b   : > { %3120 = vlog2.f32 %v8164_v36 }
 0x29c   : > { %v1767_v21 = vadd.f32 %v1766_v32, %v1720_v11  ;;  %3122 = vlog2.f32 %v8165_v47  ;;  %v1690_v32 = vmul.f32 -0.5, %v6534_v15 }
 0x29e   : > { %v1768_v30 = vadd.f32 %v1767_v21, %v1721_v14  ;;  %v8166_v14 = vld [vmem:[#allocation86_spill] sm:$0xff]  ;;  %v1694_v21 = vmul.f32 -0.5, %v6546_v28 }
 0x29f   : > { %3124 = vlog2.f32 %v8166_v14  ;;  %v8178_v14 = vld [vmem:[#allocation91_spill] sm:$0xff] }
 0x2a0   : > { %v1769_v46 = vadd.f32 %v1768_v30, %v1722_v23  ;;  %v1693_v23 = vmul.f32 -0.5, %v6543_v45  ;;  %v3117_v30 = vpop.eup %3116 }
 0x2a1   : > { %v3119_v54 = vpop.eup %3118  ;;  %v1807_v55 = vmul.f32 0.6931472, %v3117_v30 }
 0x2a2   : > { %v1770_v51 = vadd.f32 %v1769_v46, %v1723_v48  ;;  %v8167_v48 = vld [vmem:[#allocation164_spill] sm:$0xff]  ;;  %v1698_v46 = vmul.f32 -0.5, %v6558_v43 }
 0x2a3   : > { %3126 = vlog2.f32 %v8167_v48 }
 0x2a4   : > { %v1771_v5 = vadd.f32 %v1770_v51, %v1724_v62  ;;  %v1697_v62 = vmul.f32 -0.5, %v6555_v20  ;;  %v1737_v51 = vmul.f32 %v1689_v13, %v6531_v27  ;;  %v1809_v27 = vmul.f32 0.6931472, %v3119_v54  ;;  %v8177_v13 = vld [vmem:[#allocation76_spill] sm:$0xff]  ;;  %v8181_v54 = vld [vmem:[#allocation57_spill] sm:$0xff] }
 0x2a5   : > { %v6736_v35 = vmul.f32 %v1698_v46, %v6558_v43 }
 0x2a6   : > { %v1772_v29 = vadd.f32 %v1771_v5, %v1725_v60  ;;  %v1699_v60 = vmul.f32 -0.5, %v6561_v18  ;;  %v1738_v5 = vmul.f32 %v1690_v32, %v6534_v15  ;;  %v1742_v15 = vmul.f32 %v1694_v21, %v6546_v28  ;;  %v8176_v28 = vld [vmem:[#allocation54_spill] sm:$0xff]  ;;  %v8179_v21 = vld [vmem:[#allocation83_spill] sm:$0xff] }
 0x2a7   : > { %v6727_v19 = vmul.f32 %v1697_v62, %v6555_v20  ;;  %v1903_v6 = vsub.f32 0.0, %v1809_v27  ;;  %v6748_v62 = vmul.f32 %v1700_v7, %v6564_v25 }
 0x2a8   : > { %v1773_v1 = vadd.f32 %v1772_v29, %v1726_v52  ;;  %v8168_v52 = vld [vmem:[#allocation77_spill] sm:$0xff]  ;;  %v3121_v29 = vpop.eup %3120 }
 0x2a9   : > { %3128 = vlog2.f32 %v8168_v52 }
 0x2aa   : > { %v1774_v3 = vadd.f32 %v1773_v1, %v1727_v59  ;;  %v8169_v59 = vld [vmem:[#allocation165_spill] sm:$0xff] }
 0x2ab   : > { %3130 = vlog2.f32 %v8169_v59 }
 0x2ac   : > { %v1775_v49 = vadd.f32 %v1774_v3, %v1728_v44  ;;  %v1741_v44 = vmul.f32 %v1693_v23, %v6543_v45  ;;  %v8170_v3 = vld [vmem:[#allocation166_spill] sm:$0xff]  ;;  %v1811_v45 = vmul.f32 0.6931472, %v3121_v29 }
 0x2ad   : > { %3132 = vlog2.f32 %v8170_v3 }
 0x2ae   : > { %v1776_v41 = vadd.f32 %v1775_v49, %v1729_v37  ;;  %v3123_v37 = vpop.eup %3122  ;;  %v8172_v49 = vld [vmem:[#allocation106_spill] sm:$0xff]  ;;  %3134 = vlog2.f32 %v8173_v22  ;;  %v1904_v32 = vsub.f32 0.0, %v1811_v45 }
 0x2af   : > { %v1951_v24 = vmul.f32 0.5, %v8172_v49  ;;  %v1813_v0 = vmul.f32 0.6931472, %v3123_v37  ;;  %3136 = vlog2.f32 %v8176_v28 }
 0x2b0   : > { %v1777_v40 = vadd.f32 %v1776_v41, %v1730_v34  ;;  %v1950_v34 = vmul.f32 0.5, %v8171_v50  ;;  %3138 = vlog2.f32 %v8178_v14 }
 0x2b1   : > { %v1999_v47 = vmul.f32 %v1951_v24, %v8172_v49  ;;  %3140 = vlog2.f32 %v8179_v21  ;;  %v8185_v49 = vld [vmem:[#allocation84_spill] sm:$0xff] }
 0x2b2   : > { %v1778_v9 = vadd.f32 %v1777_v40, %v1731_v8  ;;  %v1744_v8 = vmul.f32 %v1696_v53, %v6552_v38  ;;  %v3125_v40 = vpop.eup %3124  ;;  %v1998_v38 = vmul.f32 %v1950_v34, %v8171_v50  ;;  %3142 = vlog2.f32 %v8181_v54  ;;  %v8186_v24 = vld [vmem:[#allocation100_spill] sm:$0xff]  ;;  %v8193_v54 = vld [vmem:[#allocation87_spill] sm:$0xff] }
 0x2b3   : > { %v3127_v20 = vpop.eup %3126  ;;  %v2047_v53 = vsub.f32 %v1903_v6, %v1999_v47 }
 0x2b4   : > { %v1779_v11 = vadd.f32 %v1778_v9, %v1732_v56  ;;  %v1952_v56 = vmul.f32 0.5, %v8174_v16  ;;  %v8175_v9 = vld [vmem:[#allocation94_spill] sm:$0xff]  ;;  %v3129_v33 = vpop.eup %3128  ;;  %v1817_v30 = vmul.f32 0.6931472, %v3127_v20 }
 0x2b5   : > { %v1953_v36 = vmul.f32 0.5, %v8175_v9  ;;  %v3131_v48 = vpop.eup %3130  ;;  %v1819_v52 = vmul.f32 0.6931472, %v3129_v33 }
 0x2b6   : > { %v1780_v17 = vadd.f32 %v1779_v11, %v1733_v10  ;;  %v1902_v10 = vsub.f32 0.0, %v1807_v55  ;;  %v2000_v39 = vmul.f32 %v1952_v56, %v8174_v16  ;;  %v8184_v55 = vld [vmem:[#allocation97_spill] sm:$0xff]  ;;  %v1907_v25 = vsub.f32 0.0, %v1817_v30 }
 0x2b7   : > { %v1957_v37 = vmul.f32 0.5, %v8184_v55  ;;  %v1908_v22 = vsub.f32 0.0, %v1819_v52 }
 0x2b8   : > { %v1781_v63 = vadd.f32 %v1780_v17, %v1734_v57  ;;  %v6739_v57 = vmul.f32 %v1699_v60, %v6561_v18  ;;  %v1815_v17 = vmul.f32 0.6931472, %v3125_v40  ;;  %v2001_v18 = vmul.f32 %v1953_v36, %v8175_v9  ;;  %v8182_v60 = vld [vmem:[#allocation152_spill] sm:$0xff] }
 0x2b9   : > { %v2046_v42 = vsub.f32 %v1902_v10, %v1998_v38  ;;  %v2048_v59 = vsub.f32 %v1904_v32, %v2000_v39  ;;  %v8188_v10 = vld [vmem:[#allocation80_spill] sm:$0xff] }
 0x2ba   : > { %v1782_v26 = vadd.f32 %v1781_v63, %v1735_v31  ;;  %v1954_v31 = vmul.f32 0.5, %v8177_v13  ;;  %v8180_v63 = vld [vmem:[#allocation108_spill] sm:$0xff]  ;;  %v1959_v9 = vmul.f32 0.5, %v8188_v10 }
 0x2bb   : > { %v1955_v43 = vmul.f32 0.5, %v8180_v63  ;;  %v2094_v3 = vadd.f32 %v2047_v53, %v2046_v42 }
 0x2bc   : > { %v1783_v1 = vadd.f32 %v1782_v26, %v1736_v61  ;;  %v1905_v61 = vsub.f32 0.0, %v1813_v0  ;;  %v3133_v26 = vpop.eup %3132  ;;  %v8187_v0 = vld [vmem:[#allocation59_spill] sm:$0xff] }
 0x2bd   : > { %v3135_v27 = vpop.eup %3134  ;;  %v2003_v7 = vmul.f32 %v1955_v43, %v8180_v63  ;;  %v1823_v34 = vmul.f32 0.6931472, %v3133_v26  ;;  %v2095_v56 = vadd.f32 %v2094_v3, %v2048_v59  ;;  %v8192_v63 = vld [vmem:[#allocation154_spill] sm:$0xff]  ;;  %v8197_v3 = vld [vmem:[#allocation101_spill] sm:$0xff] }
 0x2be   : > { %v1784_v41 = vadd.f32 %v1783_v1, %v1737_v51  ;;  %v1956_v51 = vmul.f32 0.5, %v8182_v60  ;;  %v8183_v1 = vld [vmem:[#allocation93_spill] sm:$0xff]  ;;  %v3137_v45 = vpop.eup %3136  ;;  %v1961_v43 = vmul.f32 0.5, %v8192_v63 }
 0x2bf   : > { %3144 = vlog2.f32 %v8183_v1  ;;  %v3139_v36 = vpop.eup %3138  ;;  %v2051_v6 = vsub.f32 %v1907_v25, %v2003_v7  ;;  %v8196_v1 = vld [vmem:[#allocation114_spill] sm:$0xff] }
 0x2c0   : > { %v1785_v58 = vadd.f32 %v1784_v41, %v1738_v5  ;;  %v1906_v5 = vsub.f32 0.0, %v1815_v17  ;;  %3146 = vlog2.f32 %v8185_v49  ;;  %v1958_v41 = vmul.f32 0.5, %v8186_v24  ;;  %v3141_v47 = vpop.eup %3140 }
 0x2c1   : > { %3148 = vlog2.f32 %v8187_v0  ;;  %v3143_v33 = vpop.eup %3142  ;;  %v1829_v21 = vmul.f32 0.6931472, %v3139_v36 }
 0x2c2   : > { %v1786_v11 = vadd.f32 %v1785_v58, %v1739_v12  ;;  %v2002_v12 = vmul.f32 %v1954_v31, %v8177_v13  ;;  %v1825_v58 = vmul.f32 0.6931472, %v3135_v27  ;;  %v8189_v13 = vld [vmem:[#allocation95_spill] sm:$0xff]  ;;  %v8190_v31 = vld [vmem:[#allocation112_spill] sm:$0xff]  ;;  %v2006_v14 = vmul.f32 %v1958_v41, %v8186_v24 }
 0x2c3   : > { %3150 = vlog2.f32 %v8189_v13  ;;  %v1960_v17 = vmul.f32 0.5, %v8190_v31 }
 0x2c4   : > { %v1787_v23 = vadd.f32 %v1786_v11, %v1740_v4  ;;  %v1821_v4 = vmul.f32 0.6931472, %v3131_v48  ;;  %v2050_v16 = vsub.f32 %v1906_v5, %v2002_v12  ;;  %v1827_v11 = vmul.f32 0.6931472, %v3137_v45 }
 0x2c5   : > { %v1911_v48 = vsub.f32 0.0, %v1825_v58 }
 0x2c6   : > { %v1788_v46 = vadd.f32 %v1787_v23, %v1741_v44  ;;  %v2049_v44 = vsub.f32 %v1905_v61, %v2001_v18  ;;  %v1909_v28 = vsub.f32 0.0, %v1821_v4  ;;  %v8191_v61 = vld [vmem:[#allocation99_spill] sm:$0xff]  ;;  %v1912_v26 = vsub.f32 0.0, %v1827_v11  ;;  %v8195_v4 = vld [vmem:[#allocation64_spill] sm:$0xff] }
 0x2c7   : > { %3152 = vlog2.f32 %v8191_v61 }
 0x2c8   : > { %v1789_v29 = vadd.f32 %v1788_v46, %v1742_v15  ;;  %v2004_v15 = vmul.f32 %v1956_v51, %v8182_v60  ;;  %v2096_v38 = vadd.f32 %v2095_v56, %v2049_v44  ;;  %v1831_v46 = vmul.f32 0.6931472, %v3141_v47  ;;  %v8194_v60 = vld [vmem:[#allocation88_spill] sm:$0xff] }
 0x2c9   : > { %v3145_v42 = vpop.eup %3144  ;;  %3154 = vlog2.f32 %v8193_v54  ;;  %v1962_v51 = vmul.f32 0.5, %v8194_v60  ;;  %v8207_v54 = vld [vmem:[#allocation147_spill] sm:$0xff] }
 0x2ca   : > { %v1790_v50 = vadd.f32 %v1789_v29, %v1743_v2  ;;  %v2005_v2 = vmul.f32 %v1957_v37, %v8184_v55  ;;  %v2052_v32 = vsub.f32 %v1908_v22, %v2004_v15  ;;  %v2097_v39 = vadd.f32 %v2096_v38, %v2050_v16  ;;  %v3147_v12 = vpop.eup %3146  ;;  %v8199_v15 = vld [vmem:[#allocation71_spill] sm:$0xff]  ;;  %v8200_v16 = vld [vmem:[#allocation105_spill] sm:$0xff] }
 0x2cb   : > { %v1833_v29 = vmul.f32 0.6931472, %v3143_v33  ;;  %3156 = vlog2.f32 %v8195_v4  ;;  %v1963_v55 = vmul.f32 0.5, %v8196_v1  ;;  %v1913_v37 = vsub.f32 0.0, %v1829_v21  ;;  %v3149_v7 = vpop.eup %3148  ;;  %v8210_v4 = vld [vmem:[#allocation113_spill] sm:$0xff] }
 0x2cc   : > { %v1791_v40 = vadd.f32 %v1790_v50, %v1744_v8  ;;  %v1910_v8 = vsub.f32 0.0, %v1823_v34  ;;  %v2053_v30 = vsub.f32 %v1909_v28, %v2005_v2  ;;  %v2098_v18 = vadd.f32 %v2097_v39, %v2051_v6  ;;  %v8198_v50 = vld [vmem:[#allocation155_spill] sm:$0xff]  ;;  %v8201_v28 = vld [vmem:[#allocation89_spill] sm:$0xff] }
 0x2cd   : > { %v1835_v44 = vmul.f32 0.6931472, %v3145_v42  ;;  %3158 = vlog2.f32 %v8197_v3  ;;  %v1964_v34 = vmul.f32 0.5, %v8198_v50  ;;  %v1914_v49 = vsub.f32 0.0, %v1831_v46  ;;  %v3151_v45 = vpop.eup %3150  ;;  %v8202_v2 = vld [vmem:[#allocation107_spill] sm:$0xff]  ;;  %v8212_v3 = vld [vmem:[#allocation49_spill] sm:$0xff] }
 0x2ce   : > { %v1792_v20 = vadd.f32 %v1791_v40, %v6727_v19  ;;  %v2007_v19 = vmul.f32 %v1959_v9, %v8188_v10  ;;  %v2054_v52 = vsub.f32 %v1910_v8, %v2006_v14  ;;  %v2099_v5 = vadd.f32 %v2098_v18, %v2052_v32  ;;  %v8204_v8 = vld [vmem:[#allocation48_spill] sm:$0xff] }
 0x2cf   : > { %v1837_v22 = vmul.f32 0.6931472, %v3147_v12  ;;  %3160 = vlog2.f32 %v8199_v15  ;;  %v1965_v56 = vmul.f32 0.5, %v8200_v16  ;;  %v1915_v40 = vsub.f32 0.0, %v1833_v29  ;;  %v8209_v29 = vld [vmem:[#allocation151_spill] sm:$0xff] }
 0x2d0   : > { %v1793_v23 = vadd.f32 %v1792_v20, %v6736_v35  ;;  %v2008_v35 = vmul.f32 %v1960_v17, %v8190_v31  ;;  %v2055_v27 = vsub.f32 %v1911_v48, %v2007_v19  ;;  %v2100_v25 = vadd.f32 %v2099_v5, %v2053_v30  ;;  %v8203_v17 = vld [vmem:[#allocation65_spill] sm:$0xff]  ;;  %v8214_v15 = vld [vmem:[#allocation159_spill] sm:$0xff] }
 0x2d1   : > { %v2011_v58 = vmul.f32 %v1963_v55, %v8196_v1  ;;  %v3153_v9 = vpop.eup %3152  ;;  %v1839_v36 = vmul.f32 0.6931472, %v3149_v7  ;;  %3162 = vlog2.f32 %v8201_v28  ;;  %v1966_v6 = vmul.f32 0.5, %v8202_v2  ;;  %v8216_v28 = vld [vmem:[#allocation116_spill] sm:$0xff] }
 0x2d2   : > { %v1794_v53 = vadd.f32 %v1793_v23, %v6739_v57  ;;  %v2009_v57 = vmul.f32 %v1961_v43, %v8192_v63  ;;  %v2056_v24 = vsub.f32 %v1912_v26, %v2008_v35  ;;  %v2101_v41 = vadd.f32 %v2100_v25, %v2054_v52  ;;  %v8205_v63 = vld [vmem:[#allocation102_spill] sm:$0xff] }
 0x2d3   : > { %v1916_v38 = vsub.f32 0.0, %v1835_v44  ;;  %v2012_v47 = vmul.f32 %v1964_v34, %v8198_v50  ;;  %v3155_v13 = vpop.eup %3154  ;;  %v1841_v31 = vmul.f32 0.6931472, %v3151_v45  ;;  %3164 = vlog2.f32 %v8203_v17  ;;  %v8206_v43 = vld [vmem:[#allocation158_spill] sm:$0xff]  ;;  %v8218_v17 = vld [vmem:[#allocation117_spill] sm:$0xff] }
 0x2d4   : > { %v1795_v59 = vadd.f32 %v1794_v53, %v6748_v62  ;;  %v2010_v62 = vmul.f32 %v1962_v51, %v8194_v60  ;;  %v2057_v0 = vsub.f32 %v1913_v37, %v2009_v57  ;;  %v2102_v10 = vadd.f32 %v2101_v41, %v2055_v27  ;;  %v8208_v60 = vld [vmem:[#allocation111_spill] sm:$0xff]  ;;  %v8211_v44 = vld [vmem:[#allocation90_spill] sm:$0xff] }
 0x2d5   : > { %v1967_v14 = vmul.f32 0.5, %v8204_v8  ;;  %v1917_v32 = vsub.f32 0.0, %v1837_v22  ;;  %v2013_v39 = vmul.f32 %v1965_v56, %v8200_v16  ;;  %v2059_v33 = vsub.f32 %v1915_v40, %v2011_v58  ;;  %v3157_v21 = vpop.eup %3156  ;;  %v8213_v22 = vld [vmem:[#allocation69_spill] sm:$0xff] }
 0x2d6   : > { %1796 = vadd.xlane.f32.xlu0 %v1795_v59  ;;  %v2058_v20 = vsub.f32 %v1914_v49, %v2010_v62  ;;  %v2103_v11 = vadd.f32 %v2102_v10, %v2056_v24  ;;  %v1843_v61 = vmul.f32 0.6931472, %v3153_v9  ;;  %3166 = vlog2.f32 %v8205_v63  ;;  %v8220_v63 = vld [vmem:[#allocation119_spill] sm:$0xff] }
 0x2d7   : > { %v1968_v48 = vmul.f32 0.5, %v8206_v43  ;;  %v1918_v19 = vsub.f32 0.0, %v1839_v36  ;;  %v2014_v30 = vmul.f32 %v1966_v6, %v8202_v2  ;;  %v2060_v18 = vsub.f32 %v1916_v38, %v2012_v47  ;;  %v3159_v53 = vpop.eup %3158  ;;  %v8215_v36 = vld [vmem:[#allocation45_spill] sm:$0xff] }
 0x2d8   : > { %v2104_v23 = vadd.f32 %v2103_v11, %v2057_v0  ;;  %v1845_v46 = vmul.f32 0.6931472, %v3155_v13  ;;  %3168 = vlog2.f32 %v8207_v54  ;;  %v1969_v51 = vmul.f32 0.5, %v8208_v60  ;;  %v8222_v54 = vld [vmem:[#allocation160_spill] sm:$0xff] }
 0x2d9   : > { %v1919_v26 = vsub.f32 0.0, %v1841_v31  ;;  %v2015_v35 = vmul.f32 %v1967_v14, %v8204_v8  ;;  %v2061_v52 = vsub.f32 %v1917_v32, %v2013_v39  ;;  %v3161_v12 = vpop.eup %3160  ;;  %v1847_v59 = vmul.f32 0.6931472, %v3157_v21  ;;  %v8217_v31 = vld [vmem:[#allocation148_spill] sm:$0xff] }
 0x2da   : > { %v2105_v42 = vadd.f32 %v2104_v23, %v2058_v20  ;;  %3170 = vlog2.f32 %v8209_v29  ;;  %v1970_v1 = vmul.f32 0.5, %v8210_v4  ;;  %v1920_v55 = vsub.f32 0.0, %v1843_v61  ;;  %v8219_v61 = vld [vmem:[#allocation92_spill] sm:$0xff]  ;;  %v8224_v29 = vld [vmem:[#allocation50_spill] sm:$0xff] }
 0x2db   : > { %v2016_v37 = vmul.f32 %v1968_v48, %v8206_v43  ;;  %v2062_v57 = vsub.f32 %v1918_v19, %v2014_v30  ;;  %v3163_v25 = vpop.eup %3162  ;;  %v1849_v7 = vmul.f32 0.6931472, %v3159_v53  ;;  %3172 = vlog2.f32 %v8211_v44  ;;  %v8226_v44 = vld [vmem:[#allocation118_spill] sm:$0xff] }
 0x2dc   : > { %v2106_v5 = vadd.f32 %v2105_v42, %v2059_v33  ;;  %v1971_v50 = vmul.f32 0.5, %v8212_v3  ;;  %v1921_v34 = vsub.f32 0.0, %v1845_v46  ;;  %v2017_v49 = vmul.f32 %v1969_v51, %v8208_v60  ;;  %v8221_v46 = vld [vmem:[#allocation74_spill] sm:$0xff] }
 0x2dd   : > { %v2063_v62 = vsub.f32 %v1919_v26, %v2015_v35  ;;  %v3165_v41 = vpop.eup %3164  ;;  %v1851_v45 = vmul.f32 0.6931472, %v3161_v12  ;;  %3174 = vlog2.f32 %v8213_v22  ;;  %v1972_v16 = vmul.f32 0.5, %v8214_v15  ;;  %v8228_v22 = vld [vmem:[#allocation52_spill] sm:$0xff] }
 0x2de   : > { %v2107_v27 = vadd.f32 %v2106_v5, %v2060_v18  ;;  %v1922_v56 = vsub.f32 0.0, %v1847_v59  ;;  %v2018_v40 = vmul.f32 %v1970_v1, %v8210_v4  ;;  %v2064_v58 = vsub.f32 %v1920_v55, %v2016_v37  ;;  %v8223_v59 = vld [vmem:[#allocation46_spill] sm:$0xff] }
 0x2df   : > { %v1853_v9 = vmul.f32 0.6931472, %v3163_v25  ;;  %3176 = vlog2.f32 %v8215_v36  ;;  %v1973_v2 = vmul.f32 0.5, %v8216_v28  ;;  %v1923_v6 = vsub.f32 0.0, %v1849_v7  ;;  %v8225_v7 = vld [vmem:[#allocation73_spill] sm:$0xff] }
 0x2e0   : > { %v2108_v24 = vadd.f32 %v2107_v27, %v2061_v52  ;;  %v3167_v10 = vpop.eup %3166  ;;  %v2019_v38 = vmul.f32 %v1971_v50, %v8212_v3  ;;  %v2065_v47 = vsub.f32 %v1921_v34, %v2017_v49  ;;  %v1855_v13 = vmul.f32 0.6931472, %v3165_v41  ;;  %v8230_v36 = vld [vmem:[#allocation121_spill] sm:$0xff] }
 0x2e1   : > { %3178 = vlog2.f32 %v8217_v31  ;;  %v1974_v8 = vmul.f32 0.5, %v8218_v17  ;;  %v1924_v14 = vsub.f32 0.0, %v1851_v45  ;;  %v2020_v32 = vmul.f32 %v1972_v16, %v8214_v15  ;;  %v8227_v45 = vld [vmem:[#allocation96_spill] sm:$0xff] }
 0x2e2   : > { %v2109_v0 = vadd.f32 %v2108_v24, %v2062_v57  ;;  %v3169_v11 = vpop.eup %3168  ;;  %v2066_v39 = vsub.f32 %v1922_v56, %v2018_v40  ;;  %v1857_v21 = vmul.f32 0.6931472, %v3167_v10  ;;  %3180 = vlog2.f32 %v8219_v61  ;;  %v8232_v31 = vld [vmem:[#allocation120_spill] sm:$0xff]  ;;  %v8234_v61 = vld [vmem:[#allocation55_spill] sm:$0xff] }
 0x2e3   : > { %v1975_v43 = vmul.f32 0.5, %v8220_v63  ;;  %v1925_v48 = vsub.f32 0.0, %v1853_v9  ;;  %v2021_v19 = vmul.f32 %v1973_v2, %v8216_v28  ;;  %v2067_v30 = vsub.f32 %v1923_v6, %v2019_v38  ;;  %v8229_v9 = vld [vmem:[#allocation78_spill] sm:$0xff] }
 0x2e4   : > { %v2110_v20 = vadd.f32 %v2109_v0, %v2063_v62  ;;  %v3171_v23 = vpop.eup %3170  ;;  %v1859_v53 = vmul.f32 0.6931472, %v3169_v11  ;;  %3182 = vlog2.f32 %v8221_v46  ;;  %v1976_v60 = vmul.f32 0.5, %v8222_v54 }
 0x2e5   : > { %v3173_v42 = vpop.eup %3172  ;;  %v1926_v51 = vsub.f32 0.0, %v1855_v13  ;;  %v2022_v26 = vmul.f32 %v1974_v8, %v8218_v17  ;;  %v2068_v35 = vsub.f32 %v1924_v14, %v2020_v32  ;;  %v1861_v12 = vmul.f32 0.6931472, %v3171_v23  ;;  %v8231_v13 = vld [vmem:[#allocation110_spill] sm:$0xff] }
 0x2e6   : > { %v2111_v33 = vadd.f32 %v2110_v20, %v2064_v58  ;;  %3184 = vlog2.f32 %v8223_v59  ;;  %v1977_v4 = vmul.f32 0.5, %v8224_v29  ;;  %v1927_v1 = vsub.f32 0.0, %v1857_v21  ;;  %v8233_v21 = vld [vmem:[#allocation153_spill] sm:$0xff] }
 0x2e7   : > { %v3175_v5 = vpop.eup %3174  ;;  %v2023_v55 = vmul.f32 %v1975_v43, %v8220_v63  ;;  %v2069_v37 = vsub.f32 %v1925_v48, %v2021_v19  ;;  %v1863_v25 = vmul.f32 0.6931472, %v3173_v42  ;;  %3186 = vlog2.f32 %v8225_v7 }
 0x2e8   : > { %v2112_v18 = vadd.f32 %v2111_v33, %v2065_v47  ;;  %v1978_v3 = vmul.f32 0.5, %v8226_v44  ;;  %v1928_v50 = vsub.f32 0.0, %v1859_v53  ;;  %v2024_v34 = vmul.f32 %v1976_v60, %v8222_v54  ;;  %v8235_v53 = vld [vmem:[#allocation103_spill] sm:$0xff] }
 0x2e9   : > { %v3177_v27 = vpop.eup %3176  ;;  %v2070_v49 = vsub.f32 %v1926_v51, %v2022_v26  ;;  %v1865_v41 = vmul.f32 0.6931472, %v3175_v5  ;;  %3188 = vlog2.f32 %v8227_v45  ;;  %v1979_v15 = vmul.f32 0.5, %v8228_v22  ;;  %v8236_v54 = vld [vmem:[#allocation51_spill] sm:$0xff] }
 0x2ea   : > { %v2113_v52 = vadd.f32 %v2112_v18, %v2066_v39  ;;  %v1929_v16 = vsub.f32 0.0, %v1861_v12  ;;  %v2025_v56 = vmul.f32 %v1977_v4, %v8224_v29  ;;  %v2071_v40 = vsub.f32 %v1927_v1, %v2023_v55  ;;  %v8237_v12 = vld [vmem:[#allocation85_spill] sm:$0xff]  ;;  %v8238_v29 = vld [vmem:[#allocation122_spill] sm:$0xff] }
 0x2eb   : > { %v3179_v24 = vpop.eup %3178  ;;  %v1867_v10 = vmul.f32 0.6931472, %v3177_v27  ;;  %3190 = vlog2.f32 %v8229_v9  ;;  %v1980_v28 = vmul.f32 0.5, %v8230_v36  ;;  %v1930_v2 = vsub.f32 0.0, %v1863_v25  ;;  %v8239_v25 = vld [vmem:[#allocation47_spill] sm:$0xff] }
 0x2ec   : > { %v2114_v57 = vadd.f32 %v2113_v52, %v2067_v30  ;;  %v3181_v0 = vpop.eup %3180  ;;  %v2026_v6 = vmul.f32 %v1978_v3, %v8226_v44  ;;  %v2072_v38 = vsub.f32 %v1928_v50, %v2024_v34  ;;  %v1869_v11 = vmul.f32 0.6931472, %v3179_v24  ;;  %v8240_v44 = vld [vmem:[#allocation56_spill] sm:$0xff] }
 0x2ed   : > { %3192 = vlog2.f32 %v8231_v13  ;;  %v1981_v17 = vmul.f32 0.5, %v8232_v31  ;;  %v1931_v8 = vsub.f32 0.0, %v1865_v41  ;;  %v2027_v14 = vmul.f32 %v1979_v15, %v8228_v22  ;;  %v8241_v41 = vld [vmem:[#allocation104_spill] sm:$0xff]  ;;  %v8242_v22 = vld [vmem:[#allocation75_spill] sm:$0xff] }
 0x2ee   : > { %v2115_v62 = vadd.f32 %v2114_v57, %v2068_v35  ;;  %v3183_v20 = vpop.eup %3182  ;;  %v2073_v32 = vsub.f32 %v1929_v16, %v2025_v56  ;;  %v1871_v23 = vmul.f32 0.6931472, %v3181_v0  ;;  %3194 = vlog2.f32 %v8233_v21 }
 0x2ef   : > { %v1982_v63 = vmul.f32 0.5, %v8234_v61  ;;  %v1932_v43 = vsub.f32 0.0, %v1867_v10  ;;  %v2028_v48 = vmul.f32 %v1980_v28, %v8230_v36  ;;  %v2074_v19 = vsub.f32 %v1930_v2, %v2026_v6  ;;  %v8243_v10 = vld [vmem:[#allocation98_spill] sm:$0xff]  ;;  %v8244_v36 = vld [vmem:[#allocation123_spill] sm:$0xff] }
 0x2f0   : > { %v2116_v58 = vadd.f32 %v2115_v62, %v2069_v37  ;;  %v3185_v33 = vpop.eup %3184  ;;  %v1873_v42 = vmul.f32 0.6931472, %v3183_v20  ;;  %3196 = vlog2.f32 %v8235_v53  ;;  %v1933_v46 = vsub.f32 0.0, %v1869_v11  ;;  %v8245_v11 = vld [vmem:[#allocation115_spill] sm:$0xff] }
 0x2f1   : > { %v3187_v18 = vpop.eup %3186  ;;  %v1983_v60 = vmul.f32 0.5, %v8236_v54  ;;  %v2029_v51 = vmul.f32 %v1981_v17, %v8232_v31  ;;  %v2075_v26 = vsub.f32 %v1931_v8, %v2027_v14  ;;  %v1875_v5 = vmul.f32 0.6931472, %v3185_v33  ;;  %v8246_v31 = vld [vmem:[#allocation53_spill] sm:$0xff] }
 0x2f2   : > { %v2117_v47 = vadd.f32 %v2116_v58, %v2070_v49  ;;  %3198 = vlog2.f32 %v8237_v12  ;;  %v1934_v59 = vsub.f32 0.0, %v1871_v23  ;;  %v1984_v4 = vmul.f32 0.5, %v8238_v29  ;;  %v8247_v23 = vld [vmem:[#allocation157_spill] sm:$0xff]  ;;  %v8251_v12 = vld [vmem:[#allocation126_spill] sm:$0xff] }
 0x2f3   : > { %v3189_v52 = vpop.eup %3188  ;;  %v2030_v1 = vmul.f32 %v1982_v63, %v8234_v61  ;;  %v2076_v55 = vsub.f32 %v1932_v43, %v2028_v48  ;;  %v1877_v27 = vmul.f32 0.6931472, %v3187_v18  ;;  %3200 = vlog2.f32 %v8239_v25  ;;  %v8248_v61 = vld [vmem:[#allocation129_spill] sm:$0xff] }
 0x2f4   : > { %v2118_v39 = vadd.f32 %v2117_v47, %v2071_v40  ;;  %v1935_v7 = vsub.f32 0.0, %v1873_v42  ;;  %v1985_v3 = vmul.f32 0.5, %v8240_v44  ;;  %v2031_v50 = vmul.f32 %v1983_v60, %v8236_v54  ;;  %v8249_v42 = vld [vmem:[#allocation109_spill] sm:$0xff] }
 0x2f5   : > { %v3191_v57 = vpop.eup %3190  ;;  %v2077_v34 = vsub.f32 %v1933_v46, %v2029_v51  ;;  %v1879_v24 = vmul.f32 0.6931472, %v3189_v52  ;;  %3202 = vlog2.f32 %v8241_v41  ;;  %v1936_v45 = vsub.f32 0.0, %v1875_v5  ;;  %v8250_v46 = vld [vmem:[#allocation127_spill] sm:$0xff] }
 0x2f6   : > { %v2119_v30 = vadd.f32 %v2118_v39, %v2072_v38  ;;  %v1986_v15 = vmul.f32 0.5, %v8242_v22  ;;  %v2032_v16 = vmul.f32 %v1984_v4, %v8238_v29  ;;  %v2078_v56 = vsub.f32 %v1934_v59, %v2030_v1 }
 0x2f7   : > { %v3193_v62 = vpop.eup %3192  ;;  %v1881_v0 = vmul.f32 0.6931472, %v3191_v57  ;;  %3204 = vlog2.f32 %v8243_v10  ;;  %v1937_v9 = vsub.f32 0.0, %v1877_v27  ;;  %v1987_v28 = vmul.f32 0.5, %v8244_v36  ;;  %v8252_v57 = vld [vmem:[#allocation133_spill] sm:$0xff] }
 0x2f8   : > { %v2120_v35 = vadd.f32 %v2119_v30, %v2073_v32  ;;  %v3195_v58 = vpop.eup %3194  ;;  %v2033_v2 = vmul.f32 %v1985_v3, %v8240_v44  ;;  %v2079_v6 = vsub.f32 %v1935_v7, %v2031_v50  ;;  %v1883_v20 = vmul.f32 0.6931472, %v3193_v62 }
 0x2f9   : > { %3206 = vlog2.f32 %v8245_v11  ;;  %v1938_v13 = vsub.f32 0.0, %v1879_v24  ;;  %v1988_v17 = vmul.f32 0.5, %v8246_v31  ;;  %v2034_v8 = vmul.f32 %v1986_v15, %v8242_v22 }
 0x2fa   : > { %v2121_v37 = vadd.f32 %v2120_v35, %v2074_v19  ;;  %v3197_v47 = vpop.eup %3196  ;;  %v2080_v14 = vsub.f32 %v1936_v45, %v2032_v16  ;;  %v1885_v33 = vmul.f32 0.6931472, %v3195_v58  ;;  %3208 = vlog2.f32 %v8247_v23  ;;  %v8257_v23 = vld [vmem:[#allocation161_spill] sm:$0xff] }
 0x2fb   : > { %v1939_v21 = vsub.f32 0.0, %v1881_v0  ;;  %v1989_v63 = vmul.f32 0.5, %v8248_v61  ;;  %v2035_v43 = vmul.f32 %v1987_v28, %v8244_v36  ;;  %v2081_v48 = vsub.f32 %v1937_v9, %v2033_v2  ;;  %v8255_v2 = vld [vmem:[#allocation58_spill] sm:$0xff] }
 0x2fc   : > { %v2122_v49 = vadd.f32 %v2121_v37, %v2075_v26  ;;  %v3199_v39 = vpop.eup %3198  ;;  %v1887_v18 = vmul.f32 0.6931472, %v3197_v47  ;;  %3210 = vlog2.f32 %v8249_v42  ;;  %v1940_v53 = vsub.f32 0.0, %v1883_v20 }
 0x2fd   : > { %v3201_v30 = vpop.eup %3200  ;;  %v1990_v54 = vmul.f32 0.5, %v8250_v46  ;;  %v2036_v60 = vmul.f32 %v1988_v17, %v8246_v31  ;;  %v2082_v51 = vsub.f32 %v1938_v13, %v2034_v8  ;;  %v1889_v52 = vmul.f32 0.6931472, %v3199_v39  ;;  %v8256_v31 = vld [vmem:[#allocation62_spill] sm:$0xff] }
 0x2fe   : > { %v2123_v40 = vadd.f32 %v2122_v49, %v2076_v55  ;;  %v1941_v5 = vsub.f32 0.0, %v1885_v33  ;;  %v1991_v59 = vmul.f32 0.5, %v8251_v12  ;;  %v2037_v29 = vmul.f32 %v1989_v63, %v8248_v61  ;;  %v8253_v49 = vld [vmem:[#allocation128_spill] sm:$0xff] }
 0x2ff   : > { %v3203_v35 = vpop.eup %3202  ;;  %v2083_v4 = vsub.f32 %v1939_v21, %v2035_v43  ;;  %v1891_v37 = vmul.f32 0.6931472, %v3201_v30  ;;  %v1992_v27 = vmul.f32 0.5, %v8252_v57  ;;  %v1942_v25 = vsub.f32 0.0, %v1887_v18 }
 0x300   : > { %v2124_v38 = vadd.f32 %v2123_v40, %v2077_v34  ;;  %v2038_v7 = vmul.f32 %v1990_v54, %v8250_v46  ;;  %v2084_v44 = vsub.f32 %v1940_v53, %v2036_v60  ;;  %v1893_v34 = vmul.f32 0.6931472, %v3203_v35 }
 0x301   : > { %v3205_v55 = vpop.eup %3204  ;;  %v1993_v62 = vmul.f32 0.5, %v8253_v49  ;;  %v1943_v24 = vsub.f32 0.0, %v1889_v52  ;;  %v2039_v41 = vmul.f32 %v1991_v59, %v8251_v12  ;;  %v2085_v45 = vsub.f32 %v1941_v5, %v2037_v29 }
 0x302   : > { %v2125_v32 = vadd.f32 %v2124_v38, %v2078_v56  ;;  %v1895_v16 = vmul.f32 0.6931472, %v3205_v55  ;;  %v8254_v56 = vld [vmem:[#allocation131_spill] sm:$0xff]  ;;  %v1944_v58 = vsub.f32 0.0, %v1891_v37  ;;  %v2040_v0 = vmul.f32 %v1992_v27, %v8252_v57 }
 0x303   : > { %v3207_v50 = vpop.eup %3206  ;;  %v1994_v40 = vmul.f32 0.5, %v8254_v56  ;;  %v2086_v10 = vsub.f32 %v1942_v25, %v2038_v7  ;;  %v1945_v38 = vsub.f32 0.0, %v1893_v34  ;;  %v2041_v47 = vmul.f32 %v1993_v62, %v8253_v49  ;;  %v1492_v37 = vld [vmem:[#allocation2] sm:$0xff] }
 0x304   : > { %v2126_v19 = vadd.f32 %v2125_v32, %v2079_v6  ;;  %v3209_v15 = vpop.eup %3208  ;;  %v1897_v28 = vmul.f32 0.6931472, %v3207_v50  ;;  %v1995_v6 = vmul.f32 0.5, %v8255_v2  ;;  %v2087_v20 = vsub.f32 %v1943_v24, %v2039_v41 }
 0x305   : > { %v1899_v13 = vmul.f32 0.6931472, %v3209_v15  ;;  %v1996_v17 = vmul.f32 0.5, %v8256_v31  ;;  %v1946_v8 = vsub.f32 0.0, %v1895_v16  ;;  %v2088_v32 = vsub.f32 %v1944_v58, %v2040_v0 }
 0x306   : > { %v2127_v26 = vadd.f32 %v2126_v19, %v2080_v14  ;;  %v3211_v36 = vpop.eup %3210  ;;  %v2042_v14 = vmul.f32 %v1994_v40, %v8254_v56  ;;  %v1997_v21 = vmul.f32 0.5, %v8257_v23  ;;  %v1947_v61 = vsub.f32 0.0, %v1897_v28  ;;  %v2163_v56 = vld [vmem:[%s503_s24] sm:$0x1] (%p1487_p6) }
 0x307   : > { %v1901_v33 = vmul.f32 0.6931472, %v3211_v36  ;;  %v2043_v63 = vmul.f32 %v1995_v6, %v8255_v2  ;;  %v2089_v43 = vsub.f32 %v1945_v38, %v2041_v47  ;;  %v1948_v19 = vsub.f32 0.0, %v1899_v13  ;;  %v2178_v47 = vld [vmem:[%s511_s8] sm:$0x1] (%p1487_p6) }
 0x308   : > { %v2128_v1 = vadd.f32 %v2127_v26, %v2081_v48  ;;  %v2044_v30 = vmul.f32 %v1996_v17, %v8256_v31  ;;  %v2090_v18 = vsub.f32 %v1946_v8, %v2042_v14  ;;  %v2045_v46 = vmul.f32 %v1997_v21, %v8257_v23  ;;  %v2179_v13 = vld [vmem:[%s495_s15] sm:$0x1] (%p1487_p6) }
 0x309   : > { %v1949_v53 = vsub.f32 0.0, %v1901_v33  ;;  %v2091_v54 = vsub.f32 %v1947_v61, %v2043_v63  ;;  %v2165_v40 = vmin.f32 (%p1487_p6), %v2163_v56, 20.0  ;;  %vm2164_vm0 = vcmp.gt.f32.partialorder (%p1487_p6), %v2163_v56, 20.0 }
 0x30a   : > { %v2129_v3 = vadd.f32 %v2128_v1, %v2082_v51  ;;  %v2092_v51 = vsub.f32 %v1948_v19, %v2044_v30 }
 0x30b   : > { %v2093_v35 = vsub.f32 %v1949_v53, %v2045_v46  ;;  %v2166_v58 = vmul.f32 (%p1487_p6), 1.442695, %v2165_v40 }
 0x30c   : > { %v2130_v22 = vadd.f32 %v2129_v3, %v2083_v4 }
 0x30d   : > { %3212 = vpow2.f32 (%p1487_p6), %v2166_v58 }
 0x30e   : > { %v2131_v9 = vadd.f32 %v2130_v22, %v2084_v44 }
 0x310   : > { %v2132_v11 = vadd.f32 %v2131_v9, %v2085_v45 }
 0x312   : > { %v2133_v39 = vadd.f32 %v2132_v11, %v2086_v10 }
 0x314   : > { %v2134_v48 = vadd.f32 %v2133_v39, %v2087_v20 }
 0x316   : > { %v2135_v42 = vadd.f32 %v2134_v48, %v2088_v32  ;;  %v2199_v32 = vmul.f32 (%p1487_p6), 0.5, %v2178_v47 }
 0x317   : > { %v3213_v0 = vpop.eup (%p1487_p6), %3212 }
 0x318   : > { %v2136_v60 = vadd.f32 %v2135_v42, %v2089_v43  ;;  %v2168_v10 = vadd.f32 (%p1487_p6), 1.0, %v3213_v0  ;;  %v2171_v9 = vmul.f32 (%p1487_p6), -0.5, %v3213_v0  ;;  %v2174_v28 = vand.u32 (%p1487_p6), 2147483647, %v3213_v0 }
 0x319   : > { %v2200_v21 = vmul.f32 (%p1487_p6), %v2199_v32, %v2178_v47 }
 0x31a   : > { %v2137_v26 = vadd.f32 %v2136_v60, %v2090_v18  ;;  %3214 = vlog2.f32 (%p1487_p6), %v2168_v10  ;;  %v2172_v36 = vadd.f32 (%p1487_p6), 1.0, %v2171_v9  ;;  %vm2175_vm3 = vcmp.lt.f32.partialorder (%p1487_p6), %v2174_v28, 0.0004427343 }
 0x31c   : > { %v2138_v52 = vadd.f32 %v2137_v26, %v2091_v54  ;;  %v2173_v2 = vmul.f32 (%p1487_p6), %v3213_v0, %v2172_v36 }
 0x31e   : > { %v2139_v5 = vadd.f32 %v2138_v52, %v2092_v51 }
 0x320   : > { %v2140_v12 = vadd.f32 %v2139_v5, %v2093_v35 }
 0x322   : > { %2141 = vadd.xlane.f32.xlu0 %v2140_v12 }
 0x324   : > { %v3215_v6 = vpop.eup (%p1487_p6), %3214 }
 0x325   : > { %v2170_v38 = vmul.f32 (%p1487_p6), 0.6931472, %v3215_v6 }
 0x327   : > { %v2176_v20 = vsel (%p1487_p6), %vm2175_vm3, %v2173_v2, %v2170_v38 }
 0x328   : > { %v2177_v11 = vsel (%p1487_p6), %vm2164_vm0, %v2163_v56, %v2176_v20 }
 0x329   : > { %v2180_v31 = vmul.f32 (%p1487_p6), %v2178_v47, %v2177_v11  ;;  %3216 = vlog2.f32 (%p1487_p6), %v2177_v11 }
 0x32b   : > { %v2181_v17 = vadd.f32 (%p1487_p6), %v2180_v31, %v2179_v13 }
 0x32d   : > { %v2182_v8 = vmul.f32 (%p1487_p6), -0.5, %v2181_v17 }
 0x32f   : > { %v2183_v14 = vmul.f32 (%p1487_p6), %v2182_v8, %v2181_v17 }
 0x331   : > { %v2185_v39 = vsel (%p1487_p6), %vm2184_vm2, %v2183_v14, 0.0 }
 0x332   : > { %2186 = vadd.xlane.f32.xlu0 (%p1487_p6), %v2185_v39 }
 0x333   : > { %v3217_v33 = vpop.eup (%p1487_p6), %3216 }
 0x334   : > { %v2197_v23 = vmul.f32 (%p1487_p6), 0.6931472, %v3217_v33 }
 0x336   : > { %v2198_v61 = vsub.f32 (%p1487_p6), 0.0, %v2197_v23 }
 0x338   : > { %v2201_v63 = vsub.f32 (%p1487_p6), %v2198_v61, %v2200_v21 }
 0x33a   : > { %v2202_v43 = vsel (%p1487_p6), %vm2184_vm2, %v2201_v63, 0.0 }
 0x33b   : > { %2203 = vadd.xlane.f32.xlu0 (%p1487_p6), %v2202_v43 }
 0x351   : > { %v2571_v59 = vpop.f32.mrb[0].mxu0  ;;  %v1632_v29 = vpop.f32.mrb[0].mxu1 }
 0x352   : > { %v2572_v4 = vpop.f32.mrb[1].mxu0  ;;  %v2625_v1 = vpop.f32.mrb[1].mxu1 }
 0x353   : > { %v2573_v55 = vadd.f32 %v2572_v4, %v2571_v59 }
 0x355   : > { %v1633_v57 = vadd.f32 %v2573_v55, %v1632_v29 }
 0x357   : > { %v1636_v27 = vadd.f32 %v1633_v57, %v1492_v37 }
 0x359   : > { %1637 = vst [vmem:[#allocation2] sm:$0xff] %v1636_v27 }
 0x363   : > { %v1797_v25 = vpop.xlane.xlu0 %1796 }
 0x364   : > { %v1798_v7 = vrot.slane %v1797_v25, 4 }
 0x366   : > { %v1799_v44 = vadd.f32 %v1798_v7, %v1797_v25 }
 0x368   : > { %v1800_v3 = vrot.slane %v1799_v44, 2 }
 0x36a   : > { %v1801_v50 = vadd.f32 %v1800_v3, %v1799_v44 }
 0x36c   : > { %v1802_v34 = vrot.slane %v1801_v50, 1 }
 0x36e   : > { %v1803_v49 = vadd.f32 %v1802_v34, %v1801_v50 }
 0x370   : > { %2691 = vpush %v1803_v49 }
 0x3a1   : > { %s2692_s0 = spop %2691 }
 0x3a2   : > { %s2522_s22 = sadd.f32 -45167.668, %s2692_s0 }
 0x3a4   : > { %s2152_s11 = sadd.f32 %s2522_s22, %s2151_s4 }
 0x3a6   : > { %2154 = sst [smem:[#allocation17]] %s2152_s11 }
 0x3a7   : > { %s2213_s2 = sld [smem:[#allocation17]] (%p1487_p6) }
 0x3af   : > { %v2142_v62 = vpop.xlane.xlu0 %2141 }
 0x3b0   : > { %v2143_v24 = vrot.slane %v2142_v62, 4 }
 0x3b2   : > { %v2144_v41 = vadd.f32 %v2143_v24, %v2142_v62 }
 0x3b4   : > { %v2145_v45 = vrot.slane %v2144_v41, 2 }
 0x3b6   : > { %v2146_v22 = vadd.f32 %v2145_v45, %v2144_v41 }
 0x3b8   : > { %v2147_v15 = vrot.slane %v2146_v22, 1 }
 0x3ba   : > { %v2148_v16 = vadd.f32 %v2147_v15, %v2146_v22 }
 0x3bc   : > { %2693 = vpush %v2148_v16 }
 0x3bf   : > { %v2187_v48 = vpop.xlane.xlu0 (%p1487_p6), %2186 }
 0x3c0   : > { %v2188_v19 = vrot.slane (%p1487_p6), %v2187_v48, 4 }
 0x3c2   : > { %v2189_v30 = vadd.f32 (%p1487_p6), %v2188_v19, %v2187_v48 }
 0x3c4   : > { %v2190_v18 = vrot.slane (%p1487_p6), %v2189_v30, 2 }
 0x3c6   : > { %v2191_v42 = vadd.f32 (%p1487_p6), %v2190_v18, %v2189_v30 }
 0x3c8   : > { %v2204_v53 = vpop.xlane.xlu0 (%p1487_p6), %2203  ;;  %v2192_v46 = vrot.slane (%p1487_p6), %v2191_v42, 1 }
 0x3c9   : > { %v2205_v54 = vrot.slane (%p1487_p6), %v2204_v53, 4 }
 0x3ca   : > { %v2193_v60 = vadd.f32 (%p1487_p6), %v2192_v46, %v2191_v42 }
 0x3cb   : > { %v2206_v51 = vadd.f32 (%p1487_p6), %v2205_v54, %v2204_v53 }
 0x3cc   : > { %2695 = vpush (%p1487_p6), %v2193_v60 }
 0x3cd   : > { %v2207_v26 = vrot.slane (%p1487_p6), %v2206_v51, 2 }
 0x3cf   : > { %v2208_v35 = vadd.f32 (%p1487_p6), %v2207_v26, %v2206_v51 }
 0x3d1   : > { %v2209_v52 = vrot.slane (%p1487_p6), %v2208_v35, 1 }
 0x3d3   : > { %v2210_v5 = vadd.f32 (%p1487_p6), %v2209_v52, %v2208_v35 }
 0x3d5   : > { %2697 = vpush (%p1487_p6), %v2210_v5 }
 0x3ec   : > { %2162 = sbr.rel (!%p1487_p6) target bundleno = 1036 (0x40c), region = 92 }
 0x3ed   : > { %s2694_s26 = spop %2693 }
 0x3ee   : > { %s2523_s3 = sadd.f32 -45167.668, %s2694_s26 }
 0x3f0   : > { %s2156_s14 = sadd.f32 %s2524_s19, %s2523_s3 }
 0x3f2   : > { %2158 = sst [smem:[#allocation17 + $0x1]] %s2156_s14 }
 0x3f3   : > { %s2528_s12 = sld [smem:[#allocation17 + $0x1]] }
 0x3fd   : > { %s2696_s9 = spop %2695 }
 0x3fe   : > { %s2526_s30 = sadd.f32 -117.62413, %s2696_s9 }
 0x400   : > { %s2214_s28 = sadd.f32 %s2526_s30, %s2213_s2 }
 0x402   : > { %2216 = sst [smem:[#allocation17]] %s2214_s28 }
 0x406   : > { %s2698_s25 = spop %2697 }
 0x407   : > { %s2527_s21 = sadd.f32 -117.62413, %s2698_s25 }
 0x409   : > { %s2218_s20 = sadd.f32 %s2528_s12, %s2527_s21 }
 0x40b   : > { %2220 = sst [smem:[#allocation17 + $0x1]] %s2218_s20 }
 0x40c PF: > { %s8260_s4 = sld [smem:[#allocation30_spill]] }
 0x412   : > { %p2529_p13 = scmp.ne.s32.totalorder %s8260_s4, 1 }
 0x413   : > { %v2225_v12 = vld [vmem:[%s503_s24] sm:$0x1] (!%p2529_p13)  ;;  %v2246_v27 = vlaneseq (!%p2529_p13) }
 0x414   : > { %2224 = sbr.rel (%p2529_p13) target bundleno = 1085 (0x43d), region = 96  ;;  %v2227_v59 = vmin.f32 (!%p2529_p13), %v2225_v12, 20.0  ;;  %vm2226_vm11 = vcmp.gt.f32.partialorder (!%p2529_p13), %v2225_v12, 20.0  ;;  %v2241_v50 = vld [vmem:[%s511_s8] sm:$0x1] (!%p2529_p13) }
 0x415   : > { %v2247_v3 = vshrl.u32 (!%p2529_p13), %v2246_v27, 7  ;;  %v2240_v62 = vld [vmem:[%s495_s15] sm:$0x1] (!%p2529_p13) }
 0x416   : > { %v2228_v29 = vmul.f32 (!%p2529_p13), 1.442695, %v2227_v59  ;;  %v2244_v22 = vld [vmem:[#allocation2] sm:$0xff] (!%p2529_p13) }
 0x417   : > { %v2248_v41 = vsub.s32 (!%p2529_p13), 0, %v2247_v3 }
 0x418   : > { %3218 = vpow2.f32 (!%p2529_p13), %v2228_v29 }
 0x422   : > { %v3219_v4 = vpop.eup %3218 }
 0x423   : > { %v2230_v1 = vadd.f32 1.0, %v3219_v4  ;;  %v2233_v55 = vmul.f32 -0.5, %v3219_v4  ;;  %v2236_v57 = vand.u32 2147483647, %v3219_v4 }
 0x425   : > { %3220 = vlog2.f32 %v2230_v1  ;;  %v2234_v37 = vadd.f32 1.0, %v2233_v55  ;;  %vm2237_vm4 = vcmp.lt.f32.partialorder %v2236_v57, 0.0004427343 }
 0x427   : > { %v2235_v25 = vmul.f32 %v3219_v4, %v2234_v37 }
 0x42f   : > { %v3221_v7 = vpop.eup %3220 }
 0x430   : > { %v2232_v44 = vmul.f32 0.6931472, %v3221_v7 }
 0x432   : > { %v2238_v34 = vsel %vm2237_vm4, %v2235_v25, %v2232_v44 }
 0x433   : > { %v2239_v49 = vsel %vm2226_vm11, %v2225_v12, %v2238_v34 }
 0x434   : > { %v2242_v24 = vmul.f32 %v2241_v50, %v2239_v49 }
 0x436   : > { %v2243_v45 = vadd.f32 %v2242_v24, %v2240_v62 }
 0x438   : > { %v2249_v15 = vrot.slane %v2243_v45, %v2248_v41 }
 0x43a   : > { %v2251_v16 = vadd.f32 %v2249_v15, %v2244_v22 }
 0x43c   : > { %2252 = vst [vmem:[%s6569_s1] sm:$0xff] %v2251_v16 }
 0x43d PF: > { %s8261_s24 = sld [smem:[#allocation31_spill]]  ;;  %s8262_s0 = sld [smem:[#allocation38_spill]] }
 0x43e   : > { %s8263_s8 = sld [smem:[#allocation174_spill]]  ;;  %s2269_s3 = sshll.u32 %s6569_s1, 4  ;;  %s2270_s3 = int_to_ptr.vmem [resolvable:$true] %s2269_s3 }
 0x43f   : > { %s2254_s15 = scalar_lea.sflag [#allocation5], %s4145_s27  ;;  %s3432_s14 = scalar_lea.vmem %s2270_s3, 128 }
 0x440   : > { %p3433_p7 = scmp.ne.s32.totalorder %s2270_s3, %s3432_s14  ;;  %s3627_s2 = smov [#allocation16]  }
 0x441   : > { %s3436_s9 = sshll.u32 %s3627_s2, 4  ;;  %s3437_s9 = int_to_ptr.vmem [resolvable:$false] %s3436_s9 }
 0x442   : > { %s3438_s30 = scalar_lea.vmem %s3437_s9, 256  ;;  %p3439_p3 = scmp.lt.s32.totalorder %s2270_s3, %s3437_s9 }
 0x443   : > { %s2531_s22 = sshll.u32 %s8261_s24, 7  ;;  %p8264_p0 = scmp.ne.s32.totalorder %s8262_s0, 0 }
 0x444   : > { %s6898_s26 = scalar_lea.hbm %s8263_s8, %s2531_s22  ;;  %p3440_p2 = scmp.lt.s32.totalorder %s3438_s30, %s3432_s14 }
 0x445   : > { %p3434_p8 = pnand %p3433_p7, %p8264_p0 }
 0x446   : > { %p3441_p11 = por %p3440_p2, %p3439_p3 }
 0x447   : > { %p3435_p1 = pneg %p3434_p8 }
 0x449   : > { %p3442_p10 = pnand %p3441_p11, %p3435_p1 }
 0x44b   : > { %3445 = shalt.err (!%p3442_p10)
}
 0x44c   : > { %s3446_s27 = scalar_lea.hbm %s6898_s26, 128  ;;  %s3450_s12 = scalar_lea.hbm %s8263_s8, 384 }
 0x44d   : > { %p3447_p4 = scmp.ne.s32.totalorder %s6898_s26, %s3446_s27  ;;  %p3451_p5 = scmp.lt.u32.totalorder %s6898_s26, %s8263_s8 }
 0x44e   : > { %p3452_p12 = scmp.lt.u32.totalorder %s3450_s12, %s3446_s27  ;;  %p3454_p7 = scmp.lt.u32.totalorder %s3446_s27, %s6898_s26 }
 0x44f   : > { %p3448_p6 = pnand %p3447_p4, %p8264_p0 }
 0x450   : > { %p3453_p13 = por %p3452_p12, %p3451_p5 }
 0x451   : > { %p3449_p9 = pneg %p3448_p6 }
 0x452   : > { %p3455_p8 = por %p3454_p7, %p3453_p13 }
 0x454   : > { %p3456_p1 = pnand %p3455_p8, %p3449_p9 }
 0x456   : > { %3459 = shalt.err (!%p3456_p1)
}
 0x457   : > { %s8265_s20 = sld [smem:[#allocation34_spill]]  ;;  %s8266_s22 = sld [smem:[#allocation175_spill]] }
 0x458   : > { %2716 = dma.vmem_to_hbm [thread:$0]  (%p8264_p0), %s2270_s3, 128, %s6898_s26, %s2254_s15  }
 0x45d   : > { %s3460_s11 = scalar_lea.hbm %s8266_s22, 16  ;;  %p8267_p2 = scmp.eq.s32.totalorder %s8265_s20, 5 }
 0x45e   : > { %p3461_p3 = scmp.ne.s32.totalorder %s8266_s22, %s3460_s11  ;;  %p3466_p4 = scmp.lt.u32.totalorder %s3460_s11, %s8266_s22 }
 0x460   : > { %p3462_p11 = pnand %p3461_p3, %p8267_p2 }
 0x462   : > { %p3463_p10 = pneg %p3462_p11 }
 0x464   : > { %p3468_p6 = pnand %p3466_p4, %p3463_p10 }
 0x466   : > { %3471 = shalt.err (!%p3468_p6)
}
 0x467   : > { %s3628_s0 = smov [#allocation17]   ;;  %p8268_p0 = pmov %p8267_p2 }
 0x469   : > { %2718 = dma.smem_to_hbm (%p8268_p0), %s3628_s0, 16, %s8266_s22, [#allocation6]  }
 0x46a   : > { %p8269_p9 = pmov %p8268_p0 }
 0x46b   : > { %p8270_p5 = pmov %p8268_p0 }
 0x46c   : > { %3549 = dma.done.wait (%p8269_p9), [#allocation6], 16  }
 0x46d   : > { %3551 = vsyncadd (%p8270_p5), [#allocation6], 4294967280 }
 0x46e   : > { %2286 = sfence }
 0x46f PF: > { %s8271_s15 = sld [smem:[#allocation25_spill]]  ;;  %p2754_p12 = scmp.ge.s32.totalorder %s3610_s18, 2 }
 0x470   : > { %s8272_s30 = sld [smem:[#allocation40_spill]] }
 0x475   : > { %s2295_s27 = sand.u32 1, %s8271_s15  }
 0x476   : > { %p8273_p13 = scmp.ne.s32.totalorder %s8272_s30, 0  ;;  %s2296_s1 = scalar_lea.sflag [#allocation5], %s2295_s27 }
 0x478   : > { %p2745_p7 = pnand %p2754_p12, %p8273_p13 }
 0x47a   : > { %3553 = dma.done.wait (!%p2745_p7), %s2296_s1, 128  }
 0x47b   : > { %3555 = vsyncadd (!%p2745_p7), %s2296_s1, 4294967168  ;;  %s35_s18 = sadd.s32 1, %s3610_s18   ;;  %s8275_s27 = sld [smem:[#allocation26_spill]] }
 0x47c   : > { %p6944_p8 = scmp.ge.s32.totalorder %s35_s18, 8   ;;  %s8276_s12 = sld [smem:[#allocation27_spill]] }
 0x47d   : > { %s8277_s25 = sld [smem:[#allocation39_spill]]  ;;  %s8278_s30 = sld [smem:[#allocation28_spill]] }
 0x47e   : > { %s8279_s21 = smov %s3991_s29  ;;  %s8280_s11 = sld [smem:[#allocation29_spill]] }
 0x47f   : > { %s8281_s15 = sld [smem:[#allocation32_spill]]  ;;  %s8282_s20 = sld [smem:[#allocation42_spill]] }
 0x480   : > { %s8283_s4 = sld [smem:[#allocation36_spill]]  ;;  %s8287_s9 = smov %s3578_s10 }
 0x481   : > { %s8288_s10 = smov %s8279_s21  ;;  %s8291_s14 = smov %s3602_s16 }
 0x482   : > { %s8285_s28 = smov %s8276_s12  ;;  %s8289_s12 = smov %s3590_s13 }
 0x483   : > { %s8286_s29 = smov %s8277_s25  ;;  %s8290_s13 = smov %s3985_s17 }
 0x484   :  { %34 = sbr.rel (!%p6944_p8) target bundleno = 27 (0x1b), region = 200 }
 0x485   : > { %s8292_s16 = smov %s8282_s20 }
 0x486   : > { %s8293_s17 = smov %s8283_s4 }
 0x48b   :  { %2301 = vsyncpa [#allocation4], 1 }
 0x48c   :  { %2303 = vsyncpa [#allocation4 + $0x1], 1 }
 0x48d   :  { %2304 = vsyncpa [#allocation8], 1 }
 0x48e   :  { %2306 = vsyncpa [#allocation8 + $0x1], 1 }
 0x48f   :  { %2307 = vsyncpa [#allocation11], 1 }
 0x490   :  { %2309 = vsyncpa [#allocation11 + $0x1], 1 }
 0x491   :  { %2310 = vsyncpa [#allocation14], 1 }
 0x492   :  { %2312 = vsyncpa [#allocation14 + $0x1], 1 }
 0x493   :  { %2313 = vsyncpa [#allocation5], 1 }
 0x494   :  { %2315 = vsyncpa [#allocation5 + $0x1], 1 }
 0x495   :  { %2316 = vsyncpa [#allocation6], 1 }
 0x496   :  { %2318 = vsyncpa [#allocation6 + $0x1], 1 }

</bundles_post_ra>
